<compile_context>
chip_gen: v7x
topology: tpu7x:2x2x1
jax: 0.10.0
libtpu: 0.0.40
codegen_flags: <defaults>
</compile_context>

<pallas_src>
import functools

import jax
import jax.numpy as jnp
import numpy as np
from jax.experimental import pallas as pl
from jax.experimental.pallas import tpu as pltpu

# ---- MS-SSIM hyper-parameters ---------------------------------------------------------
WIN_SIZE = 7
WIN_SIGMA = 1.5
DATA_RANGE = 1.0
K1, K2 = 0.01, 0.03
WEIGHTS = (0.2, 0.3, 0.5)          # 3 scales (small images); sums to 1.0
C1 = (K1 * DATA_RANGE) ** 2
C2 = (K2 * DATA_RANGE) ** 2
N_LEVELS = len(WEIGHTS)


def _gauss_1d(size, sigma):
    coords = np.arange(size, dtype=np.float64) - size // 2
    g = np.exp(-(coords ** 2) / (2.0 * sigma * sigma))
    return (g / g.sum()).astype(np.float32)


_WIN = _gauss_1d(WIN_SIZE, WIN_SIGMA)


def _round_up(a, m):
    return (a + m - 1) // m * m


# ---- constant banded / block-diagonal matrices (host-side numpy) -----------------------
def _block_diag(block, reps):
    r, c = block.shape
    m = np.zeros((r * reps, c * reps), dtype=np.float32)
    for i in range(reps):
        m[i * r:(i + 1) * r, i * c:(i + 1) * c] = block
    return m


def _conv_cols(n):
    """(n, n-6): (img @ M)[., o] = sum_t win[t] * img[., o+t]  ('valid' correlation)."""
    no = n - WIN_SIZE + 1
    m = np.zeros((n, no), dtype=np.float32)
    for o in range(no):
        m[o:o + WIN_SIZE, o] = _WIN
    return m


def _conv_rows_padded(n):
    """(round_up(n-6, 8), n): (M @ img)[o, .] = valid correlation; pad rows are zero."""
    no = n - WIN_SIZE + 1
    m = np.zeros((_round_up(no, 8), n), dtype=np.float32)
    for o in range(no):
        m[o, o:o + WIN_SIZE] = _WIN
    return m


def _pool_cols(n):
    """(n, n//2): 2-tap average along the lane axis."""
    m = np.zeros((n, n // 2), dtype=np.float32)
    for j in range(n // 2):
        m[2 * j, j] = 0.5
        m[2 * j + 1, j] = 0.5
    return m


def _pool_rows(n):
    """(n//2, n): 2-tap average along the sublane axis (left-multiplied)."""
    m = np.zeros((n // 2, n), dtype=np.float32)
    for j in range(n // 2):
        m[j, 2 * j] = 0.5
        m[j, 2 * j + 1] = 0.5
    return m


def _seg_mean(k, wo, ho):
    """(k*wo, k): per-packed-channel lane-segment sum, pre-scaled by 1/(ho*wo)."""
    m = np.zeros((k * wo, k), dtype=np.float32)
    inv = 1.0 / float(ho * wo)
    for c in range(k):
        m[c * wo:(c + 1) * wo, c] = inv
    return m


# ---------------------------------- kernel ----------------------------------------------
def _safe_pow(v, p):
    # v >= 0 (post-relu); torch semantics: 0 ** p == 0 for p > 0.
    return jnp.where(v > 0.0, jnp.exp(p * jnp.log(jnp.maximum(v, 1e-30))), 0.0)


def _make_kernel(scale, g, k, h, w):
    def kernel(curr_ref, x_ref, y_ref, *refs):
        out_ref = refs[-1]
        consts = refs[:-1]

        curr = curr_ref[...]
        xd = (x_ref[...] - curr) * scale     # "dynamic" part; scale=0.5 if convert_range
        yd = (y_ref[...] - curr) * scale
        d = jnp.concatenate([xd, yd], axis=0)          # (2g, h, k*w) — feeds filters AND pool

        ms = None
        ci = 0
        for lvl in range(N_LEVELS):
            hl, wl = h >> lvl, w >> lvl
            ho, wo = hl - WIN_SIZE + 1, wl - WIN_SIZE + 1
            hop = _round_up(ho, 8)                     # zero rows in GV pad to 8-aligned
            last = lvl == N_LEVELS - 1

            gh = consts[ci][...]                       # (k*wl, k*wo)       block-diag
            gv = consts[ci + 1][...]                   # (5g*hop, 5g*hl)    block-diag
            seg = consts[ci + 2][...]                  # (k*wo, k)
            ci += 3

            # 5-map stack [x, y, x*x, y*y, x*y]  (d*d is already [x*x, y*y])
            maps = jnp.concatenate([d, d * d, d[:g] * d[g:]], axis=0)     # (5g, hl, k*wl)

            # horizontal (lane) Gaussian: ONE 2-D matmul
            f1 = jnp.dot(maps.reshape(5 * g * hl, k * wl), gh,
                         preferred_element_type=jnp.float32)              # (5g*hl, k*wo)
            # vertical (sublane) Gaussian: ONE 2-D matmul (block-diagonal constant)
            f2 = jnp.dot(gv, f1, preferred_element_type=jnp.float32)      # (5g*hop, k*wo)
            f = f2.reshape(5 * g, hop, k * wo)

            mu1, mu2 = f[0:g], f[g:2 * g]
            e_xx, e_yy, e_xy = f[2 * g:3 * g], f[3 * g:4 * g], f[4 * g:5 * g]

            mu1_sq, mu2_sq, mu1_mu2 = mu1 * mu1, mu2 * mu2, mu1 * mu2
            sigma1_sq = e_xx - mu1_sq         # keep f32: E[x^2]-mu^2 cancels badly
            sigma2_sq = e_yy - mu2_sq
            sigma12 = e_xy - mu1_mu2

            cs_map = (2.0 * sigma12 + C2) / (sigma1_sq + sigma2_sq + C2)
            m = ((2.0 * mu1_mu2 + C1) / (mu1_sq + mu2_sq + C1)) * cs_map if last else cs_map

            # per-packed-channel spatial mean: lane segments via a tiny matmul,
            # zero-padded sublane rows excluded by the [:ho] slice.
            col = jnp.dot(m.reshape(g * hop, k * wo), seg,
                          preferred_element_type=jnp.float32)             # (g*hop, k)
            val = jnp.sum(col.reshape(g, hop, k)[:, :ho, :],
                          axis=1, keepdims=True)                          # (g, 1, k)

            val = jnp.maximum(val, 0.0)                                   # torch.relu
            term = _safe_pow(val, float(WEIGHTS[lvl]))                    # val ** weight
            ms = term if ms is None else ms * term

            if not last:
                ph = consts[ci][...]                   # (k*wl, k*wl/2)     block-diag
                pv = consts[ci + 1][...]               # (2g*hl/2, 2g*hl)   block-diag
                ci += 2
                # 2x2 average pool, again as two single 2-D matmuls on the stacked xd/yd
                p1 = jnp.dot(d.reshape(2 * g * hl, k * wl), ph,
                             preferred_element_type=jnp.float32)          # (2g*hl, k*wl/2)
                p2 = jnp.dot(pv, p1, preferred_element_type=jnp.float32)  # (2g*hl/2, ..)
                d = p2.reshape(2 * g, hl // 2, (k * wl) // 2)

        out_ref[...] = ms

    return kernel


# -------------------------------- host-side helpers -------------------------------------
def _num_tensorcores():
    try:
        info = pltpu.get_tpu_info()
        for attr in ("num_cores", "tensorcores_per_chip", "cores_per_chip",
                     "num_tensorcores", "core_count"):
            v = getattr(info, attr, None)
            if isinstance(v, int) and v >= 1:
                return v
    except Exception:
        pass
    return 1


def _vmem_limit_bytes():
    try:
        info = pltpu.get_tpu_info()
        cap = int(getattr(info, "vmem_capacity_bytes", 0))
    except Exception:
        cap = 0
    if cap <= 0:
        cap = 64 * 1024 * 1024            # conservative (v7x-sized) fallback
    return int(min(cap // 2, 64 * 1024 * 1024))


def _footprint_bytes(g, k, h, w):
    """Rough per-grid-step VMEM footprint: inputs x2 buffers + working set + constants."""
    kw, kwo = k * w, k * (w - WIN_SIZE + 1)
    hop = _round_up(h - WIN_SIZE + 1, 8)
    img = g * h * kw * 4
    data = 6 * img                                     # 3 inputs x 2 pipeline buffers
    data += 2 * img                                    # stacked xd/yd
    data += 5 * img                                    # 5-map concat
    data += 5 * g * h * kwo * 4 + 5 * g * hop * kwo * 4   # f1, filtered stack
    data += 8 * g * hop * kwo * 4                      # elementwise temporaries (generous)
    consts = 0
    for lvl in range(N_LEVELS):
        hl, wl = h >> lvl, w >> lvl
        hol_p = _round_up(hl - WIN_SIZE + 1, 8)
        wol = wl - WIN_SIZE + 1
        consts += (k * wl) * (k * wol) * 4                          # GH
        consts += (5 * g * hol_p) * (5 * g * hl) * 4                # GV (block-diag)
        consts += (k * wol) * k * 4                                 # SEG
        if lvl < N_LEVELS - 1:
            consts += (k * wl) * (k * wl // 2) * 4                  # PH
            consts += (2 * g * (hl // 2)) * (2 * g * hl) * 4        # PV (block-diag)
    return data + 2 * consts                           # constants are double-buffered too


def _pick_tile(G, k, h, w, n_cores, vmem_limit):
    budget = int(vmem_limit * 0.6)                     # 20-40% slack under the limit
    best = 1
    for d in range(1, G + 1):
        if G % d != 0:
            continue
        if d > 1 and 5 * d * h > 1024:
            continue                                   # cap block-diagonal waste / size
        if _footprint_bytes(d, k, h, w) > budget:
            continue
        if n_cores >= 2 and G >= 2 and (G // d) < 2:
            continue                                   # v7x: keep >=2 steps for 2 cores
        best = max(best, d)
    return best


# ---------------------------------- public wrapper --------------------------------------
@functools.partial(jax.jit, static_argnames=("convert_range",))
def ssim_loss_dynamic(curr_image, x, y, convert_range=False):
    """1 - MS_SSIM(x - curr_image, y - curr_image).  Inputs are NCHW, like PyTorch."""
    n, c, h, w = x.shape
    bc = n * c

    factor = 2 ** (N_LEVELS - 1)
    # TODO(synk): odd / non-multiple-of-(8*4, 4) spatial sizes would need F.avg_pool2d's
    # zero padding and non-layout-free reshapes; unsupported here.
    if h % (8 * factor) != 0 or w % factor != 0:
        raise ValueError("H must be a multiple of %d and W of %d" % (8 * factor, factor))
    if (h // factor) < WIN_SIZE or (w // factor) < WIN_SIZE:
        raise ValueError("image too small for %d-scale MS-SSIM with win_size=%d"
                         % (N_LEVELS, WIN_SIZE))
    # TODO(synk): for large images (W >~ 256) the dense banded horizontal matrix and the
    # block-diagonal vertical matrix become FLOP/VMEM-wasteful; a 7-tap shifted-slice
    # horizontal conv would be the next step there.

    # (x+1)/2 - (curr+1)/2 == (x - curr)/2, so convert_range is a constant 0.5 scale.
    scale = 0.5 if convert_range else 1.0

    n_cores = _num_tensorcores()
    vmem_limit = _vmem_limit_bytes()

    # ---- lane packing: k channels side by side along the lane axis --------------------
    k = max(1, min(128 // w, bc)) if w <= 128 else 1
    bc_pad = _round_up(bc, k)
    G = bc_pad // k
    if n_cores >= 2 and G > 1 and G % 2 == 1:
        bc_pad += k                    # even number of groups -> even grid on multi-core
        G += 1

    tile_g = _pick_tile(G, k, h, w, n_cores, vmem_limit)
    grid_len = G // tile_g

    def pack(a):
        a = a.reshape(bc, h, w).astype(jnp.float32)
        if bc_pad > bc:
            a = jnp.concatenate(
                [a, jnp.zeros((bc_pad - bc, h, w), jnp.float32)], axis=0)
        a = a.reshape(G, k, h, w).transpose(0, 2, 1, 3)        # (G, h, k, w)
        return a.reshape(G, h, k * w)

    curr3, x3, y3 = pack(curr_image), pack(x), pack(y)

    # ---- per-level constant (block-diagonal) filter / pool / reduction matrices -------
    consts = []
    for lvl in range(N_LEVELS):
        hl, wl = h >> lvl, w >> lvl
        ho, wo = hl - WIN_SIZE + 1, wl - WIN_SIZE + 1
        consts.append(jnp.asarray(_block_diag(_conv_cols(wl), k)))                 # GH
        consts.append(jnp.asarray(_block_diag(_conv_rows_padded(hl), 5 * tile_g)))  # GV
        consts.append(jnp.asarray(_seg_mean(k, wo, ho)))                           # SEG
        if lvl < N_LEVELS - 1:
            consts.append(jnp.asarray(_block_diag(_pool_cols(wl), k)))             # PH
            consts.append(jnp.asarray(_block_diag(_pool_rows(hl), 2 * tile_g)))    # PV

    img_spec = pl.BlockSpec((tile_g, h, k * w), lambda i: (i, 0, 0))
    const_specs = [pl.BlockSpec(cst.shape, lambda i: (0, 0)) for cst in consts]
    out_spec = pl.BlockSpec((tile_g, 1, k), lambda i: (i, 0, 0))

    if n_cores >= 2 and grid_len >= n_cores and grid_len % n_cores == 0:
        sem = (getattr(pltpu, "CORE_PARALLEL", "parallel"),)   # v7x: 2-way core sharding
    else:
        sem = ("parallel",)

    ms_per_channel = pl.pallas_call(
        _make_kernel(scale, tile_g, k, h, w),
        grid=(grid_len,),
        in_specs=[img_spec, img_spec, img_spec] + const_specs,
        out_specs=out_spec,
        out_shape=jax.ShapeDtypeStruct((G, 1, k), jnp.float32),
        compiler_params=pltpu.CompilerParams(
            dimension_semantics=sem,
            vmem_limit_bytes=vmem_limit,
        ),
    )(curr3, x3, y3, *consts)

    # drop padded channels, mean over (batch, channel), then the "1 - ms_ssim" loss.
    ms = ms_per_channel.reshape(-1)[:bc]
    return 1.0 - jnp.mean(ms)


# --------------------------- pure-JAX (non-Pallas) reference ----------------------------
def _reference_loss(curr, x, y, convert_range):
    if convert_range:
        curr, x, y = (curr + 1.0) / 2.0, (x + 1.0) / 2.0, (y + 1.0) / 2.0
    n, c, h, w = x.shape
    X = (x - curr).reshape(n * c, h, w).astype(jnp.float32)
    Y = (y - curr).reshape(n * c, h, w).astype(jnp.float32)
    win = jnp.asarray(_WIN)

    def gfilter(img):
        ow = img.shape[-1] - WIN_SIZE + 1
        img = sum(win[t] * img[:, :, t:t + ow] for t in range(WIN_SIZE))
        oh = img.shape[-2] - WIN_SIZE + 1
        img = sum(win[t] * img[:, t:t + oh, :] for t in range(WIN_SIZE))
        return img

    ms = None
    for lvl in range(N_LEVELS):
        mu1, mu2 = gfilter(X), gfilter(Y)
        e_xx, e_yy, e_xy = gfilter(X * X), gfilter(Y * Y), gfilter(X * Y)
        s1, s2, s12 = e_xx - mu1 * mu1, e_yy - mu2 * mu2, e_xy - mu1 * mu2
        cs = (2.0 * s12 + C2) / (s1 + s2 + C2)
        if lvl == N_LEVELS - 1:
            m = ((2.0 * mu1 * mu2 + C1) / (mu1 * mu1 + mu2 * mu2 + C1)) * cs
        else:
            m = cs
        val = jnp.maximum(jnp.mean(m, axis=(-2, -1)), 0.0)
        term = val ** WEIGHTS[lvl]
        ms = term if ms is None else ms * term
        if lvl < N_LEVELS - 1:
            X = 0.25 * (X[:, 0::2, 0::2] + X[:, 1::2, 0::2]
                        + X[:, 0::2, 1::2] + X[:, 1::2, 1::2])
            Y = 0.25 * (Y[:, 0::2, 0::2] + Y[:, 1::2, 0::2]
                        + Y[:, 0::2, 1::2] + Y[:, 1::2, 1::2])
    return 1.0 - jnp.mean(ms)


if __name__ == "__main__":
    key = jax.random.PRNGKey(0)
    k1, k2, k3, k4 = jax.random.split(key, 4)
    N, C, H, W = 2, 4, 32, 32
    base = jax.random.uniform(k1, (N, C, H, W), dtype=jnp.float32)
    curr = 0.5 * jax.random.uniform(k2, (N, C, H, W), dtype=jnp.float32)
    x = jnp.clip(base + 0.05 * jax.random.normal(k3, (N, C, H, W)), 0.0, 1.0)
    y = jnp.clip(base + 0.05 * jax.random.normal(k4, (N, C, H, W)), 0.0, 1.0)

    loss = ssim_loss_dynamic(curr, x, y, convert_range=False)
    loss = jax.block_until_ready(loss)
    assert loss.shape == () and bool(jnp.isfinite(loss))

    ref = jax.block_until_ready(_reference_loss(curr, x, y, False))
    assert abs(float(loss) - float(ref)) < 2e-2, (float(loss), float(ref))

    print("KERNEL_OK")
</pallas_src>

<mosaic_0001>
module attributes {stable_mosaic.version = 11 : i64} {
  func.func @kernel(%arg0: i32, %arg1: memref<2x32x128xf32, #tpu.memory_space<vmem>>, %arg2: memref<2x32x128xf32, #tpu.memory_space<vmem>>, %arg3: memref<2x32x128xf32, #tpu.memory_space<vmem>>, %arg4: memref<128x104xf32, #tpu.memory_space<vmem>>, %arg5: memref<320x320xf32, #tpu.memory_space<vmem>>, %arg6: memref<104x4xf32, #tpu.memory_space<vmem>>, %arg7: memref<128x64xf32, #tpu.memory_space<vmem>>, %arg8: memref<64x128xf32, #tpu.memory_space<vmem>>, %arg9: memref<64x40xf32, #tpu.memory_space<vmem>>, %arg10: memref<160x160xf32, #tpu.memory_space<vmem>>, %arg11: memref<40x4xf32, #tpu.memory_space<vmem>>, %arg12: memref<64x32xf32, #tpu.memory_space<vmem>>, %arg13: memref<32x64xf32, #tpu.memory_space<vmem>>, %arg14: memref<32x8xf32, #tpu.memory_space<vmem>>, %arg15: memref<80x80xf32, #tpu.memory_space<vmem>>, %arg16: memref<8x4xf32, #tpu.memory_space<vmem>>, %arg17: memref<2x1x4xf32, #tpu.memory_space<vmem>>) attributes {dimension_semantics = [#tpu.dimension_semantics<parallel>], iteration_bounds = array<i64: 1>, scalar_prefetch = 0 : i64, scratch_operands = 0 : i64, tpu.core_type = #tpu.core_type<tc>, window_params = [{transform_indices = @transform_0, window_bounds = array<i64: 2, 32, 128>}, {transform_indices = @transform_1, window_bounds = array<i64: 2, 32, 128>}, {transform_indices = @transform_2, window_bounds = array<i64: 2, 32, 128>}, {pipeline_mode = #tpu.pipeline_mode<synchronous>, transform_indices = @transform_3, window_bounds = array<i64: 128, 104>}, {pipeline_mode = #tpu.pipeline_mode<synchronous>, transform_indices = @transform_4, window_bounds = array<i64: 320, 320>}, {pipeline_mode = #tpu.pipeline_mode<synchronous>, transform_indices = @transform_5, window_bounds = array<i64: 104, 4>}, {pipeline_mode = #tpu.pipeline_mode<synchronous>, transform_indices = @transform_6, window_bounds = array<i64: 128, 64>}, {pipeline_mode = #tpu.pipeline_mode<synchronous>, transform_indices = @transform_7, window_bounds = array<i64: 64, 128>}, {pipeline_mode = #tpu.pipeline_mode<synchronous>, transform_indices = @transform_8, window_bounds = array<i64: 64, 40>}, {pipeline_mode = #tpu.pipeline_mode<synchronous>, transform_indices = @transform_9, window_bounds = array<i64: 160, 160>}, {pipeline_mode = #tpu.pipeline_mode<synchronous>, transform_indices = @transform_10, window_bounds = array<i64: 40, 4>}, {pipeline_mode = #tpu.pipeline_mode<synchronous>, transform_indices = @transform_11, window_bounds = array<i64: 64, 32>}, {pipeline_mode = #tpu.pipeline_mode<synchronous>, transform_indices = @transform_12, window_bounds = array<i64: 32, 64>}, {pipeline_mode = #tpu.pipeline_mode<synchronous>, transform_indices = @transform_13, window_bounds = array<i64: 32, 8>}, {pipeline_mode = #tpu.pipeline_mode<synchronous>, transform_indices = @transform_14, window_bounds = array<i64: 80, 80>}, {pipeline_mode = #tpu.pipeline_mode<synchronous>, transform_indices = @transform_15, window_bounds = array<i64: 8, 4>}, {transform_indices = @transform_16, window_bounds = array<i64: 2, 1, 4>}]} {
    %c0 = arith.constant 0 : index
    %c0_0 = arith.constant 0 : index
    %c0_1 = arith.constant 0 : index
    %0 = vector.load %arg1[%c0, %c0_0, %c0_1] : memref<2x32x128xf32, #tpu.memory_space<vmem>>, vector<2x32x128xf32>
    %c0_2 = arith.constant 0 : index
    %c0_3 = arith.constant 0 : index
    %c0_4 = arith.constant 0 : index
    %1 = vector.load %arg2[%c0_2, %c0_3, %c0_4] : memref<2x32x128xf32, #tpu.memory_space<vmem>>, vector<2x32x128xf32>
    %2 = arith.subf %1, %0 : vector<2x32x128xf32>
    %cst = arith.constant 1.000000e+00 : f32
    %3 = vector.broadcast %cst : f32 to vector<2x32x128xf32>
    %4 = arith.mulf %2, %3 : vector<2x32x128xf32>
    %c0_5 = arith.constant 0 : index
    %c0_6 = arith.constant 0 : index
    %c0_7 = arith.constant 0 : index
    %5 = vector.load %arg3[%c0_5, %c0_6, %c0_7] : memref<2x32x128xf32, #tpu.memory_space<vmem>>, vector<2x32x128xf32>
    %6 = arith.subf %5, %0 : vector<2x32x128xf32>
    %cst_8 = arith.constant 1.000000e+00 : f32
    %7 = vector.broadcast %cst_8 : f32 to vector<2x32x128xf32>
    %8 = arith.mulf %6, %7 : vector<2x32x128xf32>
    %9 = tpu.concatenate %4, %8 in 0 : vector<2x32x128xf32>, vector<2x32x128xf32> -> vector<4x32x128xf32>
    %c0_9 = arith.constant 0 : index
    %c0_10 = arith.constant 0 : index
    %10 = vector.load %arg4[%c0_9, %c0_10] : memref<128x104xf32, #tpu.memory_space<vmem>>, vector<128x104xf32>
    %c0_11 = arith.constant 0 : index
    %c0_12 = arith.constant 0 : index
    %11 = vector.load %arg5[%c0_11, %c0_12] : memref<320x320xf32, #tpu.memory_space<vmem>>, vector<320x320xf32>
    %c0_13 = arith.constant 0 : index
    %c0_14 = arith.constant 0 : index
    %12 = vector.load %arg6[%c0_13, %c0_14] : memref<104x4xf32, #tpu.memory_space<vmem>>, vector<104x4xf32>
    %13 = arith.mulf %9, %9 : vector<4x32x128xf32>
    %14 = vector.extract_strided_slice %9 {offsets = [0, 0, 0], sizes = [2, 32, 128], strides = [1, 1, 1]} : vector<4x32x128xf32> to vector<2x32x128xf32>
    %15 = vector.extract_strided_slice %9 {offsets = [2, 0, 0], sizes = [2, 32, 128], strides = [1, 1, 1]} : vector<4x32x128xf32> to vector<2x32x128xf32>
    %16 = arith.mulf %14, %15 : vector<2x32x128xf32>
    %17 = tpu.concatenate %9, %13, %16 in 0 : vector<4x32x128xf32>, vector<4x32x128xf32>, vector<2x32x128xf32> -> vector<10x32x128xf32>
    %18 = vector.shape_cast %17 : vector<10x32x128xf32> to vector<320x128xf32>
    %cst_15 = arith.constant dense<0.000000e+00> : vector<320x104xf32>
    %19 = tpu.matmul %18, %10, %cst_15 {dimension_numbers = #tpu.dot_dimension_numbers<[1], [0], [0], [1], [0, 0, 1, 1], [], []>} : vector<320x128xf32>, vector<128x104xf32>, vector<320x104xf32> -> vector<320x104xf32>
    %cst_16 = arith.constant dense<0.000000e+00> : vector<320x104xf32>
    %20 = tpu.matmul %11, %19, %cst_16 {dimension_numbers = #tpu.dot_dimension_numbers<[1], [0], [0], [1], [0, 0, 1, 1], [], []>} : vector<320x320xf32>, vector<320x104xf32>, vector<320x104xf32> -> vector<320x104xf32>
    %21 = vector.shape_cast %20 : vector<320x104xf32> to vector<10x32x104xf32>
    %22 = vector.extract_strided_slice %21 {offsets = [0, 0, 0], sizes = [2, 32, 104], strides = [1, 1, 1]} : vector<10x32x104xf32> to vector<2x32x104xf32>
    %23 = vector.extract_strided_slice %21 {offsets = [2, 0, 0], sizes = [2, 32, 104], strides = [1, 1, 1]} : vector<10x32x104xf32> to vector<2x32x104xf32>
    %24 = vector.extract_strided_slice %21 {offsets = [4, 0, 0], sizes = [2, 32, 104], strides = [1, 1, 1]} : vector<10x32x104xf32> to vector<2x32x104xf32>
    %25 = vector.extract_strided_slice %21 {offsets = [6, 0, 0], sizes = [2, 32, 104], strides = [1, 1, 1]} : vector<10x32x104xf32> to vector<2x32x104xf32>
    %26 = vector.extract_strided_slice %21 {offsets = [8, 0, 0], sizes = [2, 32, 104], strides = [1, 1, 1]} : vector<10x32x104xf32> to vector<2x32x104xf32>
    %27 = arith.mulf %22, %22 : vector<2x32x104xf32>
    %28 = arith.mulf %23, %23 : vector<2x32x104xf32>
    %29 = arith.mulf %22, %23 : vector<2x32x104xf32>
    %30 = arith.subf %24, %27 : vector<2x32x104xf32>
    %31 = arith.subf %25, %28 : vector<2x32x104xf32>
    %32 = arith.subf %26, %29 : vector<2x32x104xf32>
    %cst_17 = arith.constant 2.000000e+00 : f32
    %33 = vector.broadcast %cst_17 : f32 to vector<2x32x104xf32>
    %34 = arith.mulf %33, %32 : vector<2x32x104xf32>
    %cst_18 = arith.constant 8.99999984E-4 : f32
    %35 = vector.broadcast %cst_18 : f32 to vector<2x32x104xf32>
    %36 = arith.addf %34, %35 : vector<2x32x104xf32>
    %37 = arith.addf %30, %31 : vector<2x32x104xf32>
    %cst_19 = arith.constant 8.99999984E-4 : f32
    %38 = vector.broadcast %cst_19 : f32 to vector<2x32x104xf32>
    %39 = arith.addf %37, %38 : vector<2x32x104xf32>
    %40 = arith.divf %36, %39 : vector<2x32x104xf32>
    %41 = vector.shape_cast %40 : vector<2x32x104xf32> to vector<64x104xf32>
    %cst_20 = arith.constant dense<0.000000e+00> : vector<64x4xf32>
    %42 = tpu.matmul %41, %12, %cst_20 {dimension_numbers = #tpu.dot_dimension_numbers<[1], [0], [0], [1], [0, 0, 1, 1], [], []>} : vector<64x104xf32>, vector<104x4xf32>, vector<64x4xf32> -> vector<64x4xf32>
    %43 = vector.shape_cast %42 : vector<64x4xf32> to vector<2x32x4xf32>
    %44 = vector.extract_strided_slice %43 {offsets = [0, 0, 0], sizes = [2, 26, 4], strides = [1, 1, 1]} : vector<2x32x4xf32> to vector<2x26x4xf32>
    %cst_21 = arith.constant dense<0.000000e+00> : vector<2x4xf32>
    %45 = vector.multi_reduction <add>, %44, %cst_21 [1] : vector<2x26x4xf32> to vector<2x4xf32>
    %46 = vector.shape_cast %45 : vector<2x4xf32> to vector<2x1x4xf32>
    %cst_22 = arith.constant 0.000000e+00 : f32
    %47 = vector.broadcast %cst_22 : f32 to vector<2x1x4xf32>
    %48 = arith.maximumf %46, %47 : vector<2x1x4xf32>
    %cst_23 = arith.constant 0.000000e+00 : f32
    %49 = vector.broadcast %cst_23 : f32 to vector<2x1x4xf32>
    %50 = arith.cmpf ogt, %48, %49 : vector<2x1x4xf32>
    %cst_24 = arith.constant 1.000000e-30 : f32
    %51 = vector.broadcast %cst_24 : f32 to vector<2x1x4xf32>
    %52 = arith.maximumf %48, %51 : vector<2x1x4xf32>
    %53 = math.log %52 : vector<2x1x4xf32>
    %cst_25 = arith.constant 2.000000e-01 : f32
    %54 = vector.broadcast %cst_25 : f32 to vector<2x1x4xf32>
    %55 = arith.mulf %54, %53 : vector<2x1x4xf32>
    %56 = math.exp %55 : vector<2x1x4xf32>
    %cst_26 = arith.constant 0.000000e+00 : f32
    %57 = vector.broadcast %cst_26 : f32 to vector<2x1x4xf32>
    %58 = arith.select %50, %56, %57 : vector<2x1x4xi1>, vector<2x1x4xf32>
    %c0_27 = arith.constant 0 : index
    %c0_28 = arith.constant 0 : index
    %59 = vector.load %arg7[%c0_27, %c0_28] : memref<128x64xf32, #tpu.memory_space<vmem>>, vector<128x64xf32>
    %c0_29 = arith.constant 0 : index
    %c0_30 = arith.constant 0 : index
    %60 = vector.load %arg8[%c0_29, %c0_30] : memref<64x128xf32, #tpu.memory_space<vmem>>, vector<64x128xf32>
    %61 = vector.shape_cast %9 : vector<4x32x128xf32> to vector<128x128xf32>
    %cst_31 = arith.constant dense<0.000000e+00> : vector<128x64xf32>
    %62 = tpu.matmul %61, %59, %cst_31 {dimension_numbers = #tpu.dot_dimension_numbers<[1], [0], [0], [1], [0, 0, 1, 1], [], []>} : vector<128x128xf32>, vector<128x64xf32>, vector<128x64xf32> -> vector<128x64xf32>
    %cst_32 = arith.constant dense<0.000000e+00> : vector<64x64xf32>
    %63 = tpu.matmul %60, %62, %cst_32 {dimension_numbers = #tpu.dot_dimension_numbers<[1], [0], [0], [1], [0, 0, 1, 1], [], []>} : vector<64x128xf32>, vector<128x64xf32>, vector<64x64xf32> -> vector<64x64xf32>
    %64 = vector.shape_cast %63 : vector<64x64xf32> to vector<4x16x64xf32>
    %c0_33 = arith.constant 0 : index
    %c0_34 = arith.constant 0 : index
    %65 = vector.load %arg9[%c0_33, %c0_34] : memref<64x40xf32, #tpu.memory_space<vmem>>, vector<64x40xf32>
    %c0_35 = arith.constant 0 : index
    %c0_36 = arith.constant 0 : index
    %66 = vector.load %arg10[%c0_35, %c0_36] : memref<160x160xf32, #tpu.memory_space<vmem>>, vector<160x160xf32>
    %c0_37 = arith.constant 0 : index
    %c0_38 = arith.constant 0 : index
    %67 = vector.load %arg11[%c0_37, %c0_38] : memref<40x4xf32, #tpu.memory_space<vmem>>, vector<40x4xf32>
    %68 = arith.mulf %64, %64 : vector<4x16x64xf32>
    %69 = vector.extract_strided_slice %64 {offsets = [0, 0, 0], sizes = [2, 16, 64], strides = [1, 1, 1]} : vector<4x16x64xf32> to vector<2x16x64xf32>
    %70 = vector.extract_strided_slice %64 {offsets = [2, 0, 0], sizes = [2, 16, 64], strides = [1, 1, 1]} : vector<4x16x64xf32> to vector<2x16x64xf32>
    %71 = arith.mulf %69, %70 : vector<2x16x64xf32>
    %72 = tpu.concatenate %64, %68, %71 in 0 : vector<4x16x64xf32>, vector<4x16x64xf32>, vector<2x16x64xf32> -> vector<10x16x64xf32>
    %73 = vector.shape_cast %72 : vector<10x16x64xf32> to vector<160x64xf32>
    %cst_39 = arith.constant dense<0.000000e+00> : vector<160x40xf32>
    %74 = tpu.matmul %73, %65, %cst_39 {dimension_numbers = #tpu.dot_dimension_numbers<[1], [0], [0], [1], [0, 0, 1, 1], [], []>} : vector<160x64xf32>, vector<64x40xf32>, vector<160x40xf32> -> vector<160x40xf32>
    %cst_40 = arith.constant dense<0.000000e+00> : vector<160x40xf32>
    %75 = tpu.matmul %66, %74, %cst_40 {dimension_numbers = #tpu.dot_dimension_numbers<[1], [0], [0], [1], [0, 0, 1, 1], [], []>} : vector<160x160xf32>, vector<160x40xf32>, vector<160x40xf32> -> vector<160x40xf32>
    %76 = vector.shape_cast %75 : vector<160x40xf32> to vector<10x16x40xf32>
    %77 = vector.extract_strided_slice %76 {offsets = [0, 0, 0], sizes = [2, 16, 40], strides = [1, 1, 1]} : vector<10x16x40xf32> to vector<2x16x40xf32>
    %78 = vector.extract_strided_slice %76 {offsets = [2, 0, 0], sizes = [2, 16, 40], strides = [1, 1, 1]} : vector<10x16x40xf32> to vector<2x16x40xf32>
    %79 = vector.extract_strided_slice %76 {offsets = [4, 0, 0], sizes = [2, 16, 40], strides = [1, 1, 1]} : vector<10x16x40xf32> to vector<2x16x40xf32>
    %80 = vector.extract_strided_slice %76 {offsets = [6, 0, 0], sizes = [2, 16, 40], strides = [1, 1, 1]} : vector<10x16x40xf32> to vector<2x16x40xf32>
    %81 = vector.extract_strided_slice %76 {offsets = [8, 0, 0], sizes = [2, 16, 40], strides = [1, 1, 1]} : vector<10x16x40xf32> to vector<2x16x40xf32>
    %82 = arith.mulf %77, %77 : vector<2x16x40xf32>
    %83 = arith.mulf %78, %78 : vector<2x16x40xf32>
    %84 = arith.mulf %77, %78 : vector<2x16x40xf32>
    %85 = arith.subf %79, %82 : vector<2x16x40xf32>
    %86 = arith.subf %80, %83 : vector<2x16x40xf32>
    %87 = arith.subf %81, %84 : vector<2x16x40xf32>
    %cst_41 = arith.constant 2.000000e+00 : f32
    %88 = vector.broadcast %cst_41 : f32 to vector<2x16x40xf32>
    %89 = arith.mulf %88, %87 : vector<2x16x40xf32>
    %cst_42 = arith.constant 8.99999984E-4 : f32
    %90 = vector.broadcast %cst_42 : f32 to vector<2x16x40xf32>
    %91 = arith.addf %89, %90 : vector<2x16x40xf32>
    %92 = arith.addf %85, %86 : vector<2x16x40xf32>
    %cst_43 = arith.constant 8.99999984E-4 : f32
    %93 = vector.broadcast %cst_43 : f32 to vector<2x16x40xf32>
    %94 = arith.addf %92, %93 : vector<2x16x40xf32>
    %95 = arith.divf %91, %94 : vector<2x16x40xf32>
    %96 = vector.shape_cast %95 : vector<2x16x40xf32> to vector<32x40xf32>
    %cst_44 = arith.constant dense<0.000000e+00> : vector<32x4xf32>
    %97 = tpu.matmul %96, %67, %cst_44 {dimension_numbers = #tpu.dot_dimension_numbers<[1], [0], [0], [1], [0, 0, 1, 1], [], []>} : vector<32x40xf32>, vector<40x4xf32>, vector<32x4xf32> -> vector<32x4xf32>
    %98 = vector.shape_cast %97 : vector<32x4xf32> to vector<2x16x4xf32>
    %99 = vector.extract_strided_slice %98 {offsets = [0, 0, 0], sizes = [2, 10, 4], strides = [1, 1, 1]} : vector<2x16x4xf32> to vector<2x10x4xf32>
    %cst_45 = arith.constant dense<0.000000e+00> : vector<2x4xf32>
    %100 = vector.multi_reduction <add>, %99, %cst_45 [1] : vector<2x10x4xf32> to vector<2x4xf32>
    %101 = vector.shape_cast %100 : vector<2x4xf32> to vector<2x1x4xf32>
    %cst_46 = arith.constant 0.000000e+00 : f32
    %102 = vector.broadcast %cst_46 : f32 to vector<2x1x4xf32>
    %103 = arith.maximumf %101, %102 : vector<2x1x4xf32>
    %cst_47 = arith.constant 0.000000e+00 : f32
    %104 = vector.broadcast %cst_47 : f32 to vector<2x1x4xf32>
    %105 = arith.cmpf ogt, %103, %104 : vector<2x1x4xf32>
    %cst_48 = arith.constant 1.000000e-30 : f32
    %106 = vector.broadcast %cst_48 : f32 to vector<2x1x4xf32>
    %107 = arith.maximumf %103, %106 : vector<2x1x4xf32>
    %108 = math.log %107 : vector<2x1x4xf32>
    %cst_49 = arith.constant 3.000000e-01 : f32
    %109 = vector.broadcast %cst_49 : f32 to vector<2x1x4xf32>
    %110 = arith.mulf %109, %108 : vector<2x1x4xf32>
    %111 = math.exp %110 : vector<2x1x4xf32>
    %cst_50 = arith.constant 0.000000e+00 : f32
    %112 = vector.broadcast %cst_50 : f32 to vector<2x1x4xf32>
    %113 = arith.select %105, %111, %112 : vector<2x1x4xi1>, vector<2x1x4xf32>
    %114 = arith.mulf %58, %113 : vector<2x1x4xf32>
    %c0_51 = arith.constant 0 : index
    %c0_52 = arith.constant 0 : index
    %115 = vector.load %arg12[%c0_51, %c0_52] : memref<64x32xf32, #tpu.memory_space<vmem>>, vector<64x32xf32>
    %c0_53 = arith.constant 0 : index
    %c0_54 = arith.constant 0 : index
    %116 = vector.load %arg13[%c0_53, %c0_54] : memref<32x64xf32, #tpu.memory_space<vmem>>, vector<32x64xf32>
    %117 = vector.shape_cast %64 : vector<4x16x64xf32> to vector<64x64xf32>
    %cst_55 = arith.constant dense<0.000000e+00> : vector<64x32xf32>
    %118 = tpu.matmul %117, %115, %cst_55 {dimension_numbers = #tpu.dot_dimension_numbers<[1], [0], [0], [1], [0, 0, 1, 1], [], []>} : vector<64x64xf32>, vector<64x32xf32>, vector<64x32xf32> -> vector<64x32xf32>
    %cst_56 = arith.constant dense<0.000000e+00> : vector<32x32xf32>
    %119 = tpu.matmul %116, %118, %cst_56 {dimension_numbers = #tpu.dot_dimension_numbers<[1], [0], [0], [1], [0, 0, 1, 1], [], []>} : vector<32x64xf32>, vector<64x32xf32>, vector<32x32xf32> -> vector<32x32xf32>
    %120 = vector.shape_cast %119 : vector<32x32xf32> to vector<4x8x32xf32>
    %c0_57 = arith.constant 0 : index
    %c0_58 = arith.constant 0 : index
    %121 = vector.load %arg14[%c0_57, %c0_58] : memref<32x8xf32, #tpu.memory_space<vmem>>, vector<32x8xf32>
    %c0_59 = arith.constant 0 : index
    %c0_60 = arith.constant 0 : index
    %122 = vector.load %arg15[%c0_59, %c0_60] : memref<80x80xf32, #tpu.memory_space<vmem>>, vector<80x80xf32>
    %c0_61 = arith.constant 0 : index
    %c0_62 = arith.constant 0 : index
    %123 = vector.load %arg16[%c0_61, %c0_62] : memref<8x4xf32, #tpu.memory_space<vmem>>, vector<8x4xf32>
    %124 = arith.mulf %120, %120 : vector<4x8x32xf32>
    %125 = vector.extract_strided_slice %120 {offsets = [0, 0, 0], sizes = [2, 8, 32], strides = [1, 1, 1]} : vector<4x8x32xf32> to vector<2x8x32xf32>
    %126 = vector.extract_strided_slice %120 {offsets = [2, 0, 0], sizes = [2, 8, 32], strides = [1, 1, 1]} : vector<4x8x32xf32> to vector<2x8x32xf32>
    %127 = arith.mulf %125, %126 : vector<2x8x32xf32>
    %128 = tpu.concatenate %120, %124, %127 in 0 : vector<4x8x32xf32>, vector<4x8x32xf32>, vector<2x8x32xf32> -> vector<10x8x32xf32>
    %129 = vector.shape_cast %128 : vector<10x8x32xf32> to vector<80x32xf32>
    %cst_63 = arith.constant dense<0.000000e+00> : vector<80x8xf32>
    %130 = tpu.matmul %129, %121, %cst_63 {dimension_numbers = #tpu.dot_dimension_numbers<[1], [0], [0], [1], [0, 0, 1, 1], [], []>} : vector<80x32xf32>, vector<32x8xf32>, vector<80x8xf32> -> vector<80x8xf32>
    %cst_64 = arith.constant dense<0.000000e+00> : vector<80x8xf32>
    %131 = tpu.matmul %122, %130, %cst_64 {dimension_numbers = #tpu.dot_dimension_numbers<[1], [0], [0], [1], [0, 0, 1, 1], [], []>} : vector<80x80xf32>, vector<80x8xf32>, vector<80x8xf32> -> vector<80x8xf32>
    %132 = vector.shape_cast %131 : vector<80x8xf32> to vector<10x8x8xf32>
    %133 = vector.extract_strided_slice %132 {offsets = [0, 0, 0], sizes = [2, 8, 8], strides = [1, 1, 1]} : vector<10x8x8xf32> to vector<2x8x8xf32>
    %134 = vector.extract_strided_slice %132 {offsets = [2, 0, 0], sizes = [2, 8, 8], strides = [1, 1, 1]} : vector<10x8x8xf32> to vector<2x8x8xf32>
    %135 = vector.extract_strided_slice %132 {offsets = [4, 0, 0], sizes = [2, 8, 8], strides = [1, 1, 1]} : vector<10x8x8xf32> to vector<2x8x8xf32>
    %136 = vector.extract_strided_slice %132 {offsets = [6, 0, 0], sizes = [2, 8, 8], strides = [1, 1, 1]} : vector<10x8x8xf32> to vector<2x8x8xf32>
    %137 = vector.extract_strided_slice %132 {offsets = [8, 0, 0], sizes = [2, 8, 8], strides = [1, 1, 1]} : vector<10x8x8xf32> to vector<2x8x8xf32>
    %138 = arith.mulf %133, %133 : vector<2x8x8xf32>
    %139 = arith.mulf %134, %134 : vector<2x8x8xf32>
    %140 = arith.mulf %133, %134 : vector<2x8x8xf32>
    %141 = arith.subf %135, %138 : vector<2x8x8xf32>
    %142 = arith.subf %136, %139 : vector<2x8x8xf32>
    %143 = arith.subf %137, %140 : vector<2x8x8xf32>
    %cst_65 = arith.constant 2.000000e+00 : f32
    %144 = vector.broadcast %cst_65 : f32 to vector<2x8x8xf32>
    %145 = arith.mulf %144, %143 : vector<2x8x8xf32>
    %cst_66 = arith.constant 8.99999984E-4 : f32
    %146 = vector.broadcast %cst_66 : f32 to vector<2x8x8xf32>
    %147 = arith.addf %145, %146 : vector<2x8x8xf32>
    %148 = arith.addf %141, %142 : vector<2x8x8xf32>
    %cst_67 = arith.constant 8.99999984E-4 : f32
    %149 = vector.broadcast %cst_67 : f32 to vector<2x8x8xf32>
    %150 = arith.addf %148, %149 : vector<2x8x8xf32>
    %151 = arith.divf %147, %150 : vector<2x8x8xf32>
    %cst_68 = arith.constant 2.000000e+00 : f32
    %152 = vector.broadcast %cst_68 : f32 to vector<2x8x8xf32>
    %153 = arith.mulf %152, %140 : vector<2x8x8xf32>
    %cst_69 = arith.constant 9.99999974E-5 : f32
    %154 = vector.broadcast %cst_69 : f32 to vector<2x8x8xf32>
    %155 = arith.addf %153, %154 : vector<2x8x8xf32>
    %156 = arith.addf %138, %139 : vector<2x8x8xf32>
    %cst_70 = arith.constant 9.99999974E-5 : f32
    %157 = vector.broadcast %cst_70 : f32 to vector<2x8x8xf32>
    %158 = arith.addf %156, %157 : vector<2x8x8xf32>
    %159 = arith.divf %155, %158 : vector<2x8x8xf32>
    %160 = arith.mulf %159, %151 : vector<2x8x8xf32>
    %161 = vector.shape_cast %160 : vector<2x8x8xf32> to vector<16x8xf32>
    %cst_71 = arith.constant dense<0.000000e+00> : vector<16x4xf32>
    %162 = tpu.matmul %161, %123, %cst_71 {dimension_numbers = #tpu.dot_dimension_numbers<[1], [0], [0], [1], [0, 0, 1, 1], [], []>} : vector<16x8xf32>, vector<8x4xf32>, vector<16x4xf32> -> vector<16x4xf32>
    %163 = vector.shape_cast %162 : vector<16x4xf32> to vector<2x8x4xf32>
    %164 = vector.extract_strided_slice %163 {offsets = [0, 0, 0], sizes = [2, 2, 4], strides = [1, 1, 1]} : vector<2x8x4xf32> to vector<2x2x4xf32>
    %cst_72 = arith.constant dense<0.000000e+00> : vector<2x4xf32>
    %165 = vector.multi_reduction <add>, %164, %cst_72 [1] : vector<2x2x4xf32> to vector<2x4xf32>
    %166 = vector.shape_cast %165 : vector<2x4xf32> to vector<2x1x4xf32>
    %cst_73 = arith.constant 0.000000e+00 : f32
    %167 = vector.broadcast %cst_73 : f32 to vector<2x1x4xf32>
    %168 = arith.maximumf %166, %167 : vector<2x1x4xf32>
    %cst_74 = arith.constant 0.000000e+00 : f32
    %169 = vector.broadcast %cst_74 : f32 to vector<2x1x4xf32>
    %170 = arith.cmpf ogt, %168, %169 : vector<2x1x4xf32>
    %cst_75 = arith.constant 1.000000e-30 : f32
    %171 = vector.broadcast %cst_75 : f32 to vector<2x1x4xf32>
    %172 = arith.maximumf %168, %171 : vector<2x1x4xf32>
    %173 = math.log %172 : vector<2x1x4xf32>
    %cst_76 = arith.constant 5.000000e-01 : f32
    %174 = vector.broadcast %cst_76 : f32 to vector<2x1x4xf32>
    %175 = arith.mulf %174, %173 : vector<2x1x4xf32>
    %176 = math.exp %175 : vector<2x1x4xf32>
    %cst_77 = arith.constant 0.000000e+00 : f32
    %177 = vector.broadcast %cst_77 : f32 to vector<2x1x4xf32>
    %178 = arith.select %170, %176, %177 : vector<2x1x4xi1>, vector<2x1x4xf32>
    %179 = arith.mulf %114, %178 : vector<2x1x4xf32>
    %c0_78 = arith.constant 0 : index
    %c0_79 = arith.constant 0 : index
    %c0_80 = arith.constant 0 : index
    %180 = vector.load %arg17[%c0_78, %c0_79, %c0_80] : memref<2x1x4xf32, #tpu.memory_space<vmem>>, vector<2x1x4xf32>
    tpu.vector_store %arg17[%c0_78, %c0_79, %c0_80], %179 {strides = array<i32>} : memref<2x1x4xf32, #tpu.memory_space<vmem>>, vector<2x1x4xf32>,
    return
  }
  func.func @transform_0(%arg0: i32) -> (i32, i32, i32) {
    %c0_i32 = arith.constant 0 : i32
    %c0_i32_0 = arith.constant 0 : i32
    %c0_i32_1 = arith.constant 0 : i32
    return %arg0, %c0_i32, %c0_i32_0 : i32, i32, i32
  }
  func.func @transform_1(%arg0: i32) -> (i32, i32, i32) {
    %c0_i32 = arith.constant 0 : i32
    %c0_i32_0 = arith.constant 0 : i32
    %c0_i32_1 = arith.constant 0 : i32
    return %arg0, %c0_i32, %c0_i32_0 : i32, i32, i32
  }
  func.func @transform_2(%arg0: i32) -> (i32, i32, i32) {
    %c0_i32 = arith.constant 0 : i32
    %c0_i32_0 = arith.constant 0 : i32
    %c0_i32_1 = arith.constant 0 : i32
    return %arg0, %c0_i32, %c0_i32_0 : i32, i32, i32
  }
  func.func @transform_3(%arg0: i32) -> (i32, i32) {
    %c0_i32 = arith.constant 0 : i32
    %c0_i32_0 = arith.constant 0 : i32
    %c0_i32_1 = arith.constant 0 : i32
    return %c0_i32, %c0_i32_0 : i32, i32
  }
  func.func @transform_4(%arg0: i32) -> (i32, i32) {
    %c0_i32 = arith.constant 0 : i32
    %c0_i32_0 = arith.constant 0 : i32
    %c0_i32_1 = arith.constant 0 : i32
    return %c0_i32, %c0_i32_0 : i32, i32
  }
  func.func @transform_5(%arg0: i32) -> (i32, i32) {
    %c0_i32 = arith.constant 0 : i32
    %c0_i32_0 = arith.constant 0 : i32
    %c0_i32_1 = arith.constant 0 : i32
    return %c0_i32, %c0_i32_0 : i32, i32
  }
  func.func @transform_6(%arg0: i32) -> (i32, i32) {
    %c0_i32 = arith.constant 0 : i32
    %c0_i32_0 = arith.constant 0 : i32
    %c0_i32_1 = arith.constant 0 : i32
    return %c0_i32, %c0_i32_0 : i32, i32
  }
  func.func @transform_7(%arg0: i32) -> (i32, i32) {
    %c0_i32 = arith.constant 0 : i32
    %c0_i32_0 = arith.constant 0 : i32
    %c0_i32_1 = arith.constant 0 : i32
    return %c0_i32, %c0_i32_0 : i32, i32
  }
  func.func @transform_8(%arg0: i32) -> (i32, i32) {
    %c0_i32 = arith.constant 0 : i32
    %c0_i32_0 = arith.constant 0 : i32
    %c0_i32_1 = arith.constant 0 : i32
    return %c0_i32, %c0_i32_0 : i32, i32
  }
  func.func @transform_9(%arg0: i32) -> (i32, i32) {
    %c0_i32 = arith.constant 0 : i32
    %c0_i32_0 = arith.constant 0 : i32
    %c0_i32_1 = arith.constant 0 : i32
    return %c0_i32, %c0_i32_0 : i32, i32
  }
  func.func @transform_10(%arg0: i32) -> (i32, i32) {
    %c0_i32 = arith.constant 0 : i32
    %c0_i32_0 = arith.constant 0 : i32
    %c0_i32_1 = arith.constant 0 : i32
    return %c0_i32, %c0_i32_0 : i32, i32
  }
  func.func @transform_11(%arg0: i32) -> (i32, i32) {
    %c0_i32 = arith.constant 0 : i32
    %c0_i32_0 = arith.constant 0 : i32
    %c0_i32_1 = arith.constant 0 : i32
    return %c0_i32, %c0_i32_0 : i32, i32
  }
  func.func @transform_12(%arg0: i32) -> (i32, i32) {
    %c0_i32 = arith.constant 0 : i32
    %c0_i32_0 = arith.constant 0 : i32
    %c0_i32_1 = arith.constant 0 : i32
    return %c0_i32, %c0_i32_0 : i32, i32
  }
  func.func @transform_13(%arg0: i32) -> (i32, i32) {
    %c0_i32 = arith.constant 0 : i32
    %c0_i32_0 = arith.constant 0 : i32
    %c0_i32_1 = arith.constant 0 : i32
    return %c0_i32, %c0_i32_0 : i32, i32
  }
  func.func @transform_14(%arg0: i32) -> (i32, i32) {
    %c0_i32 = arith.constant 0 : i32
    %c0_i32_0 = arith.constant 0 : i32
    %c0_i32_1 = arith.constant 0 : i32
    return %c0_i32, %c0_i32_0 : i32, i32
  }
  func.func @transform_15(%arg0: i32) -> (i32, i32) {
    %c0_i32 = arith.constant 0 : i32
    %c0_i32_0 = arith.constant 0 : i32
    %c0_i32_1 = arith.constant 0 : i32
    return %c0_i32, %c0_i32_0 : i32, i32
  }
  func.func @transform_16(%arg0: i32) -> (i32, i32, i32) {
    %c0_i32 = arith.constant 0 : i32
    %c0_i32_0 = arith.constant 0 : i32
    %c0_i32_1 = arith.constant 0 : i32
    return %arg0, %c0_i32, %c0_i32_0 : i32, i32, i32
  }
}

</mosaic_0001>

<bundles_post_ra>
// kernel: ssim_loss_dynamic.1
= control target key start
LH: loop header
LB: loop body
LE: loop exit
PB: predicated region body
PF: predicated region fallthrough
CT: control target
= control target key end

     0   :  { %vm531_vm0 = vcmask 523264   ;;  %vm1278_vm1 = vcmask 850944   ;;  %vm1408_vm2 = vcmask 31744   ;;  %vm1414_vm3 = vcmask 25600   ;;  %s5738_s3 = inlined_call_operand.vmem [shape: f32[128,104], index: 3, kind: input, shape index: {}]   ;;  %s5739_s0 = inlined_call_operand.vmem [shape: f32[2,32,128], index: 0, kind: input, shape index: {}]   ;;  %s5740_s1 = inlined_call_operand.vmem [shape: f32[2,32,128], index: 1, kind: input, shape index: {}]   ;;  %s5741_s2 = inlined_call_operand.vmem [shape: f32[2,32,128], index: 2, kind: input, shape index: {}]   ;;  %s5742_s4 = inlined_call_operand.vmem [shape: f32[320,320], index: 4, kind: input, shape index: {}]   ;;  %s5743_s5 = inlined_call_operand.vmem [shape: f32[104,4], index: 5, kind: input, shape index: {}]   ;;  %s5744_s6 = inlined_call_operand.vmem [shape: f32[128,64], index: 6, kind: input, shape index: {}]   ;;  %s5745_s7 = inlined_call_operand.vmem [shape: f32[64,128], index: 7, kind: input, shape index: {}]   ;;  %s5746_s8 = inlined_call_operand.vmem [shape: f32[64,40], index: 8, kind: input, shape index: {}]   ;;  %s5747_s11 = inlined_call_operand.vmem [shape: f32[64,32], index: 11, kind: input, shape index: {}]   ;;  %s5748_s9 = inlined_call_operand.vmem [shape: f32[160,160], index: 9, kind: input, shape index: {}]   ;;  %s5749_s12 = inlined_call_operand.vmem [shape: f32[32,64], index: 12, kind: input, shape index: {}]   ;;  %s5750_s13 = inlined_call_operand.vmem [shape: f32[32,8], index: 13, kind: input, shape index: {}]   ;;  %s5751_s10 = inlined_call_operand.vmem [shape: f32[40,4], index: 10, kind: input, shape index: {}]   ;;  %s5752_s14 = inlined_call_operand.vmem [shape: f32[80,80], index: 14, kind: input, shape index: {}]   ;;  %s5753_s15 = inlined_call_operand.vmem [shape: f32[8,4], index: 15, kind: input, shape index: {}]   ;;  %s5754_s16 = inlined_call_operand.vmem [shape: f32[2,1,4], index: 16, kind: output, shape index: {}]  }
   0x1   :  { %5768 = sst [smem:[#allocation12_spill]] %s5738_s3  ;;  %v53_v9 = vld [vmem:[%s5739_s0] sm:$0xff]  ;;  %v54_v27 = vld [vmem:[%s5739_s0 + $0x8] sm:$0xff]  ;;  %v55_v29 = vld [vmem:[%s5739_s0 + $0x10] sm:$0xff]  ;;  %vm2018_vm4 = vcmask 261120   ;;  %vm2292_vm5 = vcmask 326656  }
   0x2   :  { %s5769_s23 = sld [smem:[#allocation12_spill]]  ;;  %v61_v10 = vld [vmem:[%s5740_s1] sm:$0xff]  ;;  %v62_v28 = vld [vmem:[%s5740_s1 + $0x8] sm:$0xff]  ;;  %v63_v30 = vld [vmem:[%s5740_s1 + $0x10] sm:$0xff]  ;;  %vm2808_vm6 = vcmask 654336   ;;  %vm2992_vm11 = vcmask 64512  }
   0x3   :  { %v4476_v13 = vsub.f32 %v61_v10, %v53_v9  ;;  %v4515_v31 = vsub.f32 %v62_v28, %v54_v27  ;;  %v4517_v32 = vsub.f32 %v63_v30, %v55_v29  ;;  %v56_v33 = vld [vmem:[%s5739_s0 + $0x18] sm:$0xff]  ;;  %v57_v35 = vld [vmem:[%s5739_s0 + $0x20] sm:$0xff]  ;;  %v58_v39 = vld [vmem:[%s5739_s0 + $0x28] sm:$0xff]  ;;  %vm3108_vm13 = vcmask 24576  }
   0x4   :  { %v64_v34 = vld [vmem:[%s5740_s1 + $0x18] sm:$0xff]  ;;  %v65_v36 = vld [vmem:[%s5740_s1 + $0x20] sm:$0xff]  ;;  %v66_v40 = vld [vmem:[%s5740_s1 + $0x28] sm:$0xff] }
   0x5   :  { %3556 = vmatprep.mubr.f32.mxu0 %v4476_v13  ;;  %v4532_v37 = vsub.f32 %v64_v34, %v56_v33  ;;  %v4535_v38 = vsub.f32 %v65_v36, %v57_v35  ;;  %v59_v41 = vld [vmem:[%s5739_s0 + $0x30] sm:$0xff]  ;;  %v4550_v43 = vsub.f32 %v66_v40, %v58_v39  ;;  %v60_v45 = vld [vmem:[%s5739_s0 + $0x38] sm:$0xff]  ;;  %v77_v47 = vld [vmem:[%s5741_s2] sm:$0xff] }
   0x6   :  { %v67_v42 = vld [vmem:[%s5740_s1 + $0x30] sm:$0xff]  ;;  %v68_v46 = vld [vmem:[%s5740_s1 + $0x38] sm:$0xff]  ;;  %v4568_v49 = vsub.f32 %v77_v47, %v53_v9  ;;  %v78_v50 = vld [vmem:[%s5741_s2 + $0x8] sm:$0xff] }
   0x7   :  { %v4553_v44 = vsub.f32 %v67_v42, %v59_v41  ;;  %v4565_v48 = vsub.f32 %v68_v46, %v60_v45  ;;  %v79_v51 = vld [vmem:[%s5741_s2 + $0x10] sm:$0xff]  ;;  %v4577_v52 = vsub.f32 %v78_v50, %v54_v27  ;;  %v80_v54 = vld [vmem:[%s5741_s2 + $0x18] sm:$0xff]  ;;  %v81_v55 = vld [vmem:[%s5741_s2 + $0x20] sm:$0xff] }
   0x8   :  { %v93_v0 = vld [vmem:[%s5769_s23] sm:$0xff]  ;;  %v94_v1 = vld [vmem:[%s5769_s23 + $0x8] sm:$0xff]  ;;  %v95_v2 = vld [vmem:[%s5769_s23 + $0x10] sm:$0xff]  ;;  %5772 = vst [vmem:[#allocation4_spill] sm:$0xff] %v4568_v49  ;;  %v4580_v53 = vsub.f32 %v79_v51, %v55_v29  ;;  %v4589_v56 = vsub.f32 %v80_v54, %v56_v33  ;;  %v4592_v57 = vsub.f32 %v81_v55, %v57_v35 }
   0x9   :  { %v4005_v3 = vpack.c.bf16 %v94_v1, %v93_v0  ;;  %v96_v4 = vld [vmem:[%s5769_s23 + $0x18] sm:$0xff]  ;;  %v97_v6 = vld [vmem:[%s5769_s23 + $0x20] sm:$0xff]  ;;  %v98_v7 = vld [vmem:[%s5769_s23 + $0x28] sm:$0xff]  ;;  %5770 = vst [vmem:[#allocation2_spill] sm:$0xff] %v4553_v44  ;;  %v242_v0 = vmul.f32 %v4476_v13, %v4476_v13  ;;  %v243_v1 = vmul.f32 %v4515_v31, %v4515_v31  ;;  %v251_v9 = vmul.f32 %v4577_v52, %v4577_v52 }
   0xa   :  { %v4009_v5 = vpack.c.bf16 %v96_v4, %v95_v2  ;;  %v4013_v8 = vpack.c.bf16 %v98_v7, %v97_v6  ;;  %v99_v11 = vld [vmem:[%s5769_s23 + $0x30] sm:$0xff]  ;;  %v100_v12 = vld [vmem:[%s5769_s23 + $0x38] sm:$0xff]  ;;  %v101_v15 = vld [vmem:[%s5769_s23 + $0x40] sm:$0xff]  ;;  %5771 = vst [vmem:[#allocation3_spill] sm:$0xff] %v4565_v48  ;;  %v244_v2 = vmul.f32 %v4517_v32, %v4517_v32  ;;  %v246_v4 = vmul.f32 %v4535_v38, %v4535_v38 }
   0xb   :  { %4006 = vmatprep.subr.bf16.mxu0 %v4005_v3  ;;  %v4017_v14 = vpack.c.bf16 %v100_v12, %v99_v11  ;;  %v102_v16 = vld [vmem:[%s5769_s23 + $0x48] sm:$0xff]  ;;  %v103_v18 = vld [vmem:[%s5769_s23 + $0x50] sm:$0xff]  ;;  %v104_v19 = vld [vmem:[%s5769_s23 + $0x58] sm:$0xff]  ;;  %5773 = vst [vmem:[#allocation5_spill] sm:$0xff] %v4577_v52  ;;  %v248_v6 = vmul.f32 %v4553_v44, %v4553_v44  ;;  %v249_v7 = vmul.f32 %v4565_v48, %v4565_v48 }
   0xc   :  { %4008 = vmatpush3.bf16.msra.mxu0 %v4005_v3  ;;  %v4021_v17 = vpack.c.bf16 %v102_v16, %v101_v15  ;;  %v4025_v20 = vpack.c.bf16 %v104_v19, %v103_v18  ;;  %v105_v21 = vld [vmem:[%s5769_s23 + $0x60] sm:$0xff]  ;;  %v106_v22 = vld [vmem:[%s5769_s23 + $0x68] sm:$0xff]  ;;  %v107_v24 = vld [vmem:[%s5769_s23 + $0x70] sm:$0xff]  ;;  %5774 = vst [vmem:[#allocation6_spill] sm:$0xff] %v4580_v53  ;;  %v245_v3 = vmul.f32 %v4532_v37, %v4532_v37 }
   0xd   :  { %4010 = vmatprep.subr.bf16.mxu0 %v4009_v5  ;;  %v4029_v23 = vpack.c.bf16 %v106_v22, %v105_v21  ;;  %v108_v25 = vld [vmem:[%s5769_s23 + $0x78] sm:$0xff]  ;;  %5775 = vst [vmem:[#allocation7_spill] sm:$0xff] %v4589_v56  ;;  %5776 = vst [vmem:[#allocation8_spill] sm:$0xff] %v4592_v57  ;;  %v82_v58 = vld [vmem:[%s5741_s2 + $0x28] sm:$0xff]  ;;  %v252_v10 = vmul.f32 %v4580_v53, %v4580_v53  ;;  %v253_v11 = vmul.f32 %v4589_v56, %v4589_v56 }
   0xe   :  { %v4033_v26 = vpack.c.bf16 %v108_v25, %v107_v24  ;;  %v83_v59 = vld [vmem:[%s5741_s2 + $0x30] sm:$0xff]  ;;  %v4601_v60 = vsub.f32 %v82_v58, %v58_v39  ;;  %v84_v62 = vld [vmem:[%s5741_s2 + $0x38] sm:$0xff]  ;;  %v254_v12 = vmul.f32 %v4592_v57, %v4592_v57  ;;  %v259_v18 = vmul.f32 %v4577_v52, %v4515_v31 }
   0xf   :  { %v4604_v61 = vsub.f32 %v83_v59, %v59_v41  ;;  %v4610_v63 = vsub.f32 %v84_v62, %v60_v45  ;;  %v260_v19 = vmul.f32 %v4580_v53, %v4517_v32  ;;  %v262_v21 = vmul.f32 %v4592_v57, %v4535_v38  ;;  %v111_v27 = vld [vmem:[%s5742_s4 + $0x10] sm:$0xff] }
  0x10   :  { %4012 = vmatpush3.bf16.msra.mxu0 %v4009_v5  ;;  %5777 = vst [vmem:[#allocation9_spill] sm:$0xff] %v4601_v60  ;;  %v247_v5 = vmul.f32 %v4550_v43, %v4550_v43  ;;  %v263_v22 = vmul.f32 %v4601_v60, %v4550_v43  ;;  %v5756_v25 = vmov 0.0|0.0  }
  0x11   :  { %4014 = vmatprep.subr.bf16.mxu0 %v4013_v8  ;;  %5778 = vst [vmem:[#allocation10_spill] sm:$0xff] %v4604_v61  ;;  %5779 = vst [vmem:[#allocation11_spill] sm:$0xff] %v4610_v63  ;;  %v256_v15 = vmul.f32 %v4604_v61, %v4604_v61  ;;  %v257_v16 = vmul.f32 %v4610_v63, %v4610_v63  ;;  %v265_v24 = vmul.f32 %v4610_v63, %v4565_v48 }
  0x12   :  { %4037 = vmatprep.subr.bf16.mxu1 %v5756_v25 }
  0x14   :  { %4016 = vmatpush3.bf16.msra.mxu0 %v4013_v8  ;;  %v250_v8 = vmul.f32 %v4568_v49, %v4568_v49 }
  0x15   :  { %4018 = vmatprep.subr.bf16.mxu0 %v4017_v14 }
  0x18   :  { %4020 = vmatpush3.bf16.msra.mxu0 %v4017_v14  ;;  %v255_v14 = vmul.f32 %v4601_v60, %v4601_v60 }
  0x19   :  { %4022 = vmatprep.subr.bf16.mxu0 %v4021_v17 }
  0x1c   :  { %4024 = vmatpush3.bf16.msra.mxu0 %v4021_v17  ;;  %v258_v17 = vmul.f32 %v4568_v49, %v4476_v13 }
  0x1d   :  { %4026 = vmatprep.subr.bf16.mxu0 %v4025_v20 }
  0x20   :  { %4028 = vmatpush3.bf16.msra.mxu0 %v4025_v20  ;;  %v261_v20 = vmul.f32 %v4589_v56, %v4532_v37 }
  0x21   :  { %4030 = vmatprep.subr.bf16.mxu0 %v4029_v23 }
  0x24   :  { %4032 = vmatpush3.bf16.msra.mxu0 %v4029_v23  ;;  %v264_v23 = vmul.f32 %v4604_v61, %v4553_v44 }
  0x25   :  { %4034 = vmatprep.subr.bf16.mxu0 %v4033_v26 }
  0x28   :  { %4036 = vmatpush3.bf16.msra.mxu0 %v4033_v26  ;;  %v110_v26 = vld [vmem:[%s5742_s4 + $0x8] sm:$0xff] }
  0x29   :  { %716 = vmatprep.mubr.f32.mxu1 %v110_v26 }
  0x2b   :  { %3557 = vmatmul.mubr.f32.vlgmr.msra.gmra.mrb[0].mxu0 %v4515_v31 }
  0x2c   :  { %3559 = vmatprep.mubr.f32.mxu0 %v4517_v32 }
  0x2f   :  { %3560 = vmatmul.mubr.f32.gmra.mrb[2].mxu0 %v4532_v37 }
  0x30   :  { %3562 = vmatprep.mubr.f32.mxu0 %v4535_v38 }
  0x33   :  { %3563 = vmatmul.mubr.f32.gmra.mrb[4].mxu0 %v4550_v43 }
  0x34   :  { %3565 = vmatprep.mubr.f32.mxu0 %v4553_v44 }
  0x37   :  { %3566 = vmatmul.mubr.f32.gmra.mrb[6].mxu0 %v4565_v48 }
  0x38   :  { %3568 = vmatprep.mubr.f32.mxu0 %v4568_v49 }
  0x3b   :  { %3569 = vmatmul.mubr.f32.gmra.mrb[8].mxu0 %v4577_v52 }
  0x3c   :  { %3571 = vmatprep.mubr.f32.mxu0 %v4580_v53 }
  0x3f   :  { %3572 = vmatmul.mubr.f32.gmra.mrb[10].mxu0 %v4589_v56 }
  0x40   :  { %3574 = vmatprep.mubr.f32.mxu0 %v4592_v57 }
  0x43   :  { %3575 = vmatmul.mubr.f32.gmra.mrb[12].mxu0 %v4601_v60 }
  0x44   :  { %3577 = vmatprep.mubr.f32.mxu0 %v4604_v61 }
  0x47   :  { %3578 = vmatmul.mubr.f32.gmra.mrb[14].mxu0 %v4610_v63 }
  0x48   :  { %3580 = vmatprep.mubr.f32.mxu0 %v242_v0 }
  0x4b   :  { %3581 = vmatmul.mubr.f32.gmra.mrb[16].mxu0 %v243_v1 }
  0x4c   :  { %3583 = vmatprep.mubr.f32.mxu0 %v244_v2 }
  0x4f   :  { %3584 = vmatmul.mubr.f32.gmra.mrb[18].mxu0 %v245_v3 }
  0x50   :  { %3586 = vmatprep.mubr.f32.mxu0 %v246_v4 }
  0x53   :  { %3587 = vmatmul.mubr.f32.gmra.mrb[20].mxu0 %v247_v5 }
  0x54   :  { %3589 = vmatprep.mubr.f32.mxu0 %v248_v6 }
  0x57   :  { %3590 = vmatmul.mubr.f32.gmra.mrb[22].mxu0 %v249_v7 }
  0x58   :  { %3592 = vmatprep.mubr.f32.mxu0 %v250_v8 }
  0x5b   :  { %3593 = vmatmul.mubr.f32.gmra.mrb[24].mxu0 %v251_v9 }
  0x5c   :  { %3595 = vmatprep.mubr.f32.mxu0 %v252_v10 }
  0x5f   :  { %3596 = vmatmul.mubr.f32.gmra.mrb[26].mxu0 %v253_v11 }
  0x60   :  { %3598 = vmatprep.mubr.f32.mxu0 %v254_v12 }
  0x63   :  { %3599 = vmatmul.mubr.f32.gmra.mrb[28].mxu0 %v255_v14 }
  0x64   :  { %3601 = vmatprep.mubr.f32.mxu0 %v256_v15 }
  0x67   :  { %3602 = vmatmul.mubr.f32.gmra.mrb[30].mxu0 %v257_v16 }
  0x68   :  { %3604 = vmatprep.mubr.f32.mxu0 %v258_v17 }
  0x6b   :  { %3605 = vmatmul.mubr.f32.gmra.mrb[32].mxu0 %v259_v18 }
  0x6c   :  { %3607 = vmatprep.mubr.f32.mxu0 %v260_v19 }
  0x6f   :  { %3608 = vmatmul.mubr.f32.gmra.mrb[34].mxu0 %v261_v20 }
  0x70   :  { %3610 = vmatprep.mubr.f32.mxu0 %v262_v21 }
  0x73   :  { %3611 = vmatmul.mubr.f32.gmra.mrb[36].mxu0 %v263_v22 }
  0x74   :  { %3613 = vmatprep.mubr.f32.mxu0 %v264_v23 }
  0x77   :  { %3614 = vmatmul.mubr.f32.gmra.mrb[38].mxu0 %v265_v24 }
  0x78   :  { %3632 = vmatprep.mubr.msk.f32.mxu0 %vm531_vm0, %v111_v27 }
  0xfe   :  { %v3558_v28 = vpop.f32.mrb[0].mxu0 }
  0xff   :  { %v332_v29 = vpop.f32.mrb[1].mxu0 }
 0x100   :  { %v4038_v30 = vpack.c.bf16 %v3558_v28, %v332_v29 }
 0x102   :  { %v3561_v33 = vpop.f32.mrb[2].mxu0  ;;  %4039 = vmatpush1.bf16.msra.mxu1 %v4038_v30  ;;  %v109_v30 = vld [vmem:[%s5742_s4] sm:$0xff] }
 0x103   :  { %v342_v34 = vpop.f32.mrb[3].mxu0  ;;  %4040 = vmatprep.subr.bf16.mxu1 %v5756_v25 }
 0x104   :  { %v4041_v35 = vpack.c.bf16 %v3561_v33, %v342_v34  ;;  %v113_v34 = vld [vmem:[%s5742_s4 + $0x20] sm:$0xff] }
 0x106   :  { %v3564_v36 = vpop.f32.mrb[4].mxu0  ;;  %4042 = vmatpush1.bf16.msra.mxu1 %v4041_v35 }
 0x107   :  { %v352_v39 = vpop.f32.mrb[5].mxu0  ;;  %4043 = vmatprep.subr.bf16.mxu1 %v5756_v25 }
 0x108   :  { %v4044_v40 = vpack.c.bf16 %v3564_v36, %v352_v39  ;;  %v112_v39 = vld [vmem:[%s5742_s4 + $0x18] sm:$0xff] }
 0x10a   :  { %v3567_v41 = vpop.f32.mrb[6].mxu0  ;;  %4045 = vmatpush1.bf16.msra.mxu1 %v4044_v40 }
 0x10b   :  { %v362_v42 = vpop.f32.mrb[7].mxu0  ;;  %4046 = vmatprep.subr.bf16.mxu1 %v5756_v25 }
 0x10c   :  { %v4047_v45 = vpack.c.bf16 %v3567_v41, %v362_v42  ;;  %v116_v41 = vld [vmem:[%s5742_s4 + $0x38] sm:$0xff] }
 0x10e   :  { %v3570_v46 = vpop.f32.mrb[8].mxu0  ;;  %4048 = vmatpush1.bf16.msra.mxu1 %v4047_v45 }
 0x10f   :  { %v372_v47 = vpop.f32.mrb[9].mxu0  ;;  %4049 = vmatprep.subr.bf16.mxu1 %v5756_v25 }
 0x110   :  { %v4050_v50 = vpack.c.bf16 %v3570_v46, %v372_v47  ;;  %v115_v46 = vld [vmem:[%s5742_s4 + $0x30] sm:$0xff] }
 0x112   :  { %v3573_v51 = vpop.f32.mrb[10].mxu0  ;;  %4051 = vmatpush1.bf16.msra.mxu1 %v4050_v50  ;;  %v119_v50 = vld [vmem:[%s5742_s4 + $0x50] sm:$0xff] }
 0x113   :  { %v382_v54 = vpop.f32.mrb[11].mxu0  ;;  %4052 = vmatprep.subr.bf16.mxu1 %v5756_v25 }
 0x114   :  { %v4053_v55 = vpack.c.bf16 %v3573_v51, %v382_v54 }
 0x116   :  { %v3576_v58 = vpop.f32.mrb[12].mxu0  ;;  %4054 = vmatpush1.bf16.msra.mxu1 %v4053_v55  ;;  %v118_v55 = vld [vmem:[%s5742_s4 + $0x48] sm:$0xff] }
 0x117   :  { %v392_v59 = vpop.f32.mrb[13].mxu0  ;;  %4055 = vmatprep.subr.bf16.mxu1 %v5756_v25 }
 0x118   :  { %v4056_v62 = vpack.c.bf16 %v3576_v58, %v392_v59  ;;  %v122_v59 = vld [vmem:[%s5742_s4 + $0x68] sm:$0xff] }
 0x11a   :  { %v3579_v0 = vpop.f32.mrb[14].mxu0  ;;  %4057 = vmatpush1.bf16.msra.mxu1 %v4056_v62 }
 0x11b   :  { %v402_v1 = vpop.f32.mrb[15].mxu0  ;;  %4058 = vmatprep.subr.bf16.mxu1 %v5756_v25 }
 0x11c   :  { %v4059_v2 = vpack.c.bf16 %v3579_v0, %v402_v1  ;;  %v121_v0 = vld [vmem:[%s5742_s4 + $0x60] sm:$0xff]  ;;  %v114_v1 = vld [vmem:[%s5742_s4 + $0x28] sm:$0xff] }
 0x11e   :  { %v3582_v3 = vpop.f32.mrb[16].mxu0  ;;  %4060 = vmatpush1.bf16.msra.mxu1 %v4059_v2  ;;  %v125_v2 = vld [vmem:[%s5742_s4 + $0x80] sm:$0xff] }
 0x11f   :  { %v412_v4 = vpop.f32.mrb[17].mxu0  ;;  %4061 = vmatprep.subr.bf16.mxu1 %v5756_v25 }
 0x120   :  { %v4062_v5 = vpack.c.bf16 %v3582_v3, %v412_v4  ;;  %v117_v3 = vld [vmem:[%s5742_s4 + $0x40] sm:$0xff]  ;;  %v124_v4 = vld [vmem:[%s5742_s4 + $0x78] sm:$0xff] }
 0x122   :  { %v3585_v6 = vpop.f32.mrb[18].mxu0  ;;  %4063 = vmatpush1.bf16.msra.mxu1 %v4062_v5  ;;  %v120_v5 = vld [vmem:[%s5742_s4 + $0x58] sm:$0xff] }
 0x123   :  { %v422_v7 = vpop.f32.mrb[19].mxu0  ;;  %4064 = vmatprep.subr.bf16.mxu1 %v5756_v25 }
 0x124   :  { %v4065_v8 = vpack.c.bf16 %v3585_v6, %v422_v7  ;;  %v128_v6 = vld [vmem:[%s5742_s4 + $0x98] sm:$0xff]  ;;  %v123_v7 = vld [vmem:[%s5742_s4 + $0x70] sm:$0xff] }
 0x126   :  { %v3588_v9 = vpop.f32.mrb[20].mxu0  ;;  %4066 = vmatpush1.bf16.msra.mxu1 %v4065_v8  ;;  %v127_v8 = vld [vmem:[%s5742_s4 + $0x90] sm:$0xff] }
 0x127   :  { %v432_v10 = vpop.f32.mrb[21].mxu0  ;;  %4067 = vmatprep.subr.bf16.mxu1 %v5756_v25 }
 0x128   :  { %v4068_v11 = vpack.c.bf16 %v3588_v9, %v432_v10  ;;  %v126_v9 = vld [vmem:[%s5742_s4 + $0x88] sm:$0xff]  ;;  %v131_v10 = vld [vmem:[%s5742_s4 + $0xb0] sm:$0xff] }
 0x12a   :  { %v3591_v12 = vpop.f32.mrb[22].mxu0  ;;  %4069 = vmatpush1.bf16.msra.mxu1 %v4068_v11  ;;  %v129_v11 = vld [vmem:[%s5742_s4 + $0xa0] sm:$0xff] }
 0x12b   :  { %v442_v14 = vpop.f32.mrb[23].mxu0  ;;  %4070 = vmatprep.subr.bf16.mxu1 %v5756_v25 }
 0x12c   :  { %v4071_v15 = vpack.c.bf16 %v3591_v12, %v442_v14  ;;  %v130_v12 = vld [vmem:[%s5742_s4 + $0xa8] sm:$0xff]  ;;  %v132_v14 = vld [vmem:[%s5742_s4 + $0xb8] sm:$0xff] }
 0x12e   :  { %v3594_v16 = vpop.f32.mrb[24].mxu0  ;;  %4072 = vmatpush1.bf16.msra.mxu1 %v4071_v15  ;;  %v134_v15 = vld [vmem:[%s5742_s4 + $0xc8] sm:$0xff] }
 0x12f   :  { %v452_v17 = vpop.f32.mrb[25].mxu0  ;;  %4073 = vmatprep.subr.bf16.mxu1 %v5756_v25 }
 0x130   :  { %v4074_v18 = vpack.c.bf16 %v3594_v16, %v452_v17  ;;  %v135_v16 = vld [vmem:[%s5742_s4 + $0xd0] sm:$0xff]  ;;  %v133_v17 = vld [vmem:[%s5742_s4 + $0xc0] sm:$0xff] }
 0x132   :  { %v3597_v19 = vpop.f32.mrb[26].mxu0  ;;  %4075 = vmatpush1.bf16.msra.mxu1 %v4074_v18  ;;  %v138_v18 = vld [vmem:[%s5742_s4 + $0xe8] sm:$0xff] }
 0x133   :  { %v462_v20 = vpop.f32.mrb[27].mxu0  ;;  %4076 = vmatprep.subr.bf16.mxu1 %v5756_v25 }
 0x134   :  { %v4077_v21 = vpack.c.bf16 %v3597_v19, %v462_v20  ;;  %v137_v19 = vld [vmem:[%s5742_s4 + $0xe0] sm:$0xff] }
 0x135   :  { %v141_v20 = vld [vmem:[%s5742_s4 + $0x100] sm:$0xff] }
 0x136   :  { %v3600_v22 = vpop.f32.mrb[28].mxu0  ;;  %4078 = vmatpush1.bf16.msra.mxu1 %v4077_v21  ;;  %v136_v21 = vld [vmem:[%s5742_s4 + $0xd8] sm:$0xff] }
 0x137   :  { %v472_v23 = vpop.f32.mrb[29].mxu0  ;;  %4079 = vmatprep.subr.bf16.mxu1 %v5756_v25 }
 0x138   :  { %v4080_v24 = vpack.c.bf16 %v3600_v22, %v472_v23  ;;  %v140_v22 = vld [vmem:[%s5742_s4 + $0xf8] sm:$0xff] }
 0x139   :  { %v144_v23 = vld [vmem:[%s5742_s4 + $0x118] sm:$0xff] }
 0x13a   :  { %v3603_v26 = vpop.f32.mrb[30].mxu0  ;;  %4081 = vmatpush1.bf16.msra.mxu1 %v4080_v24  ;;  %v147_v24 = vld [vmem:[%s5742_s4 + $0x130] sm:$0xff] }
 0x13b   :  { %v482_v27 = vpop.f32.mrb[31].mxu0  ;;  %4082 = vmatprep.subr.bf16.mxu1 %v5756_v25 }
 0x13c   :  { %v4083_v28 = vpack.c.bf16 %v3603_v26, %v482_v27  ;;  %v139_v26 = vld [vmem:[%s5742_s4 + $0xf0] sm:$0xff] }
 0x13d   :  { %v143_v27 = vld [vmem:[%s5742_s4 + $0x110] sm:$0xff] }
 0x13e   :  { %v3606_v29 = vpop.f32.mrb[32].mxu0  ;;  %4084 = vmatpush1.bf16.msra.mxu1 %v4083_v28  ;;  %v150_v28 = vld [vmem:[%s5742_s4 + $0x148] sm:$0xff] }
 0x13f   :  { %v492_v33 = vpop.f32.mrb[33].mxu0 }
 0x140   :  { %v4085_v35 = vpack.c.bf16 %v3606_v29, %v492_v33  ;;  %v153_v29 = vld [vmem:[%s5742_s4 + $0x160] sm:$0xff]  ;;  %v146_v33 = vld [vmem:[%s5742_s4 + $0x128] sm:$0xff] }
 0x141   :  { %717 = vmatmul.mubr.f32.vlgmr.msra.gmra.mrb[0].mxu1 %v109_v30  ;;  %v142_v30 = vld [vmem:[%s5742_s4 + $0x108] sm:$0xff] }
 0x142   :  { %v3609_v36 = vpop.f32.mrb[34].mxu0  ;;  %4086 = vmatprep.subr.bf16.mxu0 %v4085_v35  ;;  %721 = vmatprep.mubr.f32.mxu1 %v113_v34  ;;  %v156_v34 = vld [vmem:[%s5742_s4 + $0x178] sm:$0xff] }
 0x143   :  { %v502_v40 = vpop.f32.mrb[35].mxu0  ;;  %4088 = vmatpush3.bf16.msra.mxu0 %v4085_v35  ;;  %v159_v35 = vld [vmem:[%s5742_s4 + $0x190] sm:$0xff] }
 0x144   :  { %v4089_v42 = vpack.c.bf16 %v3609_v36, %v502_v40  ;;  %v145_v36 = vld [vmem:[%s5742_s4 + $0x120] sm:$0xff]  ;;  %v162_v40 = vld [vmem:[%s5742_s4 + $0x1a8] sm:$0xff] }
 0x145   :  { %722 = vmatmul.mubr.f32.gmra.mrb[2].mxu1 %v112_v39  ;;  %v149_v39 = vld [vmem:[%s5742_s4 + $0x140] sm:$0xff] }
 0x146   :  { %v3612_v45 = vpop.f32.mrb[36].mxu0  ;;  %4090 = vmatprep.subr.bf16.mxu0 %v4089_v42  ;;  %726 = vmatprep.mubr.f32.mxu1 %v116_v41  ;;  %v165_v41 = vld [vmem:[%s5742_s4 + $0x1c0] sm:$0xff] }
 0x147   :  { %v512_v47 = vpop.f32.mrb[37].mxu0  ;;  %4092 = vmatpush3.bf16.msra.mxu0 %v4089_v42  ;;  %v148_v42 = vld [vmem:[%s5742_s4 + $0x138] sm:$0xff] }
 0x148   :  { %v4093_v51 = vpack.c.bf16 %v3612_v45, %v512_v47  ;;  %v152_v45 = vld [vmem:[%s5742_s4 + $0x158] sm:$0xff]  ;;  %v171_v47 = vld [vmem:[%s5742_s4 + $0x1f0] sm:$0xff] }
 0x149   :  { %727 = vmatmul.mubr.f32.gmra.mrb[4].mxu1 %v115_v46  ;;  %v168_v46 = vld [vmem:[%s5742_s4 + $0x1d8] sm:$0xff] }
 0x14a   :  { %v3615_v54 = vpop.f32.mrb[38].mxu0  ;;  %4094 = vmatprep.subr.bf16.mxu0 %v4093_v51  ;;  %731 = vmatprep.mubr.f32.mxu1 %v119_v50  ;;  %v151_v50 = vld [vmem:[%s5742_s4 + $0x150] sm:$0xff] }
 0x14b   :  { %v522_v58 = vpop.f32.mrb[39].mxu0  ;;  %4096 = vmatpush3.bf16.msra.mxu0 %v4093_v51  ;;  %v155_v51 = vld [vmem:[%s5742_s4 + $0x170] sm:$0xff] }
 0x14c   :  { %v4097_v62 = vpack.c.bf16 %v3615_v54, %v522_v58  ;;  %v174_v54 = vld [vmem:[%s5742_s4 + $0x208] sm:$0xff] }
 0x14d   :  { %732 = vmatmul.mubr.f32.gmra.mrb[6].mxu1 %v118_v55  ;;  %v177_v55 = vld [vmem:[%s5742_s4 + $0x220] sm:$0xff]  ;;  %v154_v58 = vld [vmem:[%s5742_s4 + $0x168] sm:$0xff] }
 0x14e   :  { %4098 = vmatprep.subr.bf16.mxu0 %v4097_v62  ;;  %736 = vmatprep.mubr.f32.mxu1 %v122_v59  ;;  %v158_v59 = vld [vmem:[%s5742_s4 + $0x188] sm:$0xff] }
 0x14f   :  { %4100 = vmatpush3.bf16.msra.mxu0 %v4097_v62  ;;  %v180_v62 = vld [vmem:[%s5742_s4 + $0x238] sm:$0xff] }
 0x151   :  { %737 = vmatmul.mubr.f32.gmra.mrb[8].mxu1 %v121_v0  ;;  %v183_v0 = vld [vmem:[%s5742_s4 + $0x250] sm:$0xff] }
 0x152   :  { %3633 = vmatmul.mubr.msk.f32.vlgmr.msra.gmra.mrb[40].mxu0 %vm531_vm0, %v114_v1  ;;  %741 = vmatprep.mubr.f32.mxu1 %v125_v2  ;;  %v157_v1 = vld [vmem:[%s5742_s4 + $0x180] sm:$0xff] }
 0x153   :  { %3635 = vmatprep.mubr.msk.f32.mxu0 %vm531_vm0, %v117_v3  ;;  %v161_v2 = vld [vmem:[%s5742_s4 + $0x1a0] sm:$0xff]  ;;  %v186_v3 = vld [vmem:[%s5742_s4 + $0x268] sm:$0xff] }
 0x155   :  { %742 = vmatmul.mubr.f32.gmra.mrb[10].mxu1 %v124_v4  ;;  %v189_v4 = vld [vmem:[%s5742_s4 + $0x280] sm:$0xff] }
 0x156   :  { %3636 = vmatmul.mubr.msk.f32.gmra.mrb[42].mxu0 %vm531_vm0, %v120_v5  ;;  %746 = vmatprep.mubr.f32.mxu1 %v128_v6  ;;  %v160_v5 = vld [vmem:[%s5742_s4 + $0x198] sm:$0xff] }
 0x157   :  { %3638 = vmatprep.mubr.msk.f32.mxu0 %vm531_vm0, %v123_v7  ;;  %v164_v6 = vld [vmem:[%s5742_s4 + $0x1b8] sm:$0xff] }
 0x158   :  { %v192_v7 = vld [vmem:[%s5742_s4 + $0x298] sm:$0xff] }
 0x159   :  { %747 = vmatmul.mubr.f32.gmra.mrb[12].mxu1 %v127_v8  ;;  %v195_v8 = vld [vmem:[%s5742_s4 + $0x2b0] sm:$0xff] }
 0x15a   :  { %3639 = vmatmul.mubr.msk.f32.gmra.mrb[44].mxu0 %vm531_vm0, %v126_v9  ;;  %751 = vmatprep.mubr.f32.mxu1 %v131_v10  ;;  %v163_v9 = vld [vmem:[%s5742_s4 + $0x1b0] sm:$0xff] }
 0x15b   :  { %3641 = vmatprep.mubr.msk.f32.mxu0 %vm531_vm0, %v129_v11  ;;  %v167_v10 = vld [vmem:[%s5742_s4 + $0x1d0] sm:$0xff]  ;;  %v198_v11 = vld [vmem:[%s5742_s4 + $0x2c8] sm:$0xff] }
 0x15d   :  { %752 = vmatmul.mubr.f32.gmra.mrb[14].mxu1 %v130_v12  ;;  %v201_v12 = vld [vmem:[%s5742_s4 + $0x2e0] sm:$0xff] }
 0x15e   :  { %3642 = vmatmul.mubr.msk.f32.gmra.mrb[46].mxu0 %vm531_vm0, %v132_v14  ;;  %756 = vmatprep.mubr.f32.mxu1 %v134_v15  ;;  %v166_v14 = vld [vmem:[%s5742_s4 + $0x1c8] sm:$0xff] }
 0x15f   :  { %3644 = vmatprep.mubr.msk.f32.mxu0 %vm531_vm0, %v135_v16  ;;  %v170_v15 = vld [vmem:[%s5742_s4 + $0x1e8] sm:$0xff]  ;;  %v204_v16 = vld [vmem:[%s5742_s4 + $0x2f8] sm:$0xff] }
 0x161   :  { %757 = vmatmul.mubr.f32.gmra.mrb[16].mxu1 %v133_v17  ;;  %v207_v17 = vld [vmem:[%s5742_s4 + $0x310] sm:$0xff] }
 0x162   :  { %3645 = vmatmul.mubr.msk.f32.gmra.mrb[48].mxu0 %vm531_vm0, %v138_v18  ;;  %761 = vmatprep.mubr.f32.mxu1 %v137_v19  ;;  %v169_v18 = vld [vmem:[%s5742_s4 + $0x1e0] sm:$0xff] }
 0x163   :  { %3647 = vmatprep.mubr.msk.f32.mxu0 %vm531_vm0, %v141_v20  ;;  %v173_v19 = vld [vmem:[%s5742_s4 + $0x200] sm:$0xff]  ;;  %v210_v20 = vld [vmem:[%s5742_s4 + $0x328] sm:$0xff] }
 0x165   :  { %762 = vmatmul.mubr.f32.gmra.mrb[18].mxu1 %v136_v21  ;;  %v213_v21 = vld [vmem:[%s5742_s4 + $0x340] sm:$0xff] }
 0x166   :  { %766 = vmatprep.mubr.f32.mxu1 %v140_v22  ;;  %3648 = vmatmul.mubr.msk.f32.gmra.mrb[50].mxu0 %vm531_vm0, %v144_v23  ;;  %v172_v22 = vld [vmem:[%s5742_s4 + $0x1f8] sm:$0xff] }
 0x167   :  { %3650 = vmatprep.mubr.msk.f32.mxu0 %vm531_vm0, %v147_v24  ;;  %v176_v23 = vld [vmem:[%s5742_s4 + $0x218] sm:$0xff] }
 0x168   :  { %v216_v24 = vld [vmem:[%s5742_s4 + $0x358] sm:$0xff] }
 0x169   :  { %767 = vmatmul.mubr.f32.gmra.mrb[20].mxu1 %v139_v26  ;;  %v219_v26 = vld [vmem:[%s5742_s4 + $0x370] sm:$0xff] }
 0x16a   :  { %771 = vmatprep.mubr.f32.mxu1 %v143_v27  ;;  %3651 = vmatmul.mubr.msk.f32.gmra.mrb[52].mxu0 %vm531_vm0, %v150_v28  ;;  %v175_v27 = vld [vmem:[%s5742_s4 + $0x210] sm:$0xff] }
 0x16b   :  { %3653 = vmatprep.mubr.msk.f32.mxu0 %vm531_vm0, %v153_v29  ;;  %v179_v28 = vld [vmem:[%s5742_s4 + $0x230] sm:$0xff]  ;;  %v222_v29 = vld [vmem:[%s5742_s4 + $0x388] sm:$0xff] }
 0x16d   :  { %772 = vmatmul.mubr.f32.gmra.mrb[22].mxu1 %v142_v30  ;;  %v225_v30 = vld [vmem:[%s5742_s4 + $0x3a0] sm:$0xff] }
 0x16e   :  { %776 = vmatprep.mubr.f32.mxu1 %v146_v33  ;;  %3654 = vmatmul.mubr.msk.f32.gmra.mrb[54].mxu0 %vm531_vm0, %v156_v34  ;;  %v178_v33 = vld [vmem:[%s5742_s4 + $0x228] sm:$0xff] }
 0x16f   :  { %3656 = vmatprep.mubr.msk.f32.mxu0 %vm531_vm0, %v159_v35  ;;  %v182_v34 = vld [vmem:[%s5742_s4 + $0x248] sm:$0xff]  ;;  %v228_v35 = vld [vmem:[%s5742_s4 + $0x3b8] sm:$0xff] }
 0x171   :  { %777 = vmatmul.mubr.f32.gmra.mrb[24].mxu1 %v145_v36  ;;  %v181_v36 = vld [vmem:[%s5742_s4 + $0x240] sm:$0xff] }
 0x172   :  { %781 = vmatprep.mubr.f32.mxu1 %v149_v39  ;;  %3657 = vmatmul.mubr.msk.f32.gmra.mrb[56].mxu0 %vm531_vm0, %v162_v40  ;;  %v185_v39 = vld [vmem:[%s5742_s4 + $0x260] sm:$0xff]  ;;  %v184_v40 = vld [vmem:[%s5742_s4 + $0x258] sm:$0xff] }
 0x173   :  { %3659 = vmatprep.mubr.msk.f32.mxu0 %vm531_vm0, %v165_v41  ;;  %v188_v41 = vld [vmem:[%s5742_s4 + $0x278] sm:$0xff] }
 0x175   :  { %782 = vmatmul.mubr.f32.gmra.mrb[26].mxu1 %v148_v42  ;;  %v187_v42 = vld [vmem:[%s5742_s4 + $0x270] sm:$0xff] }
 0x176   :  { %786 = vmatprep.mubr.f32.mxu1 %v152_v45  ;;  %3660 = vmatmul.mubr.msk.f32.gmra.mrb[58].mxu0 %vm531_vm0, %v168_v46  ;;  %v191_v45 = vld [vmem:[%s5742_s4 + $0x290] sm:$0xff]  ;;  %v190_v46 = vld [vmem:[%s5742_s4 + $0x288] sm:$0xff] }
 0x177   :  { %3662 = vmatprep.mubr.msk.f32.mxu0 %vm531_vm0, %v171_v47  ;;  %v194_v47 = vld [vmem:[%s5742_s4 + $0x2a8] sm:$0xff] }
 0x179   :  { %787 = vmatmul.mubr.f32.gmra.mrb[28].mxu1 %v151_v50  ;;  %v193_v50 = vld [vmem:[%s5742_s4 + $0x2a0] sm:$0xff] }
 0x17a   :  { %791 = vmatprep.mubr.f32.mxu1 %v155_v51  ;;  %3663 = vmatmul.mubr.msk.f32.gmra.mrb[60].mxu0 %vm531_vm0, %v174_v54  ;;  %v197_v51 = vld [vmem:[%s5742_s4 + $0x2c0] sm:$0xff]  ;;  %v196_v54 = vld [vmem:[%s5742_s4 + $0x2b8] sm:$0xff] }
 0x17b   :  { %3665 = vmatprep.mubr.msk.f32.mxu0 %vm531_vm0, %v177_v55  ;;  %v200_v55 = vld [vmem:[%s5742_s4 + $0x2d8] sm:$0xff] }
 0x17d   :  { %792 = vmatmul.mubr.f32.gmra.mrb[30].mxu1 %v154_v58  ;;  %v199_v58 = vld [vmem:[%s5742_s4 + $0x2d0] sm:$0xff] }
 0x17e   :  { %796 = vmatprep.mubr.f32.mxu1 %v158_v59  ;;  %3666 = vmatmul.mubr.msk.f32.gmra.mrb[62].mxu0 %vm531_vm0, %v180_v62  ;;  %v203_v59 = vld [vmem:[%s5742_s4 + $0x2f0] sm:$0xff]  ;;  %v202_v62 = vld [vmem:[%s5742_s4 + $0x2e8] sm:$0xff] }
 0x17f   :  { %3668 = vmatprep.mubr.msk.f32.mxu0 %vm531_vm0, %v183_v0  ;;  %v206_v0 = vld [vmem:[%s5742_s4 + $0x308] sm:$0xff] }
 0x181   :  { %797 = vmatmul.mubr.f32.gmra.mrb[32].mxu1 %v157_v1  ;;  %v205_v1 = vld [vmem:[%s5742_s4 + $0x300] sm:$0xff] }
 0x182   :  { %801 = vmatprep.mubr.f32.mxu1 %v161_v2  ;;  %3669 = vmatmul.mubr.msk.f32.gmra.mrb[64].mxu0 %vm531_vm0, %v186_v3  ;;  %v209_v2 = vld [vmem:[%s5742_s4 + $0x320] sm:$0xff]  ;;  %v208_v3 = vld [vmem:[%s5742_s4 + $0x318] sm:$0xff] }
 0x183   :  { %3671 = vmatprep.mubr.msk.f32.mxu0 %vm531_vm0, %v189_v4  ;;  %v212_v4 = vld [vmem:[%s5742_s4 + $0x338] sm:$0xff] }
 0x185   :  { %802 = vmatmul.mubr.f32.gmra.mrb[34].mxu1 %v160_v5  ;;  %v211_v5 = vld [vmem:[%s5742_s4 + $0x330] sm:$0xff] }
 0x186   :  { %806 = vmatprep.mubr.f32.mxu1 %v164_v6  ;;  %3672 = vmatmul.mubr.msk.f32.gmra.mrb[66].mxu0 %vm531_vm0, %v192_v7  ;;  %v215_v6 = vld [vmem:[%s5742_s4 + $0x350] sm:$0xff]  ;;  %v214_v7 = vld [vmem:[%s5742_s4 + $0x348] sm:$0xff] }
 0x187   :  { %3674 = vmatprep.mubr.msk.f32.mxu0 %vm531_vm0, %v195_v8  ;;  %v218_v8 = vld [vmem:[%s5742_s4 + $0x368] sm:$0xff] }
 0x189   :  { %807 = vmatmul.mubr.f32.gmra.mrb[36].mxu1 %v163_v9  ;;  %v217_v9 = vld [vmem:[%s5742_s4 + $0x360] sm:$0xff] }
 0x18a   :  { %811 = vmatprep.mubr.f32.mxu1 %v167_v10  ;;  %3675 = vmatmul.mubr.msk.f32.gmra.mrb[68].mxu0 %vm531_vm0, %v198_v11  ;;  %v221_v10 = vld [vmem:[%s5742_s4 + $0x380] sm:$0xff]  ;;  %v220_v11 = vld [vmem:[%s5742_s4 + $0x378] sm:$0xff] }
 0x18b   :  { %3677 = vmatprep.mubr.msk.f32.mxu0 %vm531_vm0, %v201_v12  ;;  %v224_v12 = vld [vmem:[%s5742_s4 + $0x398] sm:$0xff] }
 0x18d   :  { %812 = vmatmul.mubr.f32.gmra.mrb[38].mxu1 %v166_v14  ;;  %v223_v14 = vld [vmem:[%s5742_s4 + $0x390] sm:$0xff] }
 0x18e   :  { %816 = vmatprep.mubr.f32.mxu1 %v170_v15  ;;  %3678 = vmatmul.mubr.msk.f32.gmra.mrb[70].mxu0 %vm531_vm0, %v204_v16  ;;  %v227_v15 = vld [vmem:[%s5742_s4 + $0x3b0] sm:$0xff]  ;;  %v226_v16 = vld [vmem:[%s5742_s4 + $0x3a8] sm:$0xff] }
 0x18f   :  { %3680 = vmatprep.mubr.msk.f32.mxu0 %vm531_vm0, %v207_v17  ;;  %v229_v17 = vld [vmem:[%s5743_s5] sm:$0xff] }
 0x191   :  { %817 = vmatmul.mubr.f32.gmra.mrb[40].mxu1 %v169_v18  ;;  %v230_v18 = vld [vmem:[%s5743_s5 + $0x8] sm:$0xff] }
 0x192   :  { %821 = vmatprep.mubr.f32.mxu1 %v173_v19  ;;  %3681 = vmatmul.mubr.msk.f32.gmra.mrb[72].mxu0 %vm531_vm0, %v210_v20  ;;  %v4101_v19 = vpack.c.bf16 %v230_v18, %v229_v17  ;;  %v231_v20 = vld [vmem:[%s5743_s5 + $0x10] sm:$0xff] }
 0x193   :  { %3683 = vmatprep.mubr.msk.f32.mxu0 %vm531_vm0, %v213_v21  ;;  %v232_v21 = vld [vmem:[%s5743_s5 + $0x18] sm:$0xff] }
 0x194   :  { %4102 = vmatprep.subr.bf16.mxu0 %v4101_v19 }
 0x195   :  { %822 = vmatmul.mubr.f32.gmra.mrb[42].mxu1 %v172_v22  ;;  %4104 = vmatpush3.bf16.msra.mxu0 %v4101_v19  ;;  %v4105_v22 = vpack.c.bf16 %v232_v21, %v231_v20 }
 0x196   :  { %826 = vmatprep.mubr.f32.mxu1 %v176_v23  ;;  %3684 = vmatmul.mubr.msk.f32.gmra.mrb[74].mxu0 %vm531_vm0, %v216_v24  ;;  %v233_v23 = vld [vmem:[%s5743_s5 + $0x20] sm:$0xff]  ;;  %v234_v24 = vld [vmem:[%s5743_s5 + $0x28] sm:$0xff] }
 0x197   :  { %3686 = vmatprep.mubr.msk.f32.mxu0 %vm531_vm0, %v219_v26  ;;  %4106 = vmatprep.subr.bf16.mxu0 %v4105_v22  ;;  %v4109_v26 = vpack.c.bf16 %v234_v24, %v233_v23 }
 0x199   :  { %827 = vmatmul.mubr.f32.gmra.mrb[44].mxu1 %v175_v27  ;;  %4108 = vmatpush3.bf16.msra.mxu0 %v4105_v22  ;;  %v235_v27 = vld [vmem:[%s5743_s5 + $0x30] sm:$0xff] }
 0x19a   :  { %831 = vmatprep.mubr.f32.mxu1 %v179_v28  ;;  %3687 = vmatmul.mubr.msk.f32.gmra.mrb[76].mxu0 %vm531_vm0, %v222_v29  ;;  %v236_v28 = vld [vmem:[%s5743_s5 + $0x38] sm:$0xff] }
 0x19b   :  { %3689 = vmatprep.mubr.msk.f32.mxu0 %vm531_vm0, %v225_v30  ;;  %4110 = vmatprep.subr.bf16.mxu0 %v4109_v26  ;;  %v4113_v29 = vpack.c.bf16 %v236_v28, %v235_v27 }
 0x19d   :  { %832 = vmatmul.mubr.f32.gmra.mrb[46].mxu1 %v178_v33  ;;  %4112 = vmatpush3.bf16.msra.mxu0 %v4109_v26 }
 0x19e   :  { %836 = vmatprep.mubr.f32.mxu1 %v182_v34  ;;  %3690 = vmatmul.mubr.msk.f32.gmra.mrb[78].mxu0 %vm531_vm0, %v228_v35  ;;  %v237_v34 = vld [vmem:[%s5743_s5 + $0x40] sm:$0xff]  ;;  %v238_v35 = vld [vmem:[%s5743_s5 + $0x48] sm:$0xff] }
 0x19f   :  { %4114 = vmatprep.subr.bf16.mxu0 %v4113_v29 }
 0x1a1   :  { %837 = vmatmul.mubr.f32.gmra.mrb[48].mxu1 %v181_v36  ;;  %4116 = vmatpush3.bf16.msra.mxu0 %v4113_v29  ;;  %v4117_v36 = vpack.c.bf16 %v238_v35, %v237_v34 }
 0x1a2   :  { %841 = vmatprep.mubr.f32.mxu1 %v185_v39 }
 0x1a3   :  { %4118 = vmatprep.subr.bf16.mxu0 %v4117_v36 }
 0x1a5   :  { %842 = vmatmul.mubr.f32.gmra.mrb[50].mxu1 %v184_v40  ;;  %4120 = vmatpush3.bf16.msra.mxu0 %v4117_v36 }
 0x1a6   :  { %846 = vmatprep.mubr.f32.mxu1 %v188_v41  ;;  %v239_v41 = vld [vmem:[%s5743_s5 + $0x50] sm:$0xff] }
 0x1a9   :  { %847 = vmatmul.mubr.f32.gmra.mrb[52].mxu1 %v187_v42  ;;  %v240_v42 = vld [vmem:[%s5743_s5 + $0x58] sm:$0xff] }
 0x1aa   :  { %851 = vmatprep.mubr.f32.mxu1 %v191_v45  ;;  %v4121_v45 = vpack.c.bf16 %v240_v42, %v239_v41 }
 0x1ac   :  { %4122 = vmatprep.subr.bf16.mxu0 %v4121_v45 }
 0x1ad   :  { %852 = vmatmul.mubr.f32.gmra.mrb[54].mxu1 %v190_v46  ;;  %4124 = vmatpush3.bf16.msra.mxu0 %v4121_v45 }
 0x1ae   :  { %856 = vmatprep.mubr.f32.mxu1 %v194_v47 }
 0x1b1   :  { %857 = vmatmul.mubr.f32.gmra.mrb[56].mxu1 %v193_v50  ;;  %v241_v50 = vld [vmem:[%s5743_s5 + $0x60] sm:$0xff] }
 0x1b2   :  { %861 = vmatprep.mubr.f32.mxu1 %v197_v51  ;;  %v1454_v51 = vld [vmem:[%s5744_s6] sm:$0xff]  ;;  %3716 = vmatprep.subr.mxu0 %v241_v50 }
 0x1b3   :  { %3717 = vmatpush3.msra.mxu0 %v241_v50 }
 0x1b5   :  { %862 = vmatmul.mubr.f32.gmra.mrb[58].mxu1 %v196_v54  ;;  %v1455_v54 = vld [vmem:[%s5744_s6 + $0x8] sm:$0xff] }
 0x1b6   :  { %866 = vmatprep.mubr.f32.mxu1 %v200_v55 }
 0x1b9   :  { %867 = vmatmul.mubr.f32.gmra.mrb[60].mxu1 %v199_v58  ;;  %v5123_v58 = vpack.c.bf16 %v1455_v54, %v1454_v51 }
 0x1ba   :  { %871 = vmatprep.mubr.f32.mxu1 %v203_v59 }
 0x1bb   :  { %4126 = vmatprep.subr.bf16.mxu0 %v5123_v58 }
 0x1bd   :  { %872 = vmatmul.mubr.f32.gmra.mrb[62].mxu1 %v202_v62 }
 0x1be   :  { %876 = vmatprep.mubr.f32.mxu1 %v206_v0 }
 0x1c1   :  { %877 = vmatmul.mubr.f32.gmra.mrb[64].mxu1 %v205_v1 }
 0x1c2   :  { %881 = vmatprep.mubr.f32.mxu1 %v209_v2 }
 0x1c5   :  { %882 = vmatmul.mubr.f32.gmra.mrb[66].mxu1 %v208_v3 }
 0x1c6   :  { %886 = vmatprep.mubr.f32.mxu1 %v212_v4 }
 0x1c9   :  { %887 = vmatmul.mubr.f32.gmra.mrb[68].mxu1 %v211_v5 }
 0x1ca   :  { %891 = vmatprep.mubr.f32.mxu1 %v215_v6 }
 0x1cd   :  { %892 = vmatmul.mubr.f32.gmra.mrb[70].mxu1 %v214_v7 }
 0x1ce   :  { %896 = vmatprep.mubr.f32.mxu1 %v218_v8 }
 0x1d1   :  { %897 = vmatmul.mubr.f32.gmra.mrb[72].mxu1 %v217_v9 }
 0x1d2   :  { %901 = vmatprep.mubr.f32.mxu1 %v221_v10 }
 0x1d5   :  { %902 = vmatmul.mubr.f32.gmra.mrb[74].mxu1 %v220_v11 }
 0x1d6   :  { %906 = vmatprep.mubr.f32.mxu1 %v224_v12 }
 0x1d9   :  { %907 = vmatmul.mubr.f32.gmra.mrb[76].mxu1 %v223_v14 }
 0x1da   :  { %911 = vmatprep.mubr.f32.mxu1 %v227_v15 }
 0x1dd   :  { %912 = vmatmul.mubr.f32.gmra.mrb[78].mxu1 %v226_v16 }
 0x214   :  { %v718_v30 = vpop.f32.mrb[0].mxu1 }
 0x215   :  { %v720_v33 = vpop.f32.mrb[1].mxu1 }
 0x218   :  { %v723_v39 = vpop.f32.mrb[2].mxu1 }
 0x219   :  { %v725_v40 = vpop.f32.mrb[3].mxu1 }
 0x21c   :  { %v728_v46 = vpop.f32.mrb[4].mxu1 }
 0x21d   :  { %v730_v47 = vpop.f32.mrb[5].mxu1 }
 0x220   :  { %v733_v55 = vpop.f32.mrb[6].mxu1 }
 0x221   :  { %v735_v59 = vpop.f32.mrb[7].mxu1 }
 0x224   :  { %v738_v62 = vpop.f32.mrb[8].mxu1 }
 0x225   :  { %v740_v0 = vpop.f32.mrb[9].mxu1  ;;  %v3634_v1 = vpop.f32.mrb[40].mxu0 }
 0x226   :  { %v5126_v2 = vadd.f32 %v3634_v1, %v723_v39  ;;  %v983_v3 = vpop.f32.mrb[41].mxu0 }
 0x227   :  { %v5128_v4 = vadd.f32 %v983_v3, %v718_v30 }
 0x228   :  { %v743_v5 = vpop.f32.mrb[10].mxu1 }
 0x229   :  { %v745_v6 = vpop.f32.mrb[11].mxu1  ;;  %v3637_v7 = vpop.f32.mrb[42].mxu0 }
 0x22a   :  { %v5130_v8 = vadd.f32 %v3637_v7, %v733_v55  ;;  %v993_v9 = vpop.f32.mrb[43].mxu0 }
 0x22b   :  { %v5132_v10 = vadd.f32 %v993_v9, %v728_v46 }
 0x22c   :  { %v748_v11 = vpop.f32.mrb[12].mxu1 }
 0x22d   :  { %v750_v12 = vpop.f32.mrb[13].mxu1  ;;  %v3640_v14 = vpop.f32.mrb[44].mxu0 }
 0x22e   :  { %v5134_v15 = vadd.f32 %v3640_v14, %v743_v5  ;;  %v1003_v16 = vpop.f32.mrb[45].mxu0 }
 0x22f   :  { %v5136_v17 = vadd.f32 %v1003_v16, %v738_v62 }
 0x230   :  { %v753_v18 = vpop.f32.mrb[14].mxu1 }
 0x231   :  { %v755_v19 = vpop.f32.mrb[15].mxu1  ;;  %v3643_v20 = vpop.f32.mrb[46].mxu0 }
 0x232   :  { %v5138_v21 = vadd.f32 %v3643_v20, %v753_v18  ;;  %v1013_v22 = vpop.f32.mrb[47].mxu0 }
 0x233   :  { %v5140_v23 = vadd.f32 %v1013_v22, %v748_v11 }
 0x234   :  { %v758_v24 = vpop.f32.mrb[16].mxu1 }
 0x235   :  { %v760_v26 = vpop.f32.mrb[17].mxu1  ;;  %v3646_v27 = vpop.f32.mrb[48].mxu0 }
 0x236   :  { %v1023_v28 = vpop.f32.mrb[49].mxu0 }
 0x237   :  { %v5142_v29 = vadd.f32 %v1023_v28, %v758_v24 }
 0x238   :  { %v763_v30 = vpop.f32.mrb[18].mxu1 }
 0x239   :  { %v5146_v33 = vmul.f32 %v5142_v29, %v5128_v4  ;;  %v5148_v34 = vadd.f32 %v3646_v27, %v763_v30  ;;  %v765_v35 = vpop.f32.mrb[19].mxu1  ;;  %v3649_v36 = vpop.f32.mrb[50].mxu0 }
 0x23a   :  { %v1033_v39 = vpop.f32.mrb[51].mxu0 }
 0x23b   :  { %v5152_v40 = vmul.f32 %v5148_v34, %v5126_v2 }
 0x23c   :  { %v768_v41 = vpop.f32.mrb[20].mxu1 }
 0x23d   :  { %v5154_v42 = vadd.f32 %v1033_v39, %v768_v41  ;;  %v770_v45 = vpop.f32.mrb[21].mxu1  ;;  %v3652_v46 = vpop.f32.mrb[52].mxu0 }
 0x23e   :  { %v1043_v47 = vpop.f32.mrb[53].mxu0 }
 0x23f   :  { %v5158_v50 = vmul.f32 %v5154_v42, %v5132_v10  ;;  %v1192_v49 = vmul.f32 %v5154_v42, %v5154_v42 }
 0x240   :  { %v773_v51 = vpop.f32.mrb[22].mxu1 }
 0x241   :  { %v5160_v54 = vadd.f32 %v3649_v36, %v773_v51  ;;  %v775_v55 = vpop.f32.mrb[23].mxu1  ;;  %v3655_v59 = vpop.f32.mrb[54].mxu0 }
 0x242   :  { %v1053_v62 = vpop.f32.mrb[55].mxu0 }
 0x243   :  { %v5164_v0 = vmul.f32 %v5160_v54, %v5130_v8 }
 0x244   :  { %v778_v1 = vpop.f32.mrb[24].mxu1 }
 0x245   :  { %v5166_v3 = vadd.f32 %v1043_v47, %v778_v1  ;;  %v780_v5 = vpop.f32.mrb[25].mxu1  ;;  %v3658_v6 = vpop.f32.mrb[56].mxu0  ;;  %v5192_v47 = vmul.f32 %v5128_v4, %v5128_v4  ;;  %v1184_v4 = vmul.f32 %v5132_v10, %v5132_v10 }
 0x246   :  { %v1063_v7 = vpop.f32.mrb[57].mxu0 }
 0x247   :  { %v5170_v9 = vmul.f32 %v5166_v3, %v5136_v17 }
 0x248   :  { %v783_v11 = vpop.f32.mrb[26].mxu1 }
 0x249   :  { %v5172_v12 = vadd.f32 %v3652_v46, %v783_v11  ;;  %v785_v14 = vpop.f32.mrb[27].mxu1  ;;  %v3661_v16 = vpop.f32.mrb[58].mxu0  ;;  %v1183_v11 = vmul.f32 %v5126_v2, %v5126_v2  ;;  %v1185_v2 = vmul.f32 %v5130_v8, %v5130_v8  ;;  %v1187_v8 = vmul.f32 %v5134_v15, %v5134_v15 }
 0x24a   :  { %v1073_v18 = vpop.f32.mrb[59].mxu0 }
 0x24b   :  { %v5176_v19 = vmul.f32 %v5172_v12, %v5134_v15 }
 0x24c   :  { %v788_v20 = vpop.f32.mrb[28].mxu1 }
 0x24d   :  { %v5178_v22 = vadd.f32 %v1053_v62, %v788_v20  ;;  %v790_v24 = vpop.f32.mrb[29].mxu1  ;;  %v3664_v26 = vpop.f32.mrb[60].mxu0 }
 0x24e   :  { %v1083_v27 = vpop.f32.mrb[61].mxu0 }
 0x24f   :  { %v5182_v28 = vmul.f32 %v5178_v22, %v5140_v23 }
 0x250   :  { %v793_v30 = vpop.f32.mrb[30].mxu1 }
 0x251   :  { %v5184_v35 = vadd.f32 %v3655_v59, %v793_v30  ;;  %v795_v36 = vpop.f32.mrb[31].mxu1  ;;  %v3667_v39 = vpop.f32.mrb[62].mxu0 }
 0x252   :  { %v1093_v41 = vpop.f32.mrb[63].mxu0 }
 0x253   :  { %v5188_v45 = vmul.f32 %v5184_v35, %v5138_v21 }
 0x254   :  { %v798_v46 = vpop.f32.mrb[32].mxu1 }
 0x255   :  { %v1064_v51 = vadd.f32 %v1063_v7, %v798_v46  ;;  %v800_v55 = vpop.f32.mrb[33].mxu1  ;;  %v3670_v62 = vpop.f32.mrb[64].mxu0 }
 0x256   :  { %v1103_v1 = vpop.f32.mrb[65].mxu0 }
 0x257   :  { %v1206_v5 = vsub.f32 %v1064_v51, %v5192_v47 }
 0x258   :  { %v803_v59 = vpop.f32.mrb[34].mxu1 }
 0x259   :  { %v1069_v14 = vadd.f32 %v3658_v6, %v803_v59  ;;  %v805_v20 = vpop.f32.mrb[35].mxu1  ;;  %v5197_v24 = vpop.f32.mrb[66].mxu0 }
 0x25a   :  { %v1113_v30 = vpop.f32.mrb[67].mxu0 }
 0x25b   :  { %v1207_v36 = vsub.f32 %v1069_v14, %v1183_v11 }
 0x25c   :  { %v808_v25 = vpop.f32.mrb[36].mxu1 }
 0x25d   :  { %v1074_v7 = vadd.f32 %v1073_v18, %v808_v25  ;;  %v810_v46 = vpop.f32.mrb[37].mxu1  ;;  %v5201_v55 = vpop.f32.mrb[68].mxu0  ;;  %v1186_v25 = vmul.f32 %v5136_v17, %v5136_v17 }
 0x25e   :  { %v5203_v63 = vpop.f32.mrb[69].mxu0 }
 0x25f   :  { %v1208_v47 = vsub.f32 %v1074_v7, %v1184_v4 }
 0x260   :  { %v813_v51 = vpop.f32.mrb[38].mxu1 }
 0x261   :  { %v1079_v6 = vadd.f32 %v3661_v16, %v813_v51  ;;  %v815_v59 = vpop.f32.mrb[39].mxu1  ;;  %v5207_v20 = vpop.f32.mrb[70].mxu0 }
 0x262   :  { %v5209_v11 = vpop.f32.mrb[71].mxu0 }
 0x263   :  { %v1209_v14 = vsub.f32 %v1079_v6, %v1185_v2 }
 0x264   :  { %v818_v61 = vpop.f32.mrb[40].mxu1 }
 0x265   :  { %v1084_v10 = vadd.f32 %v1083_v27, %v818_v61  ;;  %v820_v18 = vpop.f32.mrb[41].mxu1  ;;  %v5213_v46 = vpop.f32.mrb[72].mxu0  ;;  %v1188_v61 = vmul.f32 %v5140_v23, %v5140_v23 }
 0x266   :  { %v5215_v4 = vpop.f32.mrb[73].mxu0 }
 0x267   :  { %v1210_v7 = vsub.f32 %v1084_v10, %v1186_v25 }
 0x268   :  { %v823_v60 = vpop.f32.mrb[42].mxu1 }
 0x269   :  { %v1089_v16 = vadd.f32 %v3664_v26, %v823_v60  ;;  %v825_v51 = vpop.f32.mrb[43].mxu1  ;;  %v5219_v59 = vpop.f32.mrb[74].mxu0  ;;  %v1189_v60 = vmul.f32 %v5138_v21, %v5138_v21 }
 0x26a   :  { %v5221_v2 = vpop.f32.mrb[75].mxu0 }
 0x26b   :  { %v1211_v6 = vsub.f32 %v1089_v16, %v1187_v8 }
 0x26c   :  { %v828_v57 = vpop.f32.mrb[44].mxu1 }
 0x26d   :  { %v1094_v17 = vadd.f32 %v1093_v41, %v828_v57  ;;  %v830_v27 = vpop.f32.mrb[45].mxu1  ;;  %v5225_v18 = vpop.f32.mrb[76].mxu0  ;;  %v1190_v57 = vmul.f32 %v5142_v29, %v5142_v29 }
 0x26e   :  { %v5227_v25 = vpop.f32.mrb[77].mxu0 }
 0x26f   :  { %v1212_v10 = vsub.f32 %v1094_v17, %v1188_v61  ;;  %v1191_v61 = vmul.f32 %v5148_v34, %v5148_v34 }
 0x270   :  { %v833_v56 = vpop.f32.mrb[46].mxu1 }
 0x271   :  { %v1099_v15 = vadd.f32 %v3667_v39, %v833_v56  ;;  %v835_v26 = vpop.f32.mrb[47].mxu1  ;;  %v5231_v51 = vpop.f32.mrb[78].mxu0 }
 0x272   :  { %v5233_v8 = vpop.f32.mrb[79].mxu0 }
 0x273   :  { %v1213_v16 = vsub.f32 %v1099_v15, %v1189_v60 }
 0x274   :  { %v838_v53 = vpop.f32.mrb[48].mxu1 }
 0x275   :  { %v1104_v23 = vadd.f32 %v1103_v1, %v838_v53  ;;  %v840_v41 = vpop.f32.mrb[49].mxu1  ;;  %v1193_v53 = vmul.f32 %v5160_v54, %v5160_v54 }
 0x277   :  { %v1214_v27 = vsub.f32 %v1104_v23, %v1190_v57 }
 0x278   :  { %v843_v52 = vpop.f32.mrb[50].mxu1 }
 0x279   :  { %v1246_v17 = vadd.f32 %v1214_v27, %v1206_v5  ;;  %v1109_v21 = vadd.f32 %v3670_v62, %v843_v52  ;;  %v845_v56 = vpop.f32.mrb[51].mxu1  ;;  %v1194_v62 = vmul.f32 %v5166_v3, %v5166_v3  ;;  %v1196_v27 = vmul.f32 %v5178_v22, %v5178_v22 }
 0x27b   :  { %v1215_v39 = vsub.f32 %v1109_v21, %v1191_v61 }
 0x27c   :  { %v848_v26 = vpop.f32.mrb[52].mxu1 }
 0x27d   :  { %v1247_v60 = vadd.f32 %v1215_v39, %v1207_v36  ;;  %v1114_v15 = vadd.f32 %v1113_v30, %v848_v26  ;;  %v850_v48 = vpop.f32.mrb[53].mxu1  ;;  %v1197_v39 = vmul.f32 %v5184_v35, %v5184_v35 }
 0x27f   :  { %v1216_v44 = vsub.f32 %v1114_v15, %v1192_v49  ;;  %v1195_v49 = vmul.f32 %v5172_v12, %v5172_v12  ;;  %v1255_v26 = vadd.f32 0.0009, %v1247_v60 }
 0x280   :  { %v853_v29 = vpop.f32.mrb[54].mxu1 }
 0x281   :  { %v1248_v1 = vadd.f32 %v1216_v44, %v1208_v47  ;;  %v1119_v57 = vadd.f32 %v5197_v24, %v853_v29  ;;  %v855_v34 = vpop.f32.mrb[55].mxu1 }
 0x283   :  { %v1217_v5 = vsub.f32 %v1119_v57, %v1193_v53 }
 0x284   :  { %v858_v52 = vpop.f32.mrb[56].mxu1 }
 0x285   :  { %v1249_v23 = vadd.f32 %v1217_v5, %v1209_v14  ;;  %v1124_v42 = vadd.f32 %v5203_v63, %v858_v52  ;;  %v860_v36 = vpop.f32.mrb[57].mxu1  ;;  %v1254_v63 = vadd.f32 0.0009, %v1246_v17 }
 0x287   :  { %v1218_v30 = vsub.f32 %v1124_v42, %v1194_v62  ;;  %4304 = vrcp.f32 %v1254_v63 }
 0x288   :  { %v863_v48 = vpop.f32.mrb[58].mxu1  ;;  %4306 = vrcp.f32 %v1255_v26 }
 0x289   :  { %v1250_v41 = vadd.f32 %v1218_v30, %v1210_v7  ;;  %v1129_v44 = vadd.f32 %v5201_v55, %v863_v48  ;;  %v865_v54 = vpop.f32.mrb[59].mxu1 }
 0x28b   :  { %v1219_v24 = vsub.f32 %v1129_v44, %v1195_v49 }
 0x28c   :  { %v868_v47 = vpop.f32.mrb[60].mxu1 }
 0x28d   :  { %v1251_v61 = vadd.f32 %v1219_v24, %v1211_v6  ;;  %v1134_v3 = vadd.f32 %v5209_v11, %v868_v47  ;;  %v870_v14 = vpop.f32.mrb[61].mxu1  ;;  %v1256_v6 = vadd.f32 0.0009, %v1248_v1  ;;  %v1458_v47 = vld [vmem:[%s5744_s6 + $0x20] sm:$0xff] }
 0x28f   :  { %v1220_v21 = vsub.f32 %v1134_v3, %v1196_v27  ;;  %4308 = vrcp.f32 %v1256_v6  ;;  %v1259_v24 = vadd.f32 0.0009, %v1251_v61 }
 0x290   :  { %v873_v56 = vpop.f32.mrb[62].mxu1 }
 0x291   :  { %v1252_v12 = vadd.f32 %v1220_v21, %v1212_v10  ;;  %v1139_v7 = vadd.f32 %v5207_v20, %v873_v56  ;;  %v875_v55 = vpop.f32.mrb[63].mxu1  ;;  %v1257_v20 = vadd.f32 0.0009, %v1249_v23  ;;  %v4305_v52 = vpop.eup %4304  ;;  %v1457_v23 = vld [vmem:[%s5744_s6 + $0x18] sm:$0xff] }
 0x292   :  { %v4307_v30 = vpop.eup %4306  ;;  %v1460_v55 = vld [vmem:[%s5744_s6 + $0x30] sm:$0xff] }
 0x293   :  { %v1221_v15 = vsub.f32 %v1139_v7, %v1197_v39  ;;  %4310 = vrcp.f32 %v1257_v20  ;;  %v1260_v7 = vadd.f32 0.0009, %v1252_v12 }
 0x294   :  { %v878_v29 = vpop.f32.mrb[64].mxu1 }
 0x295   :  { %v5256_v53 = vadd.f32 %v1221_v15, %v1213_v16  ;;  %v1144_v22 = vadd.f32 %v5215_v4, %v878_v29  ;;  %v880_v11 = vpop.f32.mrb[65].mxu1 }
 0x297   :  { %v1222_v17 = vsub.f32 %v1144_v22, %v5146_v33  ;;  %v1258_v33 = vadd.f32 0.0009, %v1250_v41 }
 0x298   :  { %v883_v57 = vpop.f32.mrb[66].mxu1 }
 0x299   :  { %v1230_v34 = vmul.f32 2.0, %v1222_v17  ;;  %v1149_v35 = vadd.f32 %v5213_v46, %v883_v57  ;;  %v885_v10 = vpop.f32.mrb[67].mxu1  ;;  %v1456_v46 = vld [vmem:[%s5744_s6 + $0x10] sm:$0xff]  ;;  %4312 = vrcp.f32 %v1258_v33  ;;  %v4309_v14 = vpop.eup %4308  ;;  %v1261_v17 = vadd.f32 0.0009, %v5256_v53  ;;  %v1462_v57 = vld [vmem:[%s5744_s6 + $0x40] sm:$0xff] }
 0x29a   :  { %v4129_v54 = vpack.c.bf16 %v1457_v23, %v1456_v46  ;;  %4314 = vrcp.f32 %v1259_v24 }
 0x29b   :  { %v1238_v5 = vadd.f32 0.0009, %v1230_v34  ;;  %v1223_v60 = vsub.f32 %v1149_v35, %v5152_v40  ;;  %4316 = vrcp.f32 %v1260_v7 }
 0x29c   :  { %v888_v16 = vpop.f32.mrb[68].mxu1  ;;  %4318 = vrcp.f32 %v1261_v17 }
 0x29d   :  { %v1263_v62 = vmul.f32 %v4305_v52, %v1238_v5  ;;  %v1231_v4 = vmul.f32 2.0, %v1223_v60  ;;  %v1154_v42 = vadd.f32 %v5221_v2, %v888_v16  ;;  %v890_v1 = vpop.f32.mrb[69].mxu1  ;;  %v4311_v15 = vpop.eup %4310  ;;  %v1464_v16 = vld [vmem:[%s5744_s6 + $0x50] sm:$0xff] }
 0x29f   :  { %v1239_v36 = vadd.f32 0.0009, %v1231_v4  ;;  %v1224_v40 = vsub.f32 %v1154_v42, %v5158_v50  ;;  %3718 = vmatprep.mubr.msk.f32.mxu0 %vm1278_vm1, %v1263_v62  ;;  %v1459_v50 = vld [vmem:[%s5744_s6 + $0x28] sm:$0xff] }
 0x2a0   :  { %v893_v48 = vpop.f32.mrb[70].mxu1  ;;  %v4133_v39 = vpack.c.bf16 %v1459_v50, %v1458_v47 }
 0x2a1   :  { %v1265_v49 = vmul.f32 %v4307_v30, %v1239_v36  ;;  %v1232_v2 = vmul.f32 2.0, %v1224_v40  ;;  %v1159_v44 = vadd.f32 %v5219_v59, %v893_v48  ;;  %v895_v41 = vpop.f32.mrb[71].mxu1  ;;  %v1466_v40 = vld [vmem:[%s5744_s6 + $0x60] sm:$0xff] }
 0x2a2   :  { %v1468_v41 = vld [vmem:[%s5744_s6 + $0x70] sm:$0xff] }
 0x2a3   :  { %v1240_v27 = vadd.f32 0.0009, %v1232_v2  ;;  %v1225_v3 = vsub.f32 %v1159_v44, %v5164_v0  ;;  %3719 = vmatmul.mubr.msk.f32.vlgmr.msra.gmra.mrb[80].mxu0 %vm1278_vm1, %v1265_v49  ;;  %v1461_v0 = vld [vmem:[%s5744_s6 + $0x38] sm:$0xff] }
 0x2a4   :  { %4128 = vmatpush3.bf16.msra.mxu0 %v5123_v58  ;;  %v898_v59 = vpop.f32.mrb[72].mxu1  ;;  %v4137_v6 = vpack.c.bf16 %v1461_v0, %v1460_v55 }
 0x2a5   :  { %v1267_v63 = vmul.f32 %v4309_v14, %v1240_v27  ;;  %v1233_v21 = vmul.f32 2.0, %v1225_v3  ;;  %v1164_v61 = vadd.f32 %v5227_v25, %v898_v59  ;;  %4130 = vmatprep.subr.bf16.mxu0 %v4129_v54  ;;  %v900_v56 = vpop.f32.mrb[73].mxu1  ;;  %v5780_v27 = vmov 0.0|0.0   ;;  %v5781_v3 = vld [vmem:[#allocation2_spill] sm:$0xff]  ;;  %v5782_v14 = vld [vmem:[#allocation3_spill] sm:$0xff]  ;;  %v5783_v59 = vld [vmem:[#allocation4_spill] sm:$0xff] }
 0x2a7   :  { %v1241_v26 = vadd.f32 0.0009, %v1233_v21  ;;  %v1226_v58 = vsub.f32 %v1164_v61, %v5170_v9  ;;  %3721 = vmatprep.mubr.msk.f32.mxu0 %vm1278_vm1, %v1267_v63  ;;  %v1463_v9 = vld [vmem:[%s5744_s6 + $0x48] sm:$0xff]  ;;  %v5785_v63 = vld [vmem:[#allocation6_spill] sm:$0xff] }
 0x2a8   :  { %4132 = vmatpush3.bf16.msra.mxu0 %v4129_v54  ;;  %v903_v25 = vpop.f32.mrb[74].mxu1  ;;  %v4141_v52 = vpack.c.bf16 %v1463_v9, %v1462_v57  ;;  %v1469_v54 = vld [vmem:[%s5744_s6 + $0x78] sm:$0xff]  ;;  %v5786_v21 = vld [vmem:[#allocation7_spill] sm:$0xff] }
 0x2a9   :  { %v1269_v29 = vmul.f32 %v4311_v15, %v1241_v26  ;;  %v1234_v22 = vmul.f32 2.0, %v1226_v58  ;;  %v1169_v12 = vadd.f32 %v5225_v18, %v903_v25  ;;  %4134 = vmatprep.subr.bf16.mxu0 %v4133_v39  ;;  %v905_v11 = vpop.f32.mrb[75].mxu1  ;;  %v4313_v18 = vpop.eup %4312  ;;  %v4153_v50 = vpack.c.bf16 %v1469_v54, %v1468_v41 }
 0x2aa   :  { %v4315_v42 = vpop.eup %4314 }
 0x2ab   :  { %v1242_v34 = vadd.f32 0.0009, %v1234_v22  ;;  %v1227_v35 = vsub.f32 %v1169_v12, %v5176_v19  ;;  %3722 = vmatmul.mubr.msk.f32.gmra.mrb[82].mxu0 %vm1278_vm1, %v1269_v29  ;;  %v1465_v19 = vld [vmem:[%s5744_s6 + $0x58] sm:$0xff]  ;;  %v4317_v49 = vpop.eup %4316 }
 0x2ac   :  { %4136 = vmatpush3.bf16.msra.mxu0 %v4133_v39  ;;  %v908_v10 = vpop.f32.mrb[76].mxu1  ;;  %v4145_v36 = vpack.c.bf16 %v1465_v19, %v1464_v16 }
 0x2ad   :  { %v1271_v20 = vmul.f32 %v4313_v18, %v1242_v34  ;;  %v1235_v5 = vmul.f32 2.0, %v1227_v35  ;;  %v1174_v53 = vadd.f32 %v5233_v8, %v908_v10  ;;  %4138 = vmatprep.subr.bf16.mxu0 %v4137_v6  ;;  %v910_v60 = vpop.f32.mrb[77].mxu1 }
 0x2af   :  { %v1243_v62 = vadd.f32 0.0009, %v1235_v5  ;;  %v1228_v4 = vsub.f32 %v1174_v53, %v5182_v28  ;;  %3724 = vmatprep.mubr.msk.f32.mxu0 %vm1278_vm1, %v1271_v20  ;;  %v1467_v28 = vld [vmem:[%s5744_s6 + $0x68] sm:$0xff] }
 0x2b0   :  { %4140 = vmatpush3.bf16.msra.mxu0 %v4137_v6  ;;  %v913_v8 = vpop.f32.mrb[78].mxu1  ;;  %v4149_v44 = vpack.c.bf16 %v1467_v28, %v1466_v40 }
 0x2b1   :  { %v1273_v1 = vmul.f32 %v4315_v42, %v1243_v62  ;;  %v1236_v33 = vmul.f32 2.0, %v1228_v4  ;;  %v1179_v46 = vadd.f32 %v5231_v51, %v913_v8  ;;  %4142 = vmatprep.subr.bf16.mxu0 %v4141_v52  ;;  %v915_v23 = vpop.f32.mrb[79].mxu1 }
 0x2b3   :  { %v1244_v30 = vadd.f32 0.0009, %v1236_v33  ;;  %v1229_v48 = vsub.f32 %v1179_v46, %v5188_v45  ;;  %3725 = vmatmul.mubr.msk.f32.gmra.mrb[84].mxu0 %vm1278_vm1, %v1273_v1  ;;  %v4319_v45 = vpop.eup %4318 }
 0x2b4   :  { %4144 = vmatpush3.bf16.msra.mxu0 %v4141_v52 }
 0x2b5   :  { %v1275_v2 = vmul.f32 %v4317_v49, %v1244_v30  ;;  %v1237_v51 = vmul.f32 2.0, %v1229_v48  ;;  %4146 = vmatprep.subr.bf16.mxu0 %v4145_v36 }
 0x2b7   :  { %v1245_v24 = vadd.f32 0.0009, %v1237_v51  ;;  %3727 = vmatprep.mubr.msk.f32.mxu0 %vm1278_vm1, %v1275_v2  ;;  %v1728_v2 = vld [vmem:[%s5746_s8] sm:$0xff]  ;;  %v1729_v51 = vld [vmem:[%s5746_s8 + $0x8] sm:$0xff] }
 0x2b8   :  { %4148 = vmatpush3.bf16.msra.mxu0 %v4145_v36 }
 0x2b9   :  { %v1277_v47 = vmul.f32 %v4319_v45, %v1245_v24  ;;  %4150 = vmatprep.subr.bf16.mxu0 %v4149_v44  ;;  %v4189_v24 = vpack.c.bf16 %v1729_v51, %v1728_v2  ;;  %v1730_v45 = vld [vmem:[%s5746_s8 + $0x10] sm:$0xff] }
 0x2bb   :  { %3728 = vmatmul.mubr.msk.f32.gmra.mrb[86].mxu0 %vm1278_vm1, %v1277_v47  ;;  %v1731_v47 = vld [vmem:[%s5746_s8 + $0x18] sm:$0xff] }
 0x2bc   :  { %4152 = vmatpush3.bf16.msra.mxu0 %v4149_v44  ;;  %3762 = vmatprep.mubr.f32.mxu0 %v4476_v13  ;;  %v5784_v13 = vld [vmem:[#allocation5_spill] sm:$0xff] }
 0x2bd   :  { %4154 = vmatprep.subr.bf16.mxu0 %v4153_v50 }
 0x2c0   :  { %4156 = vmatpush3.bf16.msra.mxu0 %v4153_v50  ;;  %v1471_v50 = vld [vmem:[%s5745_s7 + $0x8] sm:$0xff] }
 0x2c1   :  { %4205 = vmatprep.subr.bf16.mxu0 %v5780_v27 }
 0x2c3   :  { %3763 = vmatmul.mubr.f32.vlgmr.msra.gmra.mrb[88].mxu0 %v4515_v31  ;;  %v5787_v31 = vld [vmem:[#allocation8_spill] sm:$0xff] }
 0x2c4   :  { %3765 = vmatprep.mubr.f32.mxu0 %v4517_v32  ;;  %v5788_v32 = vld [vmem:[#allocation9_spill] sm:$0xff] }
 0x2c7   :  { %3766 = vmatmul.mubr.f32.gmra.mrb[90].mxu0 %v4532_v37  ;;  %v5789_v37 = vld [vmem:[#allocation10_spill] sm:$0xff] }
 0x2c8   :  { %3768 = vmatprep.mubr.f32.mxu0 %v4535_v38  ;;  %v5790_v38 = vld [vmem:[#allocation11_spill] sm:$0xff] }
 0x2cb   :  { %3769 = vmatmul.mubr.f32.gmra.mrb[92].mxu0 %v4550_v43  ;;  %v1470_v43 = vld [vmem:[%s5745_s7] sm:$0xff] }
 0x2cc   :  { %3771 = vmatprep.mubr.f32.mxu0 %v5781_v3  ;;  %3818 = vmatprep.mubr.f32.mxu1 %v1470_v43  ;;  %v1472_v3 = vld [vmem:[%s5745_s7 + $0x10] sm:$0xff] }
 0x2cd   :  { %v1476_v43 = vld [vmem:[%s5745_s7 + $0x30] sm:$0xff] }
 0x2cf   :  { %3772 = vmatmul.mubr.f32.gmra.mrb[94].mxu0 %v5782_v14  ;;  %v4193_v14 = vpack.c.bf16 %v1731_v47, %v1730_v45 }
 0x2d0   :  { %3774 = vmatprep.mubr.f32.mxu0 %v5783_v59  ;;  %v1732_v59 = vld [vmem:[%s5746_s8 + $0x20] sm:$0xff] }
 0x2d3   :  { %3775 = vmatmul.mubr.f32.gmra.mrb[96].mxu0 %v5784_v13  ;;  %v1733_v13 = vld [vmem:[%s5746_s8 + $0x28] sm:$0xff] }
 0x2d4   :  { %3777 = vmatprep.mubr.f32.mxu0 %v5785_v63  ;;  %v1473_v63 = vld [vmem:[%s5745_s7 + $0x18] sm:$0xff] }
 0x2d7   :  { %3778 = vmatmul.mubr.f32.gmra.mrb[98].mxu0 %v5786_v21  ;;  %v1474_v21 = vld [vmem:[%s5745_s7 + $0x20] sm:$0xff] }
 0x2d8   :  { %3780 = vmatprep.mubr.f32.mxu0 %v5787_v31  ;;  %v4197_v31 = vpack.c.bf16 %v1733_v13, %v1732_v59 }
 0x2db   :  { %3781 = vmatmul.mubr.f32.gmra.mrb[100].mxu0 %v5788_v32  ;;  %v1734_v32 = vld [vmem:[%s5746_s8 + $0x30] sm:$0xff] }
 0x2dc   :  { %3783 = vmatprep.mubr.f32.mxu0 %v5789_v37  ;;  %v1735_v37 = vld [vmem:[%s5746_s8 + $0x38] sm:$0xff] }
 0x2df   :  { %3784 = vmatmul.mubr.f32.gmra.mrb[102].mxu0 %v5790_v38  ;;  %v1475_v38 = vld [vmem:[%s5745_s7 + $0x28] sm:$0xff] }
 0x376   :  { %v3720_v61 = vpop.f32.mrb[80].mxu0 }
 0x377   :  { %v1410_v56 = vsel %vm1408_vm2, %v3720_v61, 0.0  ;;  %v1369_v39 = vpop.f32.mrb[81].mxu0  ;;  %v4201_v61 = vpack.c.bf16 %v1735_v37, %v1734_v32 }
 0x378   :  { %v1409_v7 = vsel %vm1408_vm2, %v1369_v39, 0.0  ;;  %v2428_v39 = vld [vmem:[%s5747_s11] sm:$0xff] }
 0x379   :  { %v1411_v55 = vadd.f32 %v1410_v56, %v1409_v7  ;;  %v1477_v56 = vld [vmem:[%s5745_s7 + $0x38] sm:$0xff]  ;;  %v2429_v7 = vld [vmem:[%s5747_s11 + $0x8] sm:$0xff] }
 0x37e   :  { %v3723_v0 = vpop.f32.mrb[82].mxu0 }
 0x37f   :  { %v1379_v26 = vpop.f32.mrb[83].mxu0  ;;  %v1415_v25 = vsel %vm1414_vm3, %v3723_v0, 0.0  ;;  %v2430_v0 = vld [vmem:[%s5747_s11 + $0x10] sm:$0xff] }
 0x380   :  { %v1412_v58 = vsel %vm1408_vm2, %v1379_v26, 0.0  ;;  %v2431_v26 = vld [vmem:[%s5747_s11 + $0x18] sm:$0xff] }
 0x381   :  { %v1413_v15 = vadd.f32 %v1412_v58, %v1411_v55  ;;  %v4243_v55 = vpack.c.bf16 %v2429_v7, %v2428_v39 }
 0x383   :  { %v5350_v29 = vadd.f32 %v1415_v25, %v1413_v15  ;;  %v4247_v25 = vpack.c.bf16 %v2431_v26, %v2430_v0  ;;  %v1736_v26 = vld [vmem:[%s5748_s9] sm:$0xff] }
 0x386   :  { %v3726_v22 = vpop.f32.mrb[84].mxu0 }
 0x387   :  { %v1424_v12 = vsel %vm1408_vm2, %v3726_v22, 0.0  ;;  %v1389_v11 = vpop.f32.mrb[85].mxu0  ;;  %v2432_v22 = vld [vmem:[%s5747_s11 + $0x20] sm:$0xff] }
 0x388   :  { %v1423_v6 = vsel %vm1408_vm2, %v1389_v11, 0.0 }
 0x389   :  { %v1425_v17 = vadd.f32 %v1424_v12, %v1423_v6  ;;  %v2433_v12 = vld [vmem:[%s5747_s11 + $0x28] sm:$0xff] }
 0x38e   :  { %v3729_v57 = vpop.f32.mrb[86].mxu0 }
 0x38f   :  { %v1399_v9 = vpop.f32.mrb[87].mxu0  ;;  %v1428_v18 = vsel %vm1414_vm3, %v3729_v57, 0.0  ;;  %v2434_v57 = vld [vmem:[%s5747_s11 + $0x30] sm:$0xff] }
 0x390   :  { %v1426_v34 = vsel %vm1408_vm2, %v1399_v9, 0.0  ;;  %v2435_v9 = vld [vmem:[%s5747_s11 + $0x38] sm:$0xff] }
 0x391   :  { %v1427_v35 = vadd.f32 %v1426_v34, %v1425_v17  ;;  %v4251_v17 = vpack.c.bf16 %v2433_v12, %v2432_v22 }
 0x393   :  { %v5356_v10 = vadd.f32 %v1428_v18, %v1427_v35 }
 0x396   :  { %v3764_v20 = vpop.f32.mrb[88].mxu0 }
 0x397   :  { %v1544_v5 = vpop.f32.mrb[89].mxu0 }
 0x398   :  { %v4157_v53 = vpack.c.bf16 %v3764_v20, %v1544_v5  ;;  %v4255_v20 = vpack.c.bf16 %v2435_v9, %v2434_v57  ;;  %v1740_v57 = vld [vmem:[%s5748_s9 + $0x20] sm:$0xff] }
 0x39a   :  { %v3767_v60 = vpop.f32.mrb[90].mxu0  ;;  %4158 = vmatprep.subr.bf16.mxu1 %v4157_v53 }
 0x39b   :  { %v1554_v52 = vpop.f32.mrb[91].mxu0  ;;  %4160 = vmatpush3.bf16.msra.mxu1 %v4157_v53 }
 0x39c   :  { %v4161_v16 = vpack.c.bf16 %v3767_v60, %v1554_v52 }
 0x39e   :  { %v3770_v19 = vpop.f32.mrb[92].mxu0  ;;  %4162 = vmatprep.subr.bf16.mxu1 %v4161_v16 }
 0x39f   :  { %v1564_v62 = vpop.f32.mrb[93].mxu0  ;;  %4164 = vmatpush3.bf16.msra.mxu1 %v4161_v16 }
 0x3a0   :  { %v4165_v4 = vpack.c.bf16 %v3770_v19, %v1564_v62 }
 0x3a2   :  { %v3773_v42 = vpop.f32.mrb[94].mxu0  ;;  %4166 = vmatprep.subr.bf16.mxu1 %v4165_v4 }
 0x3a3   :  { %v1574_v8 = vpop.f32.mrb[95].mxu0  ;;  %4168 = vmatpush3.bf16.msra.mxu1 %v4165_v4 }
 0x3a4   :  { %v4169_v1 = vpack.c.bf16 %v3773_v42, %v1574_v8 }
 0x3a6   :  { %v3776_v33 = vpop.f32.mrb[96].mxu0  ;;  %4170 = vmatprep.subr.bf16.mxu1 %v4169_v1 }
 0x3a7   :  { %v1584_v46 = vpop.f32.mrb[97].mxu0  ;;  %4172 = vmatpush3.bf16.msra.mxu1 %v4169_v1 }
 0x3a8   :  { %v4173_v23 = vpack.c.bf16 %v3776_v33, %v1584_v46 }
 0x3aa   :  { %v3779_v36 = vpop.f32.mrb[98].mxu0  ;;  %4174 = vmatprep.subr.bf16.mxu1 %v4173_v23 }
 0x3ab   :  { %v1594_v40 = vpop.f32.mrb[99].mxu0  ;;  %4176 = vmatpush3.bf16.msra.mxu1 %v4173_v23  ;;  %v1737_v23 = vld [vmem:[%s5748_s9 + $0x8] sm:$0xff] }
 0x3ac   :  { %v4177_v28 = vpack.c.bf16 %v3779_v36, %v1594_v40  ;;  %3183 = vmatprep.mubr.msk.f32.mxu0 %vm2018_vm4, %v1737_v23  ;;  %v2436_v36 = vld [vmem:[%s5749_s12] sm:$0xff]  ;;  %v1746_v23 = vld [vmem:[%s5748_s9 + $0x50] sm:$0xff] }
 0x3ae   :  { %v3782_v30 = vpop.f32.mrb[100].mxu0  ;;  %4178 = vmatprep.subr.bf16.mxu1 %v4177_v28 }
 0x3af   :  { %v1604_v48 = vpop.f32.mrb[101].mxu0  ;;  %4180 = vmatpush3.bf16.msra.mxu1 %v4177_v28 }
 0x3b0   :  { %v4181_v49 = vpack.c.bf16 %v3782_v30, %v1604_v48 }
 0x3b2   :  { %v3785_v44 = vpop.f32.mrb[102].mxu0  ;;  %4182 = vmatprep.subr.bf16.mxu1 %v4181_v49 }
 0x3b3   :  { %v1614_v41 = vpop.f32.mrb[103].mxu0  ;;  %4184 = vmatpush3.bf16.msra.mxu1 %v4181_v49 }
 0x3b4   :  { %v4185_v54 = vpack.c.bf16 %v3785_v44, %v1614_v41 }
 0x3b6   :  { %4186 = vmatprep.subr.bf16.mxu1 %v4185_v54 }
 0x3b7   :  { %4188 = vmatpush3.bf16.msra.mxu1 %v4185_v54 }
 0x3b8   :  { %4190 = vmatprep.subr.bf16.mxu1 %v4189_v24 }
 0x3ba   :  { %3819 = vmatmul.mubr.f32.vlgmr.msra.gmra.mrb[80].mxu1 %v1471_v50 }
 0x3bb   :  { %3821 = vmatprep.mubr.f32.mxu1 %v1472_v3  ;;  %4192 = vmatpush3.bf16.msra.mxu1 %v4189_v24 }
 0x3bc   :  { %4194 = vmatprep.subr.bf16.mxu1 %v4193_v14 }
 0x3be   :  { %3822 = vmatmul.mubr.f32.gmra.mrb[82].mxu1 %v1473_v63 }
 0x3bf   :  { %3824 = vmatprep.mubr.f32.mxu1 %v1474_v21  ;;  %4196 = vmatpush3.bf16.msra.mxu1 %v4193_v14 }
 0x3c0   :  { %4198 = vmatprep.subr.bf16.mxu1 %v4197_v31 }
 0x3c2   :  { %3825 = vmatmul.mubr.f32.gmra.mrb[84].mxu1 %v1475_v38 }
 0x3c3   :  { %3827 = vmatprep.mubr.f32.mxu1 %v1476_v43  ;;  %4200 = vmatpush3.bf16.msra.mxu1 %v4197_v31 }
 0x3c4   :  { %4202 = vmatprep.subr.bf16.mxu1 %v4201_v61 }
 0x3c6   :  { %3828 = vmatmul.mubr.f32.gmra.mrb[86].mxu1 %v1477_v56 }
 0x3c7   :  { %4204 = vmatpush3.bf16.msra.mxu1 %v4201_v61 }
 0x3c8   :  { %4244 = vmatprep.subr.bf16.mxu1 %v4243_v55 }
 0x48d   :  { %v3820_v58 = vpop.f32.mrb[80].mxu1 }
 0x48e   :  { %v1689_v15 = vpop.f32.mrb[81].mxu1  ;;  %v1782_v62 = vmul.f32 %v3820_v58, %v3820_v58 }
 0x48f   :  { %3846 = vmatprep.mubr.msk.f32.mxu1 %vm531_vm0, %v1689_v15  ;;  %v1781_v16 = vmul.f32 %v1689_v15, %v1689_v15 }
 0x490   :  { %3847 = vmatmul.mubr.msk.f32.vlgmr.msra.gmra.mrb[88].mxu1 %vm531_vm0, %v3820_v58 }
 0x491   :  { %v3823_v11 = vpop.f32.mrb[82].mxu1  ;;  %4246 = vmatpush3.bf16.msra.mxu1 %v4243_v55 }
 0x492   :  { %v1699_v6 = vpop.f32.mrb[83].mxu1  ;;  %4248 = vmatprep.subr.bf16.mxu1 %v4247_v25  ;;  %v1784_v42 = vmul.f32 %v3823_v11, %v3823_v11 }
 0x493   :  { %3849 = vmatprep.mubr.msk.f32.mxu1 %vm531_vm0, %v1699_v6  ;;  %v1783_v4 = vmul.f32 %v1699_v6, %v1699_v6 }
 0x494   :  { %3850 = vmatmul.mubr.msk.f32.gmra.mrb[90].mxu1 %vm531_vm0, %v3823_v11 }
 0x495   :  { %v3826_v34 = vpop.f32.mrb[84].mxu1  ;;  %4250 = vmatpush3.bf16.msra.mxu1 %v4247_v25 }
 0x496   :  { %v1790_v35 = vmul.f32 %v3826_v34, %v3820_v58  ;;  %v1709_v18 = vpop.f32.mrb[85].mxu1  ;;  %4252 = vmatprep.subr.bf16.mxu1 %v4251_v17  ;;  %v1786_v1 = vmul.f32 %v3826_v34, %v3826_v34 }
 0x497   :  { %v1789_v5 = vmul.f32 %v1709_v18, %v1689_v15  ;;  %3852 = vmatprep.mubr.msk.f32.mxu1 %vm531_vm0, %v1709_v18  ;;  %v1785_v8 = vmul.f32 %v1709_v18, %v1709_v18 }
 0x498   :  { %3853 = vmatmul.mubr.msk.f32.gmra.mrb[92].mxu1 %vm531_vm0, %v3826_v34 }
 0x499   :  { %v3829_v53 = vpop.f32.mrb[86].mxu1  ;;  %4254 = vmatpush3.bf16.msra.mxu1 %v4251_v17 }
 0x49a   :  { %v1792_v60 = vmul.f32 %v3829_v53, %v3823_v11  ;;  %v1719_v52 = vpop.f32.mrb[87].mxu1  ;;  %4256 = vmatprep.subr.bf16.mxu1 %v4255_v20  ;;  %v1788_v46 = vmul.f32 %v3829_v53, %v3829_v53 }
 0x49b   :  { %v1791_v19 = vmul.f32 %v1719_v52, %v1699_v6  ;;  %3855 = vmatprep.mubr.msk.f32.mxu1 %vm531_vm0, %v1719_v52  ;;  %v1787_v33 = vmul.f32 %v1719_v52, %v1719_v52 }
 0x49c   :  { %3856 = vmatmul.mubr.msk.f32.gmra.mrb[94].mxu1 %vm531_vm0, %v3829_v53 }
 0x49d   :  { %3858 = vmatprep.mubr.msk.f32.mxu1 %vm531_vm0, %v1781_v16  ;;  %4258 = vmatpush3.bf16.msra.mxu1 %v4255_v20  ;;  %v2643_v20 = vld [vmem:[%s5750_s13 + $0x8] sm:$0xff] }
 0x4a0   :  { %3859 = vmatmul.mubr.msk.f32.gmra.mrb[96].mxu1 %vm531_vm0, %v1782_v62  ;;  %v2644_v62 = vld [vmem:[%s5750_s13 + $0x10] sm:$0xff] }
 0x4a1   :  { %3861 = vmatprep.mubr.msk.f32.mxu1 %vm531_vm0, %v1783_v4  ;;  %v2645_v4 = vld [vmem:[%s5750_s13 + $0x18] sm:$0xff] }
 0x4a4   :  { %3862 = vmatmul.mubr.msk.f32.gmra.mrb[98].mxu1 %vm531_vm0, %v1784_v42  ;;  %v1744_v42 = vld [vmem:[%s5748_s9 + $0x40] sm:$0xff] }
 0x4a5   :  { %3864 = vmatprep.mubr.msk.f32.mxu1 %vm531_vm0, %v1785_v8  ;;  %v2437_v8 = vld [vmem:[%s5749_s12 + $0x8] sm:$0xff] }
 0x4a8   :  { %3865 = vmatmul.mubr.msk.f32.gmra.mrb[100].mxu1 %vm531_vm0, %v1786_v1  ;;  %v1747_v1 = vld [vmem:[%s5748_s9 + $0x58] sm:$0xff] }
 0x4a9   :  { %3867 = vmatprep.mubr.msk.f32.mxu1 %vm531_vm0, %v1787_v33  ;;  %v2438_v33 = vld [vmem:[%s5749_s12 + $0x10] sm:$0xff] }
 0x4ac   :  { %3868 = vmatmul.mubr.msk.f32.gmra.mrb[102].mxu1 %vm531_vm0, %v1788_v46  ;;  %v4279_v46 = vpack.c.bf16 %v2645_v4, %v2644_v62 }
 0x4ad   :  { %3870 = vmatprep.mubr.msk.f32.mxu1 %vm531_vm0, %v1789_v5 }
 0x4b0   :  { %3871 = vmatmul.mubr.msk.f32.gmra.mrb[104].mxu1 %vm531_vm0, %v1790_v35 }
 0x4b1   :  { %3873 = vmatprep.mubr.msk.f32.mxu1 %vm531_vm0, %v1791_v19 }
 0x4b4   :  { %3874 = vmatmul.mubr.msk.f32.gmra.mrb[106].mxu1 %vm531_vm0, %v1792_v60 }
 0x4b5   :  { %3908 = vmatprep.mubr.msk.f32.mxu1 %vm531_vm0, %v1689_v15  ;;  %v1739_v15 = vld [vmem:[%s5748_s9 + $0x18] sm:$0xff] }
 0x4b8   :  { %3909 = vmatmul.mubr.msk.f32.vlgmr.msra.gmra.mrb[108].mxu1 %vm531_vm0, %v3820_v58 }
 0x4b9   :  { %3911 = vmatprep.mubr.msk.f32.mxu1 %vm531_vm0, %v1699_v6 }
 0x4bc   :  { %3912 = vmatmul.mubr.msk.f32.gmra.mrb[110].mxu1 %vm531_vm0, %v3823_v11  ;;  %v1741_v11 = vld [vmem:[%s5748_s9 + $0x28] sm:$0xff] }
 0x4bd   :  { %3914 = vmatprep.mubr.msk.f32.mxu1 %vm531_vm0, %v1709_v18  ;;  %v2642_v18 = vld [vmem:[%s5750_s13] sm:$0xff] }
 0x4be   :  { %v4275_v19 = vpack.c.bf16 %v2643_v20, %v2642_v18 }
 0x4c0   :  { %3915 = vmatmul.mubr.msk.f32.gmra.mrb[112].mxu1 %vm531_vm0, %v3826_v34  ;;  %v1743_v34 = vld [vmem:[%s5748_s9 + $0x38] sm:$0xff] }
 0x4c1   :  { %3917 = vmatprep.mubr.msk.f32.mxu1 %vm531_vm0, %v1719_v52  ;;  %v1745_v52 = vld [vmem:[%s5748_s9 + $0x48] sm:$0xff] }
 0x4c4   :  { %3918 = vmatmul.mubr.msk.f32.gmra.mrb[114].mxu1 %vm531_vm0, %v3829_v53  ;;  %v1742_v53 = vld [vmem:[%s5748_s9 + $0x30] sm:$0xff] }
 0x4c5   :  { %3936 = vmatprep.mubr.msk.f32.mxu1 %vm531_vm0, %v2436_v36  ;;  %v2439_v36 = vld [vmem:[%s5749_s12 + $0x18] sm:$0xff] }
 0x563   :  { %v3848_v40 = vpop.f32.mrb[88].mxu1 }
 0x564   :  { %v1919_v28 = vpop.f32.mrb[89].mxu1 }
 0x565   :  { %v4206_v30 = vpack.c.bf16 %v3848_v40, %v1919_v28  ;;  %v1749_v40 = vld [vmem:[%s5748_s9 + $0x68] sm:$0xff]  ;;  %v1748_v28 = vld [vmem:[%s5748_s9 + $0x60] sm:$0xff] }
 0x567   :  { %v3851_v48 = vpop.f32.mrb[90].mxu1  ;;  %4207 = vmatpush1.bf16.msra.mxu0 %v4206_v30  ;;  %v1751_v30 = vld [vmem:[%s5748_s9 + $0x78] sm:$0xff] }
 0x568   :  { %v1929_v49 = vpop.f32.mrb[91].mxu1  ;;  %4208 = vmatprep.subr.bf16.mxu0 %v5780_v27 }
 0x569   :  { %v4209_v2 = vpack.c.bf16 %v3851_v48, %v1929_v49  ;;  %v1750_v48 = vld [vmem:[%s5748_s9 + $0x70] sm:$0xff]  ;;  %v1753_v49 = vld [vmem:[%s5748_s9 + $0x88] sm:$0xff] }
 0x56b   :  { %v3854_v51 = vpop.f32.mrb[92].mxu1  ;;  %4210 = vmatpush1.bf16.msra.mxu0 %v4209_v2  ;;  %v1752_v2 = vld [vmem:[%s5748_s9 + $0x80] sm:$0xff] }
 0x56c   :  { %v1939_v44 = vpop.f32.mrb[93].mxu1  ;;  %4211 = vmatprep.subr.bf16.mxu0 %v5780_v27 }
 0x56d   :  { %v4212_v41 = vpack.c.bf16 %v3854_v51, %v1939_v44  ;;  %v1755_v51 = vld [vmem:[%s5748_s9 + $0x98] sm:$0xff]  ;;  %v1754_v44 = vld [vmem:[%s5748_s9 + $0x90] sm:$0xff] }
 0x56f   :  { %v3857_v54 = vpop.f32.mrb[94].mxu1  ;;  %4213 = vmatpush1.bf16.msra.mxu0 %v4212_v41  ;;  %v1757_v41 = vld [vmem:[%s5748_s9 + $0xa8] sm:$0xff] }
 0x570   :  { %v1949_v24 = vpop.f32.mrb[95].mxu1  ;;  %4214 = vmatprep.subr.bf16.mxu0 %v5780_v27 }
 0x571   :  { %v4215_v45 = vpack.c.bf16 %v3857_v54, %v1949_v24  ;;  %v1756_v54 = vld [vmem:[%s5748_s9 + $0xa0] sm:$0xff]  ;;  %v1759_v24 = vld [vmem:[%s5748_s9 + $0xb8] sm:$0xff] }
 0x573   :  { %v3860_v47 = vpop.f32.mrb[96].mxu1  ;;  %4216 = vmatpush1.bf16.msra.mxu0 %v4215_v45  ;;  %v1758_v45 = vld [vmem:[%s5748_s9 + $0xb0] sm:$0xff] }
 0x574   :  { %v1959_v50 = vpop.f32.mrb[97].mxu1  ;;  %4217 = vmatprep.subr.bf16.mxu0 %v5780_v27 }
 0x575   :  { %v4218_v3 = vpack.c.bf16 %v3860_v47, %v1959_v50  ;;  %v1761_v47 = vld [vmem:[%s5748_s9 + $0xc8] sm:$0xff]  ;;  %v1760_v50 = vld [vmem:[%s5748_s9 + $0xc0] sm:$0xff] }
 0x577   :  { %v3863_v14 = vpop.f32.mrb[98].mxu1  ;;  %4219 = vmatpush1.bf16.msra.mxu0 %v4218_v3  ;;  %v1763_v3 = vld [vmem:[%s5748_s9 + $0xd8] sm:$0xff] }
 0x578   :  { %v1969_v59 = vpop.f32.mrb[99].mxu1  ;;  %4220 = vmatprep.subr.bf16.mxu0 %v5780_v27 }
 0x579   :  { %v4221_v13 = vpack.c.bf16 %v3863_v14, %v1969_v59  ;;  %v1762_v14 = vld [vmem:[%s5748_s9 + $0xd0] sm:$0xff]  ;;  %v1765_v59 = vld [vmem:[%s5748_s9 + $0xe8] sm:$0xff] }
 0x57b   :  { %v3866_v63 = vpop.f32.mrb[100].mxu1  ;;  %4222 = vmatpush1.bf16.msra.mxu0 %v4221_v13  ;;  %v1764_v13 = vld [vmem:[%s5748_s9 + $0xe0] sm:$0xff] }
 0x57c   :  { %v1979_v21 = vpop.f32.mrb[101].mxu1  ;;  %4223 = vmatprep.subr.bf16.mxu0 %v5780_v27 }
 0x57d   :  { %v4224_v31 = vpack.c.bf16 %v3866_v63, %v1979_v21  ;;  %v1767_v63 = vld [vmem:[%s5748_s9 + $0xf8] sm:$0xff]  ;;  %v1766_v21 = vld [vmem:[%s5748_s9 + $0xf0] sm:$0xff] }
 0x57f   :  { %v3869_v32 = vpop.f32.mrb[102].mxu1  ;;  %4225 = vmatpush1.bf16.msra.mxu0 %v4224_v31  ;;  %v1769_v31 = vld [vmem:[%s5748_s9 + $0x108] sm:$0xff] }
 0x580   :  { %v1989_v37 = vpop.f32.mrb[103].mxu1  ;;  %4226 = vmatprep.subr.bf16.mxu0 %v5780_v27 }
 0x581   :  { %v4227_v38 = vpack.c.bf16 %v3869_v32, %v1989_v37  ;;  %v1768_v32 = vld [vmem:[%s5748_s9 + $0x100] sm:$0xff]  ;;  %v1771_v37 = vld [vmem:[%s5748_s9 + $0x118] sm:$0xff] }
 0x583   :  { %v3872_v43 = vpop.f32.mrb[104].mxu1  ;;  %4228 = vmatpush1.bf16.msra.mxu0 %v4227_v38  ;;  %v1770_v38 = vld [vmem:[%s5748_s9 + $0x110] sm:$0xff] }
 0x584   :  { %v1999_v61 = vpop.f32.mrb[105].mxu1  ;;  %4229 = vmatprep.subr.bf16.mxu0 %v5780_v27 }
 0x585   :  { %v4230_v56 = vpack.c.bf16 %v3872_v43, %v1999_v61  ;;  %v1773_v43 = vld [vmem:[%s5748_s9 + $0x128] sm:$0xff]  ;;  %v1772_v61 = vld [vmem:[%s5748_s9 + $0x120] sm:$0xff] }
 0x587   :  { %v3875_v39 = vpop.f32.mrb[106].mxu1  ;;  %4231 = vmatpush1.bf16.msra.mxu0 %v4230_v56  ;;  %v1775_v56 = vld [vmem:[%s5748_s9 + $0x138] sm:$0xff] }
 0x588   :  { %v2009_v7 = vpop.f32.mrb[107].mxu1  ;;  %4232 = vmatprep.subr.bf16.mxu0 %v5780_v27  ;;  %v1738_v27 = vld [vmem:[%s5748_s9 + $0x10] sm:$0xff] }
 0x589   :  { %v4233_v55 = vpack.c.bf16 %v3875_v39, %v2009_v7  ;;  %v1774_v39 = vld [vmem:[%s5748_s9 + $0x130] sm:$0xff]  ;;  %v1776_v7 = vld [vmem:[%s5751_s10] sm:$0xff] }
 0x58b   :  { %4234 = vmatpush1.bf16.msra.mxu0 %v4233_v55  ;;  %v3910_v0 = vpop.f32.mrb[108].mxu1  ;;  %v1777_v55 = vld [vmem:[%s5751_s10 + $0x8] sm:$0xff] }
 0x58c   :  { %v2506_v58 = vpop.f32.mrb[109].mxu1 }
 0x58d   :  { %v4259_v25 = vpack.c.bf16 %v3910_v0, %v2506_v58  ;;  %v4235_v0 = vpack.c.bf16 %v1777_v55, %v1776_v7  ;;  %v1779_v58 = vld [vmem:[%s5751_s10 + $0x18] sm:$0xff] }
 0x58e   :  { %2144 = vmatmul.mubr.f32.vlgmr.msra.gmra.mrb[104].mxu0 %v1736_v26  ;;  %v1778_v26 = vld [vmem:[%s5751_s10 + $0x10] sm:$0xff] }
 0x58f   :  { %v3913_v22 = vpop.f32.mrb[110].mxu1  ;;  %4260 = vmatprep.subr.bf16.mxu1 %v4259_v25  ;;  %3184 = vmatprep.mubr.msk.f32.mxu0 %vm2018_vm4, %v1739_v15  ;;  %v4239_v15 = vpack.c.bf16 %v1779_v58, %v1778_v26 }
 0x590   :  { %v2516_v12 = vpop.f32.mrb[111].mxu1  ;;  %4262 = vmatpush3.bf16.msra.mxu1 %v4259_v25  ;;  %4236 = vmatprep.subr.bf16.mxu0 %v4235_v0  ;;  %v1780_v25 = vld [vmem:[%s5751_s10 + $0x20] sm:$0xff] }
 0x591   :  { %v4263_v6 = vpack.c.bf16 %v3913_v22, %v2516_v12  ;;  %4238 = vmatpush3.bf16.msra.mxu0 %v4235_v0 }
 0x592   :  { %2149 = vmatmul.mubr.f32.gmra.mrb[106].mxu0 %v1738_v27  ;;  %4240 = vmatprep.subr.bf16.mxu0 %v4239_v15 }
 0x593   :  { %v3916_v17 = vpop.f32.mrb[112].mxu1  ;;  %4264 = vmatprep.subr.bf16.mxu1 %v4263_v6  ;;  %3185 = vmatprep.mubr.msk.f32.mxu0 %vm2018_vm4, %v1741_v11 }
 0x594   :  { %v2526_v9 = vpop.f32.mrb[113].mxu1  ;;  %4266 = vmatpush3.bf16.msra.mxu1 %v4263_v6 }
 0x595   :  { %v4267_v35 = vpack.c.bf16 %v3916_v17, %v2526_v9  ;;  %4242 = vmatpush3.bf16.msra.mxu0 %v4239_v15 }
 0x596   :  { %2154 = vmatmul.mubr.f32.gmra.mrb[108].mxu0 %v1740_v57  ;;  %3884 = vmatprep.subr.mxu0 %v1780_v25 }
 0x597   :  { %v3919_v5 = vpop.f32.mrb[114].mxu1  ;;  %4268 = vmatprep.subr.bf16.mxu1 %v4267_v35  ;;  %3186 = vmatprep.mubr.msk.f32.mxu0 %vm2018_vm4, %v1743_v34 }
 0x598   :  { %v2536_v60 = vpop.f32.mrb[115].mxu1  ;;  %4270 = vmatpush3.bf16.msra.mxu1 %v4267_v35 }
 0x599   :  { %v4271_v16 = vpack.c.bf16 %v3919_v5, %v2536_v60  ;;  %3885 = vmatpush3.msra.mxu0 %v1780_v25 }
 0x59a   :  { %2159 = vmatmul.mubr.f32.gmra.mrb[110].mxu0 %v1742_v53 }
 0x59b   :  { %4272 = vmatprep.subr.bf16.mxu1 %v4271_v16  ;;  %3187 = vmatprep.mubr.msk.f32.mxu0 %vm2018_vm4, %v1745_v52 }
 0x59c   :  { %4274 = vmatpush3.bf16.msra.mxu1 %v4271_v16 }
 0x59d   :  { %4276 = vmatprep.subr.bf16.mxu1 %v4275_v19 }
 0x59e   :  { %2164 = vmatmul.mubr.f32.gmra.mrb[112].mxu0 %v1744_v42 }
 0x59f   :  { %3937 = vmatmul.mubr.msk.f32.vlgmr.msra.gmra.mrb[116].mxu1 %vm531_vm0, %v2437_v8  ;;  %3188 = vmatprep.mubr.msk.f32.mxu0 %vm2018_vm4, %v1747_v1 }
 0x5a0   :  { %3939 = vmatprep.mubr.msk.f32.mxu1 %vm531_vm0, %v2438_v33  ;;  %4278 = vmatpush3.bf16.msra.mxu1 %v4275_v19 }
 0x5a1   :  { %4280 = vmatprep.subr.bf16.mxu1 %v4279_v46 }
 0x5a2   :  { %2169 = vmatmul.mubr.f32.gmra.mrb[114].mxu0 %v1746_v23 }
 0x5a3   :  { %3940 = vmatmul.mubr.msk.f32.gmra.mrb[118].mxu1 %vm531_vm0, %v2439_v36  ;;  %3189 = vmatprep.mubr.msk.f32.mxu0 %vm2018_vm4, %v1749_v40 }
 0x5a4   :  { %4282 = vmatpush3.bf16.msra.mxu1 %v4279_v46 }
 0x5a6   :  { %2174 = vmatmul.mubr.f32.gmra.mrb[116].mxu0 %v1748_v28 }
 0x5a7   :  { %3190 = vmatprep.mubr.msk.f32.mxu0 %vm2018_vm4, %v1751_v30 }
 0x5aa   :  { %2179 = vmatmul.mubr.f32.gmra.mrb[118].mxu0 %v1750_v48 }
 0x5ab   :  { %3191 = vmatprep.mubr.msk.f32.mxu0 %vm2018_vm4, %v1753_v49 }
 0x5ae   :  { %2184 = vmatmul.mubr.f32.gmra.mrb[120].mxu0 %v1752_v2 }
 0x5af   :  { %3192 = vmatprep.mubr.msk.f32.mxu0 %vm2018_vm4, %v1755_v51 }
 0x5b2   :  { %2189 = vmatmul.mubr.f32.gmra.mrb[122].mxu0 %v1754_v44 }
 0x5b3   :  { %3193 = vmatprep.mubr.msk.f32.mxu0 %vm2018_vm4, %v1757_v41 }
 0x5b6   :  { %2194 = vmatmul.mubr.f32.gmra.mrb[124].mxu0 %v1756_v54 }
 0x5b7   :  { %3194 = vmatprep.mubr.msk.f32.mxu0 %vm2018_vm4, %v1759_v24 }
 0x5ba   :  { %2199 = vmatmul.mubr.f32.gmra.mrb[126].mxu0 %v1758_v45 }
 0x5bb   :  { %3195 = vmatprep.mubr.msk.f32.mxu0 %vm2018_vm4, %v1761_v47 }
 0x5be   :  { %2204 = vmatmul.mubr.f32.gmra.mrb[128].mxu0 %v1760_v50 }
 0x5bf   :  { %3196 = vmatprep.mubr.msk.f32.mxu0 %vm2018_vm4, %v1763_v3 }
 0x5c2   :  { %2209 = vmatmul.mubr.f32.gmra.mrb[130].mxu0 %v1762_v14 }
 0x5c3   :  { %3197 = vmatprep.mubr.msk.f32.mxu0 %vm2018_vm4, %v1765_v59 }
 0x5c6   :  { %2214 = vmatmul.mubr.f32.gmra.mrb[132].mxu0 %v1764_v13 }
 0x5c7   :  { %3198 = vmatprep.mubr.msk.f32.mxu0 %vm2018_vm4, %v1767_v63 }
 0x5ca   :  { %2219 = vmatmul.mubr.f32.gmra.mrb[134].mxu0 %v1766_v21 }
 0x5cb   :  { %3199 = vmatprep.mubr.msk.f32.mxu0 %vm2018_vm4, %v1769_v31 }
 0x5ce   :  { %2224 = vmatmul.mubr.f32.gmra.mrb[136].mxu0 %v1768_v32 }
 0x5cf   :  { %3200 = vmatprep.mubr.msk.f32.mxu0 %vm2018_vm4, %v1771_v37 }
 0x5d2   :  { %2229 = vmatmul.mubr.f32.gmra.mrb[138].mxu0 %v1770_v38 }
 0x5d3   :  { %3201 = vmatprep.mubr.msk.f32.mxu0 %vm2018_vm4, %v1773_v43 }
 0x5d6   :  { %2234 = vmatmul.mubr.f32.gmra.mrb[140].mxu0 %v1772_v61 }
 0x5d7   :  { %3202 = vmatprep.mubr.msk.f32.mxu0 %vm2018_vm4, %v1775_v56 }
 0x5da   :  { %2239 = vmatmul.mubr.f32.gmra.mrb[142].mxu0 %v1774_v39 }
 0x661   :  { %v2145_v22 = vpop.f32.mrb[104].mxu0 }
 0x662   :  { %v2147_v27 = vpop.f32.mrb[105].mxu0  ;;  %v2244_v40 = vmul.f32 %v2145_v22, %v2145_v22 }
 0x665   :  { %v2150_v12 = vpop.f32.mrb[106].mxu0 }
 0x666   :  { %v2152_v11 = vpop.f32.mrb[107].mxu0  ;;  %v2245_v2 = vmul.f32 %v2150_v12, %v2150_v12 }
 0x669   :  { %v2155_v6 = vpop.f32.mrb[108].mxu0 }
 0x66a   :  { %v2157_v17 = vpop.f32.mrb[109].mxu0  ;;  %v2246_v54 = vmul.f32 %v2155_v6, %v2155_v6 }
 0x66d   :  { %v2160_v57 = vpop.f32.mrb[110].mxu0 }
 0x66e   :  { %v2162_v9 = vpop.f32.mrb[111].mxu0  ;;  %v2247_v50 = vmul.f32 %v2160_v57, %v2160_v57 }
 0x671   :  { %v2165_v34 = vpop.f32.mrb[112].mxu0 }
 0x672   :  { %v3938_v35 = vpop.f32.mrb[116].mxu1  ;;  %v5647_v18 = vmul.f32 %v2165_v34, %v2145_v22  ;;  %v2167_v20 = vpop.f32.mrb[113].mxu0  ;;  %v2248_v13 = vmul.f32 %v2165_v34, %v2165_v34 }
 0x673   :  { %v2623_v5 = vpop.f32.mrb[117].mxu1  ;;  %v2658_v46 = vmul.f32 %v3938_v35, %v3938_v35 }
 0x674   :  { %3950 = vmatprep.mubr.msk.f32.mxu1 %vm2018_vm4, %v2623_v5  ;;  %v2657_v4 = vmul.f32 %v2623_v5, %v2623_v5 }
 0x675   :  { %3951 = vmatmul.mubr.msk.f32.vlgmr.msra.gmra.mrb[120].mxu1 %vm2018_vm4, %v3938_v35  ;;  %v2170_v53 = vpop.f32.mrb[114].mxu0 }
 0x676   :  { %v3941_v60 = vpop.f32.mrb[118].mxu1  ;;  %v5651_v52 = vmul.f32 %v2170_v53, %v2150_v12  ;;  %v2172_v16 = vpop.f32.mrb[115].mxu0  ;;  %v2249_v32 = vmul.f32 %v2170_v53, %v2170_v53 }
 0x677   :  { %v2662_v19 = vmul.f32 %v3941_v60, %v3938_v35  ;;  %v2633_v62 = vpop.f32.mrb[119].mxu1  ;;  %v2660_v48 = vmul.f32 %v3941_v60, %v3941_v60 }
 0x678   :  { %v2661_v42 = vmul.f32 %v2633_v62, %v2623_v5  ;;  %3953 = vmatprep.mubr.msk.f32.mxu1 %vm2018_vm4, %v2633_v62  ;;  %v2659_v23 = vmul.f32 %v2633_v62, %v2633_v62 }
 0x679   :  { %3954 = vmatmul.mubr.msk.f32.gmra.mrb[122].mxu1 %vm2018_vm4, %v3941_v60  ;;  %v2175_v8 = vpop.f32.mrb[116].mxu0 }
 0x67a   :  { %3956 = vmatprep.mubr.msk.f32.mxu1 %vm2018_vm4, %v2657_v4  ;;  %v5656_v1 = vmul.f32 %v2175_v8, %v2155_v6  ;;  %v2177_v33 = vpop.f32.mrb[117].mxu0  ;;  %v2250_v56 = vmul.f32 %v2175_v8, %v2175_v8 }
 0x67d   :  { %3957 = vmatmul.mubr.msk.f32.gmra.mrb[124].mxu1 %vm2018_vm4, %v2658_v46  ;;  %v2180_v36 = vpop.f32.mrb[118].mxu0 }
 0x67e   :  { %3959 = vmatprep.mubr.msk.f32.mxu1 %vm2018_vm4, %v2659_v23  ;;  %v5660_v28 = vmul.f32 %v2180_v36, %v2160_v57  ;;  %v2182_v30 = vpop.f32.mrb[119].mxu0  ;;  %v2251_v58 = vmul.f32 %v2180_v36, %v2180_v36 }
 0x681   :  { %3960 = vmatmul.mubr.msk.f32.gmra.mrb[126].mxu1 %vm2018_vm4, %v2660_v48  ;;  %v2185_v49 = vpop.f32.mrb[120].mxu0 }
 0x682   :  { %3962 = vmatprep.mubr.msk.f32.mxu1 %vm2018_vm4, %v2661_v42  ;;  %v2256_v51 = vsub.f32 %v2185_v49, %v2244_v40  ;;  %v2187_v44 = vpop.f32.mrb[121].mxu0 }
 0x685   :  { %3963 = vmatmul.mubr.msk.f32.gmra.mrb[128].mxu1 %vm2018_vm4, %v2662_v19  ;;  %v2190_v41 = vpop.f32.mrb[122].mxu0 }
 0x686   :  { %v2257_v24 = vsub.f32 %v2190_v41, %v2245_v2  ;;  %v2192_v45 = vpop.f32.mrb[123].mxu0 }
 0x689   :  { %v2195_v47 = vpop.f32.mrb[124].mxu0 }
 0x68a   :  { %v2258_v3 = vsub.f32 %v2195_v47, %v2246_v54  ;;  %v2197_v14 = vpop.f32.mrb[125].mxu0 }
 0x68d   :  { %v2200_v59 = vpop.f32.mrb[126].mxu0 }
 0x68e   :  { %v2259_v63 = vsub.f32 %v2200_v59, %v2247_v50  ;;  %v2202_v21 = vpop.f32.mrb[127].mxu0 }
 0x691   :  { %v2205_v31 = vpop.f32.mrb[128].mxu0 }
 0x692   :  { %v2260_v37 = vsub.f32 %v2205_v31, %v2248_v13  ;;  %v2207_v38 = vpop.f32.mrb[129].mxu0 }
 0x694   :  { %v2276_v43 = vadd.f32 %v2260_v37, %v2256_v51 }
 0x695   :  { %v2210_v61 = vpop.f32.mrb[130].mxu0 }
 0x696   :  { %v2261_v39 = vsub.f32 %v2210_v61, %v2249_v32  ;;  %v2212_v7 = vpop.f32.mrb[131].mxu0  ;;  %v2280_v55 = vadd.f32 0.0009, %v2276_v43  ;;  %v2647_v61 = vld [vmem:[%s5752_s14 + $0x8] sm:$0xff] }
 0x697   :  { %v2650_v7 = vld [vmem:[%s5752_s14 + $0x20] sm:$0xff] }
 0x698   :  { %v2277_v0 = vadd.f32 %v2261_v39, %v2257_v24  ;;  %4320 = vrcp.f32 %v2280_v55  ;;  %v2646_v24 = vld [vmem:[%s5752_s14] sm:$0xff]  ;;  %v2649_v39 = vld [vmem:[%s5752_s14 + $0x18] sm:$0xff]  ;;  %v2651_v55 = vld [vmem:[%s5752_s14 + $0x28] sm:$0xff] }
 0x699   :  { %v2215_v26 = vpop.f32.mrb[132].mxu0  ;;  %3985 = vmatprep.mubr.msk.f32.mxu1 %vm2808_vm6, %v2646_v24 }
 0x69a   :  { %v2262_v15 = vsub.f32 %v2215_v26, %v2250_v56  ;;  %v2217_v25 = vpop.f32.mrb[133].mxu0  ;;  %v2281_v22 = vadd.f32 0.0009, %v2277_v0  ;;  %v2648_v56 = vld [vmem:[%s5752_s14 + $0x10] sm:$0xff]  ;;  %v2653_v26 = vld [vmem:[%s5752_s14 + $0x38] sm:$0xff] }
 0x69b   :  { %v2652_v0 = vld [vmem:[%s5752_s14 + $0x30] sm:$0xff]  ;;  %v2655_v25 = vld [vmem:[%s5752_s14 + $0x48] sm:$0xff] }
 0x69c   :  { %v2278_v27 = vadd.f32 %v2262_v15, %v2258_v3  ;;  %4322 = vrcp.f32 %v2281_v22  ;;  %v1417_v15 = vrot.slane %v5350_v29, 4 }
 0x69d   :  { %v2220_v12 = vpop.f32.mrb[134].mxu0 }
 0x69e   :  { %v2263_v11 = vsub.f32 %v2220_v12, %v2251_v58  ;;  %v2222_v6 = vpop.f32.mrb[135].mxu0  ;;  %v2282_v17 = vadd.f32 0.0009, %v2278_v27  ;;  %v2654_v58 = vld [vmem:[%s5752_s14 + $0x40] sm:$0xff]  ;;  %v1418_v22 = vadd.f32 %v1417_v15, %v5350_v29  ;;  %v1430_v12 = vrot.slane %v5356_v10, 4 }
 0x6a0   :  { %v2279_v57 = vadd.f32 %v2263_v11, %v2259_v63  ;;  %4324 = vrcp.f32 %v2282_v17  ;;  %v1419_v27 = vrot.slane %v1418_v22, 2  ;;  %v1431_v6 = vadd.f32 %v1430_v12, %v5356_v10 }
 0x6a1   :  { %v2225_v9 = vpop.f32.mrb[136].mxu0 }
 0x6a2   :  { %v2264_v34 = vsub.f32 %v2225_v9, %v5647_v18  ;;  %v2227_v35 = vpop.f32.mrb[137].mxu0  ;;  %v2283_v20 = vadd.f32 0.0009, %v2279_v57  ;;  %v4321_v53 = vpop.eup %4320  ;;  %v1420_v11 = vadd.f32 %v1419_v27, %v1418_v22  ;;  %v1432_v57 = vrot.slane %v1431_v6, 2 }
 0x6a4   :  { %v2268_v5 = vmul.f32 2.0, %v2264_v34  ;;  %4326 = vrcp.f32 %v2283_v20  ;;  %v1421_v17 = vrot.slane %v1420_v11, 1  ;;  %v1433_v34 = vadd.f32 %v1432_v57, %v1431_v6 }
 0x6a5   :  { %v2230_v60 = vpop.f32.mrb[138].mxu0 }
 0x6a6   :  { %v2272_v16 = vadd.f32 0.0009, %v2268_v5  ;;  %v2265_v19 = vsub.f32 %v2230_v60, %v5651_v52  ;;  %v2232_v62 = vpop.f32.mrb[139].mxu0  ;;  %v4323_v8 = vpop.eup %4322  ;;  %v1422_v9 = vadd.f32 %v1421_v17, %v1420_v11  ;;  %v1434_v29 = vrot.slane %v1433_v34, 1  ;;  %v2656_v11 = vld [vmem:[%s5753_s15] sm:$0xff] }
 0x6a8   :  { %v2285_v4 = vmul.f32 %v4321_v53, %v2272_v16  ;;  %v2269_v42 = vmul.f32 2.0, %v2265_v19  ;;  %v1436_v60 = vmax.f32 %v1422_v9, 0.0 }
 0x6a9   :  { %v2235_v33 = vpop.f32.mrb[140].mxu0 }
 0x6aa   :  { %v2273_v46 = vadd.f32 0.0009, %v2269_v42  ;;  %v2266_v23 = vsub.f32 %v2235_v33, %v5656_v1  ;;  %v2237_v18 = vpop.f32.mrb[141].mxu0  ;;  %3886 = vmatprep.mubr.msk.f32.mxu0 %vm2292_vm5, %v2285_v4  ;;  %v4325_v30 = vpop.eup %4324  ;;  %v1440_v62 = vmax.f32 %v1436_v60, 1e-30  ;;  %v1435_v4 = vadd.f32 %v1434_v29, %v1433_v34 }
 0x6ab   :  { %vm1438_vm8 = vcmp.gt.f32.partialorder %v1436_v60, 0.0 }
 0x6ac   :  { %v2287_v36 = vmul.f32 %v4323_v8, %v2273_v46  ;;  %v2270_v40 = vmul.f32 2.0, %v2266_v23  ;;  %4328 = vlog2.f32 %v1440_v62  ;;  %v1437_v18 = vmax.f32 %v1435_v4, 0.0 }
 0x6ad   :  { %v2240_v48 = vpop.f32.mrb[142].mxu0 }
 0x6ae   :  { %v2274_v49 = vadd.f32 0.0009, %v2270_v40  ;;  %v2267_v52 = vsub.f32 %v2240_v48, %v5660_v28  ;;  %3887 = vmatmul.mubr.msk.f32.vlgmr.msra.gmra.mrb[144].mxu0 %vm2292_vm5, %v2287_v36  ;;  %v2242_v2 = vpop.f32.mrb[143].mxu0  ;;  %v4327_v41 = vpop.eup %4326  ;;  %vm1439_vm10 = vcmp.gt.f32.partialorder %v1437_v18, 0.0 }
 0x6b0   :  { %v2289_v51 = vmul.f32 %v4325_v30, %v2274_v49  ;;  %v2271_v44 = vmul.f32 2.0, %v2267_v52  ;;  %v1441_v49 = vmax.f32 %v1437_v18, 1e-30 }
 0x6b2   :  { %v2275_v54 = vadd.f32 0.0009, %v2271_v44  ;;  %3889 = vmatprep.mubr.msk.f32.mxu0 %vm2292_vm5, %v2289_v51  ;;  %4330 = vlog2.f32 %v1441_v49 }
 0x6b4   :  { %v2291_v1 = vmul.f32 %v4327_v41, %v2275_v54 }
 0x6b6   :  { %3890 = vmatmul.mubr.msk.f32.gmra.mrb[146].mxu0 %vm2292_vm5, %v2291_v1  ;;  %v4329_v1 = vpop.eup %4328 }
 0x748   :  { %v3952_v28 = vpop.f32.mrb[120].mxu1 }
 0x749   :  { %v2759_v45 = vpop.f32.mrb[121].mxu1 }
 0x74a   :  { %v4283_v47 = vpack.c.bf16 %v3952_v28, %v2759_v45  ;;  %v1443_v45 = vmul.f32 0.6931472, %v4329_v1 }
 0x74c   :  { %v3955_v50 = vpop.f32.mrb[122].mxu1  ;;  %4284 = vmatprep.subr.bf16.mxu1 %v4283_v47 }
 0x74d   :  { %v2769_v3 = vpop.f32.mrb[123].mxu1  ;;  %4286 = vmatpush3.bf16.msra.mxu1 %v4283_v47 }
 0x74e   :  { %v4287_v14 = vpack.c.bf16 %v3955_v50, %v2769_v3  ;;  %v1446_v3 = vmul.f32 0.2, %v1443_v45 }
 0x750   :  { %v3958_v59 = vpop.f32.mrb[124].mxu1  ;;  %4288 = vmatprep.subr.bf16.mxu1 %v4287_v14 }
 0x751   :  { %v2779_v13 = vpop.f32.mrb[125].mxu1  ;;  %4290 = vmatpush3.bf16.msra.mxu1 %v4287_v14  ;;  %v4331_v14 = vpop.eup %4330 }
 0x752   :  { %v4291_v63 = vpack.c.bf16 %v3958_v59, %v2779_v13  ;;  %v1448_v13 = vmul.f32 1.442695, %v1446_v3 }
 0x754   :  { %v3961_v21 = vpop.f32.mrb[126].mxu1  ;;  %4292 = vmatprep.subr.bf16.mxu1 %v4291_v63 }
 0x755   :  { %v2789_v31 = vpop.f32.mrb[127].mxu1  ;;  %4294 = vmatpush3.bf16.msra.mxu1 %v4291_v63  ;;  %v1445_v63 = vmul.f32 0.6931472, %v4331_v14 }
 0x756   :  { %v4295_v32 = vpack.c.bf16 %v3961_v21, %v2789_v31 }
 0x758   :  { %v3964_v37 = vpop.f32.mrb[128].mxu1  ;;  %4296 = vmatprep.subr.bf16.mxu1 %v4295_v32 }
 0x759   :  { %v2799_v38 = vpop.f32.mrb[129].mxu1  ;;  %4298 = vmatpush3.bf16.msra.mxu1 %v4295_v32  ;;  %v1447_v32 = vmul.f32 0.2, %v1445_v63 }
 0x75a   :  { %v4299_v43 = vpack.c.bf16 %v3964_v37, %v2799_v38 }
 0x75c   :  { %4300 = vmatprep.subr.bf16.mxu1 %v4299_v43 }
 0x75d   :  { %4302 = vmatpush3.bf16.msra.mxu1 %v4299_v43  ;;  %v1450_v43 = vmul.f32 1.442695, %v1447_v32 }
 0x75e   :  { %4000 = vmatprep.subr.mxu1 %v2656_v11 }
 0x760   :  { %3986 = vmatmul.mubr.msk.f32.vlgmr.msra.gmra.mrb[130].mxu1 %vm2808_vm6, %v2647_v61 }
 0x761   :  { %3988 = vmatprep.mubr.msk.f32.mxu1 %vm2808_vm6, %v2648_v56  ;;  %4001 = vmatpush3.msra.mxu1 %v2656_v11 }
 0x764   :  { %3989 = vmatmul.mubr.msk.f32.gmra.mrb[132].mxu1 %vm2808_vm6, %v2649_v39 }
 0x765   :  { %3991 = vmatprep.mubr.msk.f32.mxu1 %vm2808_vm6, %v2650_v7 }
 0x768   :  { %3992 = vmatmul.mubr.msk.f32.gmra.mrb[134].mxu1 %vm2808_vm6, %v2651_v55 }
 0x769   :  { %3994 = vmatprep.mubr.msk.f32.mxu1 %vm2808_vm6, %v2652_v0 }
 0x76c   :  { %3995 = vmatmul.mubr.msk.f32.gmra.mrb[136].mxu1 %vm2808_vm6, %v2653_v26 }
 0x76d   :  { %3997 = vmatprep.mubr.msk.f32.mxu1 %vm2808_vm6, %v2654_v58 }
 0x770   :  { %3998 = vmatmul.mubr.msk.f32.gmra.mrb[138].mxu1 %vm2808_vm6, %v2655_v25 }
 0x781   :  { %v3888_v35 = vpop.f32.mrb[144].mxu0 }
 0x782   :  { %v2391_v20 = vsel %vm1414_vm3, %v3888_v35, 0.0  ;;  %v2371_v5 = vpop.f32.mrb[145].mxu0 }
 0x783   :  { %v2390_v53 = vsel %vm1408_vm2, %v2371_v5, 0.0 }
 0x784   :  { %v2392_v16 = vadd.f32 %v2391_v20, %v2390_v53 }
 0x786   :  { %v2393_v19 = vrot.slane %v2392_v16, 4 }
 0x788   :  { %v2394_v42 = vadd.f32 %v2393_v19, %v2392_v16 }
 0x789   :  { %v3891_v8 = vpop.f32.mrb[146].mxu0 }
 0x78a   :  { %v2395_v33 = vrot.slane %v2394_v42, 2  ;;  %v2400_v10 = vsel %vm1414_vm3, %v3891_v8, 0.0  ;;  %v2381_v46 = vpop.f32.mrb[147].mxu0 }
 0x78b   :  { %v2399_v23 = vsel %vm1408_vm2, %v2381_v46, 0.0 }
 0x78c   :  { %v2396_v36 = vadd.f32 %v2395_v33, %v2394_v42  ;;  %v2401_v40 = vadd.f32 %v2400_v10, %v2399_v23 }
 0x78e   :  { %v2397_v30 = vrot.slane %v2396_v36, 1  ;;  %v2402_v48 = vrot.slane %v2401_v40, 4 }
 0x790   :  { %v2398_v52 = vadd.f32 %v2397_v30, %v2396_v36  ;;  %v2403_v2 = vadd.f32 %v2402_v48, %v2401_v40 }
 0x792   :  { %v2408_v51 = vmax.f32 %v2398_v52, 0.0  ;;  %v2404_v44 = vrot.slane %v2403_v2, 2 }
 0x794   :  { %v2412_v41 = vmax.f32 %v2408_v51, 1e-30  ;;  %v2405_v54 = vadd.f32 %v2404_v44, %v2403_v2  ;;  %vm2410_vm7 = vcmp.gt.f32.partialorder %v2408_v51, 0.0 }
 0x796   :  { %4332 = vlog2.f32 %v2412_v41  ;;  %v2406_v24 = vrot.slane %v2405_v54, 1 }
 0x798   :  { %v2407_v28 = vadd.f32 %v2406_v24, %v2405_v54 }
 0x79a   :  { %v2409_v47 = vmax.f32 %v2407_v28, 0.0 }
 0x79c   :  { %v2413_v50 = vmax.f32 %v2409_v47, 1e-30  ;;  %vm2411_vm9 = vcmp.gt.f32.partialorder %v2409_v47, 0.0 }
 0x79e   :  { %4334 = vlog2.f32 %v2413_v50 }
 0x79f   :  { %4336 = vpow2.f32 %v1448_v13 }
 0x7a0   :  { %v4333_v59 = vpop.eup %4332 }
 0x7a1   :  { %v2415_v21 = vmul.f32 0.6931472, %v4333_v59 }
 0x7a3   :  { %v2418_v31 = vmul.f32 0.3, %v2415_v21 }
 0x7a5   :  { %v2420_v37 = vmul.f32 1.442695, %v2418_v31 }
 0x7a7   :  { %4338 = vpow2.f32 %v2420_v37 }
 0x7a8   :  { %v4335_v38 = vpop.eup %4334  ;;  %4340 = vpow2.f32 %v1450_v43 }
 0x7a9   :  { %v2417_v61 = vmul.f32 0.6931472, %v4335_v38  ;;  %v4337_v7 = vpop.eup %4336 }
 0x7aa   :  { %v1452_v26 = vsel %vm1438_vm8, %v4337_v7, 0.0 }
 0x7ab   :  { %v2419_v56 = vmul.f32 0.3, %v2417_v61 }
 0x7ad   :  { %v2422_v39 = vmul.f32 1.442695, %v2419_v56 }
 0x7af   :  { %4342 = vpow2.f32 %v2422_v39 }
 0x7b1   :  { %v4339_v55 = vpop.eup %4338 }
 0x7b2   :  { %v2424_v0 = vsel %vm2410_vm7, %v4339_v55, 0.0  ;;  %v4341_v15 = vpop.eup %4340 }
 0x7b3   :  { %v5721_v58 = vmul.f32 %v2424_v0, %v1452_v26  ;;  %v1453_v27 = vsel %vm1439_vm10, %v4341_v15, 0.0 }
 0x7b9   :  { %v4343_v25 = vpop.eup %4342 }
 0x7ba   :  { %v2425_v22 = vsel %vm2411_vm9, %v4343_v25, 0.0 }
 0x7bb   :  { %v5723_v12 = vmul.f32 %v2425_v22, %v1453_v27 }
 0x833   :  { %v3987_v6 = vpop.f32.mrb[130].mxu1 }
 0x834   :  { %v2905_v17 = vpop.f32.mrb[131].mxu1  ;;  %v2955_v9 = vmul.f32 %v3987_v6, %v3987_v6 }
 0x835   :  { %v2954_v5 = vmul.f32 %v2905_v17, %v2905_v17 }
 0x837   :  { %v3990_v57 = vpop.f32.mrb[132].mxu1 }
 0x838   :  { %v2957_v34 = vmul.f32 %v3990_v57, %v3990_v57  ;;  %v2959_v35 = vmul.f32 %v3990_v57, %v3987_v6  ;;  %v2915_v20 = vpop.f32.mrb[133].mxu1 }
 0x839   :  { %v2956_v53 = vmul.f32 %v2915_v20, %v2915_v20  ;;  %v2958_v60 = vmul.f32 %v2915_v20, %v2905_v17 }
 0x83a   :  { %v2983_v29 = vadd.f32 %v2957_v34, %v2955_v9  ;;  %v2979_v40 = vmul.f32 2.0, %v2959_v35 }
 0x83b   :  { %v2982_v16 = vadd.f32 %v2956_v53, %v2954_v5  ;;  %v3993_v19 = vpop.f32.mrb[134].mxu1  ;;  %v2978_v49 = vmul.f32 2.0, %v2958_v60 }
 0x83c   :  { %v2985_v62 = vadd.f32 0.0001, %v2983_v29  ;;  %v2961_v4 = vsub.f32 %v3993_v19, %v2955_v9  ;;  %v2925_v42 = vpop.f32.mrb[135].mxu1  ;;  %v2981_v54 = vadd.f32 0.0001, %v2979_v40 }
 0x83d   :  { %v2984_v8 = vadd.f32 0.0001, %v2982_v16  ;;  %v2960_v33 = vsub.f32 %v2925_v42, %v2954_v5  ;;  %v2980_v24 = vadd.f32 0.0001, %v2978_v49 }
 0x83e   :  { %4344 = vrcp.f32 %v2985_v62 }
 0x83f   :  { %4346 = vrcp.f32 %v2984_v8  ;;  %v3996_v10 = vpop.f32.mrb[136].mxu1 }
 0x840   :  { %v2963_v46 = vsub.f32 %v3996_v10, %v2957_v34  ;;  %v2935_v23 = vpop.f32.mrb[137].mxu1 }
 0x841   :  { %v2962_v18 = vsub.f32 %v2935_v23, %v2956_v53 }
 0x842   :  { %v2971_v36 = vadd.f32 %v2963_v46, %v2961_v4 }
 0x843   :  { %v2970_v30 = vadd.f32 %v2962_v18, %v2960_v33  ;;  %v3999_v48 = vpop.f32.mrb[138].mxu1 }
 0x844   :  { %v2973_v52 = vadd.f32 0.0009, %v2971_v36  ;;  %v2965_v2 = vsub.f32 %v3999_v48, %v2959_v35  ;;  %v2945_v51 = vpop.f32.mrb[139].mxu1 }
 0x845   :  { %v2972_v44 = vadd.f32 0.0009, %v2970_v30  ;;  %v2964_v41 = vsub.f32 %v2945_v51, %v2958_v60 }
 0x846   :  { %4348 = vrcp.f32 %v2973_v52  ;;  %v2967_v50 = vmul.f32 2.0, %v2965_v2 }
 0x847   :  { %4350 = vrcp.f32 %v2972_v44  ;;  %v2966_v3 = vmul.f32 2.0, %v2964_v41 }
 0x848   :  { %v4345_v1 = vpop.eup %4344  ;;  %v2969_v14 = vadd.f32 0.0009, %v2967_v50 }
 0x849   :  { %v4347_v28 = vpop.eup %4346  ;;  %v2989_v45 = vmul.f32 %v4345_v1, %v2981_v54  ;;  %v2968_v13 = vadd.f32 0.0009, %v2966_v3 }
 0x84a   :  { %v2987_v47 = vmul.f32 %v4347_v28, %v2980_v24 }
 0x850   :  { %v4349_v59 = vpop.eup %4348 }
 0x851   :  { %v4351_v63 = vpop.eup %4350  ;;  %v2977_v21 = vmul.f32 %v4349_v59, %v2969_v14 }
 0x852   :  { %v2975_v31 = vmul.f32 %v4351_v63, %v2968_v13 }
 0x853   :  { %v2991_v32 = vmul.f32 %v2989_v45, %v2977_v21 }
 0x854   :  { %v2990_v37 = vmul.f32 %v2987_v47, %v2975_v31 }
 0x856   :  { %4002 = vmatprep.mubr.msk.f32.mxu1 %vm2992_vm11, %v2990_v37 }
 0x857   :  { %4003 = vmatmul.mubr.msk.f32.vlgmr.msra.gmra.mrb[140].mxu1 %vm2992_vm11, %v2991_v32 }
 0x92a   :  { %v4004_v38 = vpop.f32.mrb[140].mxu1 }
 0x92b   :  { %v3081_v43 = vsel %vm1414_vm3, %v4004_v38, 0.0  ;;  %v3065_v61 = vpop.f32.mrb[141].mxu1 }
 0x92c   :  { %v3082_v56 = vrot.slane %v3081_v43, 4  ;;  %v3074_v39 = vsel %vm1414_vm3, %v3065_v61, 0.0 }
 0x92d   :  { %v3075_v7 = vrot.slane %v3074_v39, 4 }
 0x92e   :  { %v3083_v55 = vadd.f32 %v3082_v56, %v3081_v43 }
 0x92f   :  { %v3076_v0 = vadd.f32 %v3075_v7, %v3074_v39 }
 0x930   :  { %v3084_v26 = vrot.slane %v3083_v55, 2 }
 0x931   :  { %v3077_v15 = vrot.slane %v3076_v0, 2 }
 0x932   :  { %v3085_v25 = vadd.f32 %v3084_v26, %v3083_v55 }
 0x933   :  { %v3078_v22 = vadd.f32 %v3077_v15, %v3076_v0 }
 0x934   :  { %v3086_v27 = vrot.slane %v3085_v25, 1 }
 0x935   :  { %v3079_v11 = vrot.slane %v3078_v22, 1 }
 0x936   :  { %v3087_v6 = vadd.f32 %v3086_v27, %v3085_v25 }
 0x937   :  { %v3080_v17 = vadd.f32 %v3079_v11, %v3078_v22 }
 0x938   :  { %v3089_v57 = vmax.f32 %v3087_v6, 0.0 }
 0x939   :  { %v3088_v9 = vmax.f32 %v3080_v17, 0.0 }
 0x93a   :  { %v3093_v34 = vmax.f32 %v3089_v57, 1e-30  ;;  %vm3091_vm12 = vcmp.gt.f32.partialorder %v3089_v57, 0.0 }
 0x93b   :  { %v3092_v35 = vmax.f32 %v3088_v9, 1e-30  ;;  %vm3090_vm14 = vcmp.gt.f32.partialorder %v3088_v9, 0.0 }
 0x93c   :  { %4352 = vlog2.f32 %v3093_v34 }
 0x93d   :  { %4354 = vlog2.f32 %v3092_v35 }
 0x946   :  { %v4353_v20 = vpop.eup %4352 }
 0x947   :  { %v4355_v5 = vpop.eup %4354  ;;  %v3097_v53 = vmul.f32 0.6931472, %v4353_v20 }
 0x948   :  { %v3095_v60 = vmul.f32 0.6931472, %v4355_v5 }
 0x949   :  { %v3099_v29 = vmul.f32 0.5, %v3097_v53 }
 0x94a   :  { %v3098_v16 = vmul.f32 0.5, %v3095_v60 }
 0x94b   :  { %v3102_v19 = vmul.f32 1.442695, %v3099_v29 }
 0x94c   :  { %v3100_v62 = vmul.f32 1.442695, %v3098_v16 }
 0x94d   :  { %4356 = vpow2.f32 %v3102_v19 }
 0x94e   :  { %4358 = vpow2.f32 %v3100_v62 }
 0x957   :  { %v4357_v4 = vpop.eup %4356 }
 0x958   :  { %v4359_v42 = vpop.eup %4358  ;;  %v3105_v8 = vsel %vm3091_vm12, %v4357_v4, 0.0 }
 0x959   :  { %v3107_v33 = vmul.f32 %v3105_v8, %v5723_v12  ;;  %v3104_v10 = vsel %vm3090_vm14, %v4359_v42, 0.0 }
 0x95a   :  { %v3106_v46 = vmul.f32 %v3104_v10, %v5721_v58 }
 0x95b   :  { %3110 = vst.msk [vmem:[%s5754_s16 + $0x1] sm:$0x1] %vm3108_vm13, %v3107_v33 }
 0x95c   :  { %3109 = vst.msk [vmem:[%s5754_s16] sm:$0x1] %vm3108_vm13, %v3106_v46 }

</bundles_post_ra>
